<compile_context>
chip_gen: v6e
topology: v6e:2x2x1
jax: 0.10.0
libtpu: 0.0.40
codegen_flags: <defaults>
</compile_context>

<pallas_src>
import functools

import numpy as np
import jax
import jax.numpy as jnp
from jax.experimental import pallas as pl
from jax.experimental.pallas import tpu as pltpu


# ----------------------------------------------------------------------------
# Pallas kernel: TB windows per grid step.
# ----------------------------------------------------------------------------
def _window_attn_body(x_ref, mask_ref, wqkv_ref, bqkv_ref, scale_ref, rpb_ref,
                      wproj_ref, bproj_ref, out_ref, *, num_heads, seq_len):
    R, C = x_ref.shape                 # R = TB * N token rows
    N = seq_len
    TB = R // N
    H = num_heads
    hd = C // H

    # QKV projection: one (TB*N, C) @ (C, 3C) bf16 matmul, f32 accumulation.
    qkv = jnp.dot(x_ref[...], wqkv_ref[...],
                  preferred_element_type=jnp.float32) + bqkv_ref[...]

    mask = mask_ref[...] if mask_ref is not None else None      # (TB, N, N)

    head_outs = []
    for h in range(H):                                           # static unroll
        q = qkv[:, h * hd:(h + 1) * hd].reshape(TB, N, hd)
        k = qkv[:, C + h * hd:C + (h + 1) * hd].reshape(TB, N, hd)
        v = qkv[:, 2 * C + h * hd:2 * C + (h + 1) * hd].reshape(TB, N, hd)

        # F.normalize(., dim=-1) == x * rsqrt(max(||x||^2, 1e-24))  (EUP rsqrt)
        # per-head logit scale (precomputed exp(clamp)) folded into q's factor
        inv_q = jax.lax.rsqrt(
            jnp.maximum(jnp.sum(q * q, axis=-1, keepdims=True), 1e-24))
        inv_k = jax.lax.rsqrt(
            jnp.maximum(jnp.sum(k * k, axis=-1, keepdims=True), 1e-24))
        qn = q * (inv_q * scale_ref[h])
        kn = k * inv_k

        # cosine attention logits batched over the TB windows: (TB, N, N)
        attn = jnp.einsum("bnd,bmd->bnm", qn, kn,
                          preferred_element_type=jnp.float32)
        attn = attn + rpb_ref[h]            # (N, N) bias broadcast over TB
        if mask is not None:
            attn = attn + mask              # (TB, N, N)

        # softmax along last dim (exp on EUP, approx reciprocal on EUP)
        attn = jnp.exp(attn - jnp.max(attn, axis=-1, keepdims=True))
        attn = attn * pl.reciprocal(
            jnp.sum(attn, axis=-1, keepdims=True), approx=True)

        # attn @ v -> (TB, N, hd); bf16 operands, f32 accumulation
        out_h = jnp.einsum("bnm,bmd->bnd",
                           attn.astype(jnp.bfloat16),
                           v.astype(jnp.bfloat16),
                           preferred_element_type=jnp.float32)
        head_outs.append(out_h)

    # heads concatenated back into the channel axis — stays in vregs.
    y = jnp.concatenate(head_outs, axis=-1).reshape(R, C)

    # output projection: (TB*N, C) @ (C, C), bf16 operands, f32 accumulation.
    out_ref[...] = jnp.dot(y.astype(jnp.bfloat16), wproj_ref[...],
                           preferred_element_type=jnp.float32) + bproj_ref[...]


def _kernel_masked(x_ref, mask_ref, wqkv_ref, bqkv_ref, scale_ref, rpb_ref,
                   wproj_ref, bproj_ref, out_ref, *, num_heads, seq_len):
    _window_attn_body(x_ref, mask_ref, wqkv_ref, bqkv_ref, scale_ref, rpb_ref,
                      wproj_ref, bproj_ref, out_ref,
                      num_heads=num_heads, seq_len=seq_len)


def _kernel_nomask(x_ref, wqkv_ref, bqkv_ref, scale_ref, rpb_ref,
                   wproj_ref, bproj_ref, out_ref, *, num_heads, seq_len):
    _window_attn_body(x_ref, None, wqkv_ref, bqkv_ref, scale_ref, rpb_ref,
                      wproj_ref, bproj_ref, out_ref,
                      num_heads=num_heads, seq_len=seq_len)


# ----------------------------------------------------------------------------
# Window-batch (TB) selection
# ----------------------------------------------------------------------------
def _choose_block_windows(B_, N, step):
    """TB must divide B_ and be a multiple of `step` (nW when masked, else 1)."""
    cands = [t for t in range(step, B_ + 1, step) if B_ % t == 0]
    if not cands:
        return B_
    # keep >=2 grid steps when possible (megacore sharding + DMA pipelining)
    pref = [t for t in cands if B_ // t >= 2] or cands
    # target enough rows to fill MXU sublanes and amortize per-step overhead
    target_rows = 512
    good = [t for t in pref if t * N <= target_rows] or [min(pref)]
    tb = max(good)
    # keep the row block (8,128)-tileable, else fall back to a single full block
    if (tb * N) % 8 != 0 and tb != B_:
        tb = B_
    return tb


# ----------------------------------------------------------------------------
# Wrapper
# ----------------------------------------------------------------------------
def window_attention_pallas(x, mask, params, rel_bias_presig, num_heads,
                            block_windows=None):
    """x: (B_, N, C) f32; mask: (nW, N, N) or None; rel_bias_presig: (H, N, N)."""
    B_, N, C = x.shape
    H = num_heads

    # qkv bias = cat(q_bias, zeros, v_bias)
    qkv_bias = jnp.concatenate(
        [params["q_bias"], jnp.zeros_like(params["v_bias"]), params["v_bias"]]
    ).reshape(1, 3 * C).astype(jnp.float32)
    wqkv_t = params["qkv_w"].T.astype(jnp.bfloat16)              # (C, 3C)
    wproj_t = params["proj_w"].T.astype(jnp.bfloat16)            # (C, C)
    bproj = params["proj_b"].reshape(1, C).astype(jnp.float32)

    # logit_scale: exp(clamp(log_scale, max=log(1/0.01))) -> (H,) scalars (SMEM)
    scale = jnp.exp(jnp.minimum(params["logit_scale"].reshape(H),
                                jnp.log(1.0 / 0.01))).astype(jnp.float32)

    # window-invariant relative-position bias: hoist 16*sigmoid out of the kernel
    rpb16 = (16.0 * jax.nn.sigmoid(rel_bias_presig)).astype(jnp.float32)

    step = mask.shape[0] if mask is not None else 1
    TB = block_windows if block_windows is not None else _choose_block_windows(B_, N, step)
    grid = (B_ // TB,)

    # flatten windows into a (B_*N, C) token matrix (layout plumbing in XLA)
    x_flat = x.astype(jnp.bfloat16).reshape(B_ * N, C)

    in_specs = [pl.BlockSpec((TB * N, C), lambda b: (b, 0))]     # x
    args = [x_flat]
    if mask is not None:
        nW = mask.shape[0]
        # one window-period of masks; identical block for every grid step
        mask_block = jnp.tile(mask.astype(jnp.float32), (TB // nW, 1, 1))
        in_specs.append(pl.BlockSpec((TB, N, N), lambda b: (0, 0, 0)))
        args.append(mask_block)
    in_specs += [
        pl.BlockSpec((C, 3 * C), lambda b: (0, 0)),              # qkv weight^T
        pl.BlockSpec((1, 3 * C), lambda b: (0, 0)),              # qkv bias
        pl.BlockSpec(memory_space=pltpu.MemorySpace.SMEM),       # logit scale
        pl.BlockSpec((H, N, N), lambda b: (0, 0, 0)),            # 16*sigmoid(bias)
        pl.BlockSpec((C, C), lambda b: (0, 0)),                  # proj weight^T
        pl.BlockSpec((1, C), lambda b: (0, 0)),                  # proj bias
    ]
    args += [wqkv_t, qkv_bias, scale, rpb16, wproj_t, bproj]

    kernel = functools.partial(
        _kernel_masked if mask is not None else _kernel_nomask,
        num_heads=H, seq_len=N)

    grid_spec = pltpu.PrefetchScalarGridSpec(
        num_scalar_prefetch=0,
        grid=grid,
        in_specs=in_specs,
        out_specs=pl.BlockSpec((TB * N, C), lambda b: (b, 0)),
    )

    out_flat = pl.pallas_call(
        kernel,
        out_shape=jax.ShapeDtypeStruct((B_ * N, C), jnp.float32),
        grid_spec=grid_spec,
        compiler_params=pltpu.CompilerParams(
            dimension_semantics=("parallel",)),
    )(*args)
    return out_flat.reshape(B_, N, C)


# ----------------------------------------------------------------------------
# Relative position machinery (identical to the PyTorch __init__ buffers)
# ----------------------------------------------------------------------------
def make_relative_buffers(window_size, pretrained_window_size=(0, 0)):
    Wh, Ww = window_size
    rch = np.arange(-(Wh - 1), Wh, dtype=np.float32)
    rcw = np.arange(-(Ww - 1), Ww, dtype=np.float32)
    table = np.stack(np.meshgrid(rch, rcw, indexing="ij"), axis=0)   # (2, 2Wh-1, 2Ww-1)
    table = table.transpose(1, 2, 0)[None]                           # (1, 2Wh-1, 2Ww-1, 2)
    if pretrained_window_size[0] > 0:
        table[..., 0] /= (pretrained_window_size[0] - 1)
        table[..., 1] /= (pretrained_window_size[1] - 1)
    else:
        table[..., 0] /= (Wh - 1)
        table[..., 1] /= (Ww - 1)
    table *= 8.0
    table = np.sign(table) * np.log2(np.abs(table) + 1.0) / np.log2(8.0)

    coords = np.stack(np.meshgrid(np.arange(Wh), np.arange(Ww), indexing="ij"))
    coords_flat = coords.reshape(2, -1)
    rel = coords_flat[:, :, None] - coords_flat[:, None, :]
    rel = rel.transpose(1, 2, 0).astype(np.int64)
    rel[..., 0] += Wh - 1
    rel[..., 1] += Ww - 1
    rel[..., 0] *= 2 * Ww - 1
    rel_pos_index = rel.sum(-1)                                       # (N, N)
    return table.astype(np.float32), rel_pos_index


def compute_rel_bias_presig(params, window_size, num_heads):
    """cpb_mlp + gather -> (H, N, N) pre-sigmoid bias (plain-JAX glue)."""
    Wh, Ww = window_size
    N = Wh * Ww
    table, rel_idx = make_relative_buffers(window_size)
    t = jnp.asarray(table)                                            # (1, 2Wh-1, 2Ww-1, 2)
    h1 = jnp.maximum(jnp.einsum("...i,oi->...o", t, params["cpb_w1"])
                     + params["cpb_b1"], 0.0)
    tbl = jnp.einsum("...i,oi->...o", h1, params["cpb_w2"])
    tbl = tbl.reshape(-1, num_heads)                                  # ((2Wh-1)(2Ww-1), H)
    idx = jnp.asarray(rel_idx.reshape(-1))
    rpb = tbl[idx].reshape(N, N, num_heads).transpose(2, 0, 1)        # (H, N, N)
    return rpb


# ----------------------------------------------------------------------------
# Pure-JAX reference (mirror of the PyTorch forward) for verification.
# ----------------------------------------------------------------------------
def reference_forward(x, mask, params, rel_bias_presig, num_heads):
    B_, N, C = x.shape
    H = num_heads
    qkv_bias = jnp.concatenate(
        [params["q_bias"], jnp.zeros_like(params["v_bias"]), params["v_bias"]])
    qkv = x @ params["qkv_w"].T + qkv_bias
    qkv = qkv.reshape(B_, N, 3, H, C // H).transpose(2, 0, 3, 1, 4)
    q, k, v = qkv[0], qkv[1], qkv[2]
    qn = q / jnp.maximum(jnp.sqrt(jnp.sum(q * q, -1, keepdims=True)), 1e-12)
    kn = k / jnp.maximum(jnp.sqrt(jnp.sum(k * k, -1, keepdims=True)), 1e-12)
    attn = qn @ jnp.swapaxes(kn, -1, -2)
    logit_scale = jnp.exp(jnp.minimum(params["logit_scale"], jnp.log(1.0 / 0.01)))
    attn = attn * logit_scale
    rpb = 16.0 / (1.0 + jnp.exp(-rel_bias_presig))
    attn = attn + rpb[None]
    if mask is not None:
        nW = mask.shape[0]
        attn = attn.reshape(B_ // nW, nW, H, N, N) + mask[None, :, None]
        attn = attn.reshape(-1, H, N, N)
    attn = jax.nn.softmax(attn, axis=-1)
    out = jnp.swapaxes(attn @ v, 1, 2).reshape(B_, N, C)
    out = out @ params["proj_w"].T + params["proj_b"]
    return out


# ----------------------------------------------------------------------------
# Main
# ----------------------------------------------------------------------------
if __name__ == "__main__":
    dim = 32
    window_size = (4, 4)
    num_heads = 4
    N = window_size[0] * window_size[1]
    B, nW = 2, 4
    B_ = B * nW

    key = jax.random.PRNGKey(0)
    ks = jax.random.split(key, 10)
    params = {
        "qkv_w": 0.05 * jax.random.normal(ks[0], (3 * dim, dim), jnp.float32),
        "q_bias": 0.05 * jax.random.normal(ks[1], (dim,), jnp.float32),
        "v_bias": 0.05 * jax.random.normal(ks[2], (dim,), jnp.float32),
        "logit_scale": jnp.log(10.0 * jnp.ones((num_heads, 1, 1), jnp.float32)),
        "proj_w": 0.05 * jax.random.normal(ks[3], (dim, dim), jnp.float32),
        "proj_b": 0.05 * jax.random.normal(ks[4], (dim,), jnp.float32),
        "cpb_w1": 0.05 * jax.random.normal(ks[5], (512, 2), jnp.float32),
        "cpb_b1": 0.05 * jax.random.normal(ks[6], (512,), jnp.float32),
        "cpb_w2": 0.05 * jax.random.normal(ks[7], (num_heads, 512), jnp.float32),
    }

    x = jax.random.normal(ks[8], (B_, N, dim), jnp.float32)
    # shifted-window style additive mask (0 / -100), deterministic
    mask = jnp.where(jax.random.uniform(ks[9], (nW, N, N)) > 0.7, -100.0, 0.0)

    rel_bias = compute_rel_bias_presig(params, window_size, num_heads)

    # no-mask path (mask-free kernel variant)
    out_nomask = window_attention_pallas(x, None, params, rel_bias, num_heads)
    # masked path
    out_masked = window_attention_pallas(x, mask, params, rel_bias, num_heads)
    jax.block_until_ready((out_nomask, out_masked))

    ref_nomask = reference_forward(x, None, params, rel_bias, num_heads)
    ref_masked = reference_forward(x, mask, params, rel_bias, num_heads)

    np.testing.assert_allclose(np.asarray(out_nomask), np.asarray(ref_nomask),
                               rtol=1e-2, atol=1e-2)
    np.testing.assert_allclose(np.asarray(out_masked), np.asarray(ref_masked),
                               rtol=1e-2, atol=1e-2)

    print("KERNEL_OK")
</pallas_src>

<mosaic_0001>
module attributes {stable_mosaic.version = 11 : i64} {
  func.func @_kernel_nomask(%arg0: i32, %arg1: memref<64x32xbf16, #tpu.memory_space<vmem>>, %arg2: memref<32x96xbf16, #tpu.memory_space<vmem>>, %arg3: memref<1x96xf32, #tpu.memory_space<vmem>>, %arg4: memref<4xf32, #tpu.memory_space<smem>>, %arg5: memref<4x16x16xf32, #tpu.memory_space<vmem>>, %arg6: memref<32x32xbf16, #tpu.memory_space<vmem>>, %arg7: memref<1x32xf32, #tpu.memory_space<vmem>>, %arg8: memref<64x32xf32, #tpu.memory_space<vmem>>) attributes {dimension_semantics = [#tpu.dimension_semantics<parallel>], iteration_bounds = array<i64: 2>, scalar_prefetch = 0 : i64, scratch_operands = 0 : i64, tpu.core_type = #tpu.core_type<tc>, window_params = [{transform_indices = @transform_0, window_bounds = array<i64: 64, 32>}, {pipeline_mode = #tpu.pipeline_mode<synchronous>, transform_indices = @transform_1, window_bounds = array<i64: 32, 96>}, {pipeline_mode = #tpu.pipeline_mode<synchronous>, transform_indices = @transform_2, window_bounds = array<i64: 1, 96>}, {transform_indices = @transform_3, window_bounds = array<i64: 4>}, {pipeline_mode = #tpu.pipeline_mode<synchronous>, transform_indices = @transform_4, window_bounds = array<i64: 4, 16, 16>}, {pipeline_mode = #tpu.pipeline_mode<synchronous>, transform_indices = @transform_5, window_bounds = array<i64: 32, 32>}, {pipeline_mode = #tpu.pipeline_mode<synchronous>, transform_indices = @transform_6, window_bounds = array<i64: 1, 32>}, {transform_indices = @transform_7, window_bounds = array<i64: 64, 32>}]} {
    %c0 = arith.constant 0 : index
    %c0_0 = arith.constant 0 : index
    %0 = vector.load %arg1[%c0, %c0_0] : memref<64x32xbf16, #tpu.memory_space<vmem>>, vector<64x32xbf16>
    %c0_1 = arith.constant 0 : index
    %c0_2 = arith.constant 0 : index
    %1 = vector.load %arg2[%c0_1, %c0_2] : memref<32x96xbf16, #tpu.memory_space<vmem>>, vector<32x96xbf16>
    %cst = arith.constant dense<0.000000e+00> : vector<64x96xf32>
    %2 = tpu.matmul %0, %1, %cst {dimension_numbers = #tpu.dot_dimension_numbers<[1], [0], [0], [1], [0, 0, 1, 1], [], []>} : vector<64x32xbf16>, vector<32x96xbf16>, vector<64x96xf32> -> vector<64x96xf32>
    %c0_3 = arith.constant 0 : index
    %c0_4 = arith.constant 0 : index
    %3 = vector.load %arg3[%c0_3, %c0_4] : memref<1x96xf32, #tpu.memory_space<vmem>>, vector<1x96xf32>
    %4 = vector.broadcast %3 : vector<1x96xf32> to vector<64x96xf32>
    %5 = arith.addf %2, %4 : vector<64x96xf32>
    %6 = vector.extract_strided_slice %5 {offsets = [0, 0], sizes = [64, 8], strides = [1, 1]} : vector<64x96xf32> to vector<64x8xf32>
    %7 = vector.shape_cast %6 : vector<64x8xf32> to vector<4x16x8xf32>
    %8 = vector.extract_strided_slice %5 {offsets = [0, 32], sizes = [64, 8], strides = [1, 1]} : vector<64x96xf32> to vector<64x8xf32>
    %9 = vector.shape_cast %8 : vector<64x8xf32> to vector<4x16x8xf32>
    %10 = vector.extract_strided_slice %5 {offsets = [0, 64], sizes = [64, 8], strides = [1, 1]} : vector<64x96xf32> to vector<64x8xf32>
    %11 = vector.shape_cast %10 : vector<64x8xf32> to vector<4x16x8xf32>
    %12 = arith.mulf %7, %7 : vector<4x16x8xf32>
    %cst_5 = arith.constant dense<0.000000e+00> : vector<4x16xf32>
    %13 = vector.multi_reduction <add>, %12, %cst_5 [2] : vector<4x16x8xf32> to vector<4x16xf32>
    %14 = vector.shape_cast %13 : vector<4x16xf32> to vector<4x16x1xf32>
    %cst_6 = arith.constant 1.000000e-24 : f32
    %15 = vector.broadcast %cst_6 : f32 to vector<4x16x1xf32>
    %16 = arith.maximumf %14, %15 : vector<4x16x1xf32>
    %17 = math.rsqrt %16 : vector<4x16x1xf32>
    %18 = arith.mulf %9, %9 : vector<4x16x8xf32>
    %cst_7 = arith.constant dense<0.000000e+00> : vector<4x16xf32>
    %19 = vector.multi_reduction <add>, %18, %cst_7 [2] : vector<4x16x8xf32> to vector<4x16xf32>
    %20 = vector.shape_cast %19 : vector<4x16xf32> to vector<4x16x1xf32>
    %cst_8 = arith.constant 1.000000e-24 : f32
    %21 = vector.broadcast %cst_8 : f32 to vector<4x16x1xf32>
    %22 = arith.maximumf %20, %21 : vector<4x16x1xf32>
    %23 = math.rsqrt %22 : vector<4x16x1xf32>
    %c0_9 = arith.constant 0 : index
    %24 = memref.load %arg4[%c0_9] : memref<4xf32, #tpu.memory_space<smem>>
    %25 = vector.broadcast %24 : f32 to vector<4x16x1xf32>
    %26 = arith.mulf %17, %25 : vector<4x16x1xf32>
    %27 = vector.broadcast %26 : vector<4x16x1xf32> to vector<4x16x8xf32>
    %28 = arith.mulf %7, %27 : vector<4x16x8xf32>
    %29 = vector.broadcast %23 : vector<4x16x1xf32> to vector<4x16x8xf32>
    %30 = arith.mulf %9, %29 : vector<4x16x8xf32>
    "tpu.trace_start"() <{level = 10 : i32, message = "bnd,bmd->bnm"}> : () -> ()
    %cst_10 = arith.constant dense<0.000000e+00> : vector<4x16x16xf32>
    %31 = tpu.matmul %28, %30, %cst_10 {dimension_numbers = #tpu.dot_dimension_numbers<[2], [2], [1], [1], [0, 0, 0, 1, 1, 1], [0], [0]>} : vector<4x16x8xf32>, vector<4x16x8xf32>, vector<4x16x16xf32> -> vector<4x16x16xf32>
    "tpu.trace_stop"() : () -> ()
    %c0_11 = arith.constant 0 : index
    %c0_12 = arith.constant 0 : index
    %c0_13 = arith.constant 0 : index
    %32 = vector.load %arg5[%c0_11, %c0_12, %c0_13] : memref<4x16x16xf32, #tpu.memory_space<vmem>>, vector<1x16x16xf32>
    %33 = vector.shape_cast %32 : vector<1x16x16xf32> to vector<16x16xf32>
    %34 = vector.shape_cast %33 : vector<16x16xf32> to vector<1x16x16xf32>
    %35 = vector.broadcast %34 : vector<1x16x16xf32> to vector<4x16x16xf32>
    %36 = arith.addf %31, %35 : vector<4x16x16xf32>
    %cst_14 = arith.constant dense<0xFF800000> : vector<4x16xf32>
    %37 = vector.multi_reduction <maximumf>, %36, %cst_14 [2] : vector<4x16x16xf32> to vector<4x16xf32>
    %38 = vector.shape_cast %37 : vector<4x16xf32> to vector<4x16x1xf32>
    %39 = vector.broadcast %38 : vector<4x16x1xf32> to vector<4x16x16xf32>
    %40 = arith.subf %36, %39 : vector<4x16x16xf32>
    %41 = math.exp %40 : vector<4x16x16xf32>
    %cst_15 = arith.constant dense<0.000000e+00> : vector<4x16xf32>
    %42 = vector.multi_reduction <add>, %41, %cst_15 [2] : vector<4x16x16xf32> to vector<4x16xf32>
    %43 = vector.shape_cast %42 : vector<4x16xf32> to vector<4x16x1xf32>
    %44 = tpu.reciprocal %43 {approx = true} : vector<4x16x1xf32> -> vector<4x16x1xf32>
    %45 = vector.broadcast %44 : vector<4x16x1xf32> to vector<4x16x16xf32>
    %46 = arith.mulf %41, %45 : vector<4x16x16xf32>
    %47 = arith.truncf %46 : vector<4x16x16xf32> to vector<4x16x16xbf16>
    %48 = arith.truncf %11 : vector<4x16x8xf32> to vector<4x16x8xbf16>
    "tpu.trace_start"() <{level = 10 : i32, message = "bnm,bmd->bnd"}> : () -> ()
    %cst_16 = arith.constant dense<0.000000e+00> : vector<4x16x8xf32>
    %49 = tpu.matmul %47, %48, %cst_16 {dimension_numbers = #tpu.dot_dimension_numbers<[2], [1], [1], [2], [0, 0, 0, 1, 1, 2], [0], [0]>} : vector<4x16x16xbf16>, vector<4x16x8xbf16>, vector<4x16x8xf32> -> vector<4x16x8xf32>
    "tpu.trace_stop"() : () -> ()
    %50 = vector.extract_strided_slice %5 {offsets = [0, 8], sizes = [64, 8], strides = [1, 1]} : vector<64x96xf32> to vector<64x8xf32>
    %51 = vector.shape_cast %50 : vector<64x8xf32> to vector<4x16x8xf32>
    %52 = vector.extract_strided_slice %5 {offsets = [0, 40], sizes = [64, 8], strides = [1, 1]} : vector<64x96xf32> to vector<64x8xf32>
    %53 = vector.shape_cast %52 : vector<64x8xf32> to vector<4x16x8xf32>
    %54 = vector.extract_strided_slice %5 {offsets = [0, 72], sizes = [64, 8], strides = [1, 1]} : vector<64x96xf32> to vector<64x8xf32>
    %55 = vector.shape_cast %54 : vector<64x8xf32> to vector<4x16x8xf32>
    %56 = arith.mulf %51, %51 : vector<4x16x8xf32>
    %cst_17 = arith.constant dense<0.000000e+00> : vector<4x16xf32>
    %57 = vector.multi_reduction <add>, %56, %cst_17 [2] : vector<4x16x8xf32> to vector<4x16xf32>
    %58 = vector.shape_cast %57 : vector<4x16xf32> to vector<4x16x1xf32>
    %cst_18 = arith.constant 1.000000e-24 : f32
    %59 = vector.broadcast %cst_18 : f32 to vector<4x16x1xf32>
    %60 = arith.maximumf %58, %59 : vector<4x16x1xf32>
    %61 = math.rsqrt %60 : vector<4x16x1xf32>
    %62 = arith.mulf %53, %53 : vector<4x16x8xf32>
    %cst_19 = arith.constant dense<0.000000e+00> : vector<4x16xf32>
    %63 = vector.multi_reduction <add>, %62, %cst_19 [2] : vector<4x16x8xf32> to vector<4x16xf32>
    %64 = vector.shape_cast %63 : vector<4x16xf32> to vector<4x16x1xf32>
    %cst_20 = arith.constant 1.000000e-24 : f32
    %65 = vector.broadcast %cst_20 : f32 to vector<4x16x1xf32>
    %66 = arith.maximumf %64, %65 : vector<4x16x1xf32>
    %67 = math.rsqrt %66 : vector<4x16x1xf32>
    %c1 = arith.constant 1 : index
    %68 = memref.load %arg4[%c1] : memref<4xf32, #tpu.memory_space<smem>>
    %69 = vector.broadcast %68 : f32 to vector<4x16x1xf32>
    %70 = arith.mulf %61, %69 : vector<4x16x1xf32>
    %71 = vector.broadcast %70 : vector<4x16x1xf32> to vector<4x16x8xf32>
    %72 = arith.mulf %51, %71 : vector<4x16x8xf32>
    %73 = vector.broadcast %67 : vector<4x16x1xf32> to vector<4x16x8xf32>
    %74 = arith.mulf %53, %73 : vector<4x16x8xf32>
    "tpu.trace_start"() <{level = 10 : i32, message = "bnd,bmd->bnm"}> : () -> ()
    %cst_21 = arith.constant dense<0.000000e+00> : vector<4x16x16xf32>
    %75 = tpu.matmul %72, %74, %cst_21 {dimension_numbers = #tpu.dot_dimension_numbers<[2], [2], [1], [1], [0, 0, 0, 1, 1, 1], [0], [0]>} : vector<4x16x8xf32>, vector<4x16x8xf32>, vector<4x16x16xf32> -> vector<4x16x16xf32>
    "tpu.trace_stop"() : () -> ()
    %c1_22 = arith.constant 1 : index
    %c0_23 = arith.constant 0 : index
    %c0_24 = arith.constant 0 : index
    %76 = vector.load %arg5[%c1_22, %c0_23, %c0_24] : memref<4x16x16xf32, #tpu.memory_space<vmem>>, vector<1x16x16xf32>
    %77 = vector.shape_cast %76 : vector<1x16x16xf32> to vector<16x16xf32>
    %78 = vector.shape_cast %77 : vector<16x16xf32> to vector<1x16x16xf32>
    %79 = vector.broadcast %78 : vector<1x16x16xf32> to vector<4x16x16xf32>
    %80 = arith.addf %75, %79 : vector<4x16x16xf32>
    %cst_25 = arith.constant dense<0xFF800000> : vector<4x16xf32>
    %81 = vector.multi_reduction <maximumf>, %80, %cst_25 [2] : vector<4x16x16xf32> to vector<4x16xf32>
    %82 = vector.shape_cast %81 : vector<4x16xf32> to vector<4x16x1xf32>
    %83 = vector.broadcast %82 : vector<4x16x1xf32> to vector<4x16x16xf32>
    %84 = arith.subf %80, %83 : vector<4x16x16xf32>
    %85 = math.exp %84 : vector<4x16x16xf32>
    %cst_26 = arith.constant dense<0.000000e+00> : vector<4x16xf32>
    %86 = vector.multi_reduction <add>, %85, %cst_26 [2] : vector<4x16x16xf32> to vector<4x16xf32>
    %87 = vector.shape_cast %86 : vector<4x16xf32> to vector<4x16x1xf32>
    %88 = tpu.reciprocal %87 {approx = true} : vector<4x16x1xf32> -> vector<4x16x1xf32>
    %89 = vector.broadcast %88 : vector<4x16x1xf32> to vector<4x16x16xf32>
    %90 = arith.mulf %85, %89 : vector<4x16x16xf32>
    %91 = arith.truncf %90 : vector<4x16x16xf32> to vector<4x16x16xbf16>
    %92 = arith.truncf %55 : vector<4x16x8xf32> to vector<4x16x8xbf16>
    "tpu.trace_start"() <{level = 10 : i32, message = "bnm,bmd->bnd"}> : () -> ()
    %cst_27 = arith.constant dense<0.000000e+00> : vector<4x16x8xf32>
    %93 = tpu.matmul %91, %92, %cst_27 {dimension_numbers = #tpu.dot_dimension_numbers<[2], [1], [1], [2], [0, 0, 0, 1, 1, 2], [0], [0]>} : vector<4x16x16xbf16>, vector<4x16x8xbf16>, vector<4x16x8xf32> -> vector<4x16x8xf32>
    "tpu.trace_stop"() : () -> ()
    %94 = vector.extract_strided_slice %5 {offsets = [0, 16], sizes = [64, 8], strides = [1, 1]} : vector<64x96xf32> to vector<64x8xf32>
    %95 = vector.shape_cast %94 : vector<64x8xf32> to vector<4x16x8xf32>
    %96 = vector.extract_strided_slice %5 {offsets = [0, 48], sizes = [64, 8], strides = [1, 1]} : vector<64x96xf32> to vector<64x8xf32>
    %97 = vector.shape_cast %96 : vector<64x8xf32> to vector<4x16x8xf32>
    %98 = vector.extract_strided_slice %5 {offsets = [0, 80], sizes = [64, 8], strides = [1, 1]} : vector<64x96xf32> to vector<64x8xf32>
    %99 = vector.shape_cast %98 : vector<64x8xf32> to vector<4x16x8xf32>
    %100 = arith.mulf %95, %95 : vector<4x16x8xf32>
    %cst_28 = arith.constant dense<0.000000e+00> : vector<4x16xf32>
    %101 = vector.multi_reduction <add>, %100, %cst_28 [2] : vector<4x16x8xf32> to vector<4x16xf32>
    %102 = vector.shape_cast %101 : vector<4x16xf32> to vector<4x16x1xf32>
    %cst_29 = arith.constant 1.000000e-24 : f32
    %103 = vector.broadcast %cst_29 : f32 to vector<4x16x1xf32>
    %104 = arith.maximumf %102, %103 : vector<4x16x1xf32>
    %105 = math.rsqrt %104 : vector<4x16x1xf32>
    %106 = arith.mulf %97, %97 : vector<4x16x8xf32>
    %cst_30 = arith.constant dense<0.000000e+00> : vector<4x16xf32>
    %107 = vector.multi_reduction <add>, %106, %cst_30 [2] : vector<4x16x8xf32> to vector<4x16xf32>
    %108 = vector.shape_cast %107 : vector<4x16xf32> to vector<4x16x1xf32>
    %cst_31 = arith.constant 1.000000e-24 : f32
    %109 = vector.broadcast %cst_31 : f32 to vector<4x16x1xf32>
    %110 = arith.maximumf %108, %109 : vector<4x16x1xf32>
    %111 = math.rsqrt %110 : vector<4x16x1xf32>
    %c2 = arith.constant 2 : index
    %112 = memref.load %arg4[%c2] : memref<4xf32, #tpu.memory_space<smem>>
    %113 = vector.broadcast %112 : f32 to vector<4x16x1xf32>
    %114 = arith.mulf %105, %113 : vector<4x16x1xf32>
    %115 = vector.broadcast %114 : vector<4x16x1xf32> to vector<4x16x8xf32>
    %116 = arith.mulf %95, %115 : vector<4x16x8xf32>
    %117 = vector.broadcast %111 : vector<4x16x1xf32> to vector<4x16x8xf32>
    %118 = arith.mulf %97, %117 : vector<4x16x8xf32>
    "tpu.trace_start"() <{level = 10 : i32, message = "bnd,bmd->bnm"}> : () -> ()
    %cst_32 = arith.constant dense<0.000000e+00> : vector<4x16x16xf32>
    %119 = tpu.matmul %116, %118, %cst_32 {dimension_numbers = #tpu.dot_dimension_numbers<[2], [2], [1], [1], [0, 0, 0, 1, 1, 1], [0], [0]>} : vector<4x16x8xf32>, vector<4x16x8xf32>, vector<4x16x16xf32> -> vector<4x16x16xf32>
    "tpu.trace_stop"() : () -> ()
    %c2_33 = arith.constant 2 : index
    %c0_34 = arith.constant 0 : index
    %c0_35 = arith.constant 0 : index
    %120 = vector.load %arg5[%c2_33, %c0_34, %c0_35] : memref<4x16x16xf32, #tpu.memory_space<vmem>>, vector<1x16x16xf32>
    %121 = vector.shape_cast %120 : vector<1x16x16xf32> to vector<16x16xf32>
    %122 = vector.shape_cast %121 : vector<16x16xf32> to vector<1x16x16xf32>
    %123 = vector.broadcast %122 : vector<1x16x16xf32> to vector<4x16x16xf32>
    %124 = arith.addf %119, %123 : vector<4x16x16xf32>
    %cst_36 = arith.constant dense<0xFF800000> : vector<4x16xf32>
    %125 = vector.multi_reduction <maximumf>, %124, %cst_36 [2] : vector<4x16x16xf32> to vector<4x16xf32>
    %126 = vector.shape_cast %125 : vector<4x16xf32> to vector<4x16x1xf32>
    %127 = vector.broadcast %126 : vector<4x16x1xf32> to vector<4x16x16xf32>
    %128 = arith.subf %124, %127 : vector<4x16x16xf32>
    %129 = math.exp %128 : vector<4x16x16xf32>
    %cst_37 = arith.constant dense<0.000000e+00> : vector<4x16xf32>
    %130 = vector.multi_reduction <add>, %129, %cst_37 [2] : vector<4x16x16xf32> to vector<4x16xf32>
    %131 = vector.shape_cast %130 : vector<4x16xf32> to vector<4x16x1xf32>
    %132 = tpu.reciprocal %131 {approx = true} : vector<4x16x1xf32> -> vector<4x16x1xf32>
    %133 = vector.broadcast %132 : vector<4x16x1xf32> to vector<4x16x16xf32>
    %134 = arith.mulf %129, %133 : vector<4x16x16xf32>
    %135 = arith.truncf %134 : vector<4x16x16xf32> to vector<4x16x16xbf16>
    %136 = arith.truncf %99 : vector<4x16x8xf32> to vector<4x16x8xbf16>
    "tpu.trace_start"() <{level = 10 : i32, message = "bnm,bmd->bnd"}> : () -> ()
    %cst_38 = arith.constant dense<0.000000e+00> : vector<4x16x8xf32>
    %137 = tpu.matmul %135, %136, %cst_38 {dimension_numbers = #tpu.dot_dimension_numbers<[2], [1], [1], [2], [0, 0, 0, 1, 1, 2], [0], [0]>} : vector<4x16x16xbf16>, vector<4x16x8xbf16>, vector<4x16x8xf32> -> vector<4x16x8xf32>
    "tpu.trace_stop"() : () -> ()
    %138 = vector.extract_strided_slice %5 {offsets = [0, 24], sizes = [64, 8], strides = [1, 1]} : vector<64x96xf32> to vector<64x8xf32>
    %139 = vector.shape_cast %138 : vector<64x8xf32> to vector<4x16x8xf32>
    %140 = vector.extract_strided_slice %5 {offsets = [0, 56], sizes = [64, 8], strides = [1, 1]} : vector<64x96xf32> to vector<64x8xf32>
    %141 = vector.shape_cast %140 : vector<64x8xf32> to vector<4x16x8xf32>
    %142 = vector.extract_strided_slice %5 {offsets = [0, 88], sizes = [64, 8], strides = [1, 1]} : vector<64x96xf32> to vector<64x8xf32>
    %143 = vector.shape_cast %142 : vector<64x8xf32> to vector<4x16x8xf32>
    %144 = arith.mulf %139, %139 : vector<4x16x8xf32>
    %cst_39 = arith.constant dense<0.000000e+00> : vector<4x16xf32>
    %145 = vector.multi_reduction <add>, %144, %cst_39 [2] : vector<4x16x8xf32> to vector<4x16xf32>
    %146 = vector.shape_cast %145 : vector<4x16xf32> to vector<4x16x1xf32>
    %cst_40 = arith.constant 1.000000e-24 : f32
    %147 = vector.broadcast %cst_40 : f32 to vector<4x16x1xf32>
    %148 = arith.maximumf %146, %147 : vector<4x16x1xf32>
    %149 = math.rsqrt %148 : vector<4x16x1xf32>
    %150 = arith.mulf %141, %141 : vector<4x16x8xf32>
    %cst_41 = arith.constant dense<0.000000e+00> : vector<4x16xf32>
    %151 = vector.multi_reduction <add>, %150, %cst_41 [2] : vector<4x16x8xf32> to vector<4x16xf32>
    %152 = vector.shape_cast %151 : vector<4x16xf32> to vector<4x16x1xf32>
    %cst_42 = arith.constant 1.000000e-24 : f32
    %153 = vector.broadcast %cst_42 : f32 to vector<4x16x1xf32>
    %154 = arith.maximumf %152, %153 : vector<4x16x1xf32>
    %155 = math.rsqrt %154 : vector<4x16x1xf32>
    %c3 = arith.constant 3 : index
    %156 = memref.load %arg4[%c3] : memref<4xf32, #tpu.memory_space<smem>>
    %157 = vector.broadcast %156 : f32 to vector<4x16x1xf32>
    %158 = arith.mulf %149, %157 : vector<4x16x1xf32>
    %159 = vector.broadcast %158 : vector<4x16x1xf32> to vector<4x16x8xf32>
    %160 = arith.mulf %139, %159 : vector<4x16x8xf32>
    %161 = vector.broadcast %155 : vector<4x16x1xf32> to vector<4x16x8xf32>
    %162 = arith.mulf %141, %161 : vector<4x16x8xf32>
    "tpu.trace_start"() <{level = 10 : i32, message = "bnd,bmd->bnm"}> : () -> ()
    %cst_43 = arith.constant dense<0.000000e+00> : vector<4x16x16xf32>
    %163 = tpu.matmul %160, %162, %cst_43 {dimension_numbers = #tpu.dot_dimension_numbers<[2], [2], [1], [1], [0, 0, 0, 1, 1, 1], [0], [0]>} : vector<4x16x8xf32>, vector<4x16x8xf32>, vector<4x16x16xf32> -> vector<4x16x16xf32>
    "tpu.trace_stop"() : () -> ()
    %c3_44 = arith.constant 3 : index
    %c0_45 = arith.constant 0 : index
    %c0_46 = arith.constant 0 : index
    %164 = vector.load %arg5[%c3_44, %c0_45, %c0_46] : memref<4x16x16xf32, #tpu.memory_space<vmem>>, vector<1x16x16xf32>
    %165 = vector.shape_cast %164 : vector<1x16x16xf32> to vector<16x16xf32>
    %166 = vector.shape_cast %165 : vector<16x16xf32> to vector<1x16x16xf32>
    %167 = vector.broadcast %166 : vector<1x16x16xf32> to vector<4x16x16xf32>
    %168 = arith.addf %163, %167 : vector<4x16x16xf32>
    %cst_47 = arith.constant dense<0xFF800000> : vector<4x16xf32>
    %169 = vector.multi_reduction <maximumf>, %168, %cst_47 [2] : vector<4x16x16xf32> to vector<4x16xf32>
    %170 = vector.shape_cast %169 : vector<4x16xf32> to vector<4x16x1xf32>
    %171 = vector.broadcast %170 : vector<4x16x1xf32> to vector<4x16x16xf32>
    %172 = arith.subf %168, %171 : vector<4x16x16xf32>
    %173 = math.exp %172 : vector<4x16x16xf32>
    %cst_48 = arith.constant dense<0.000000e+00> : vector<4x16xf32>
    %174 = vector.multi_reduction <add>, %173, %cst_48 [2] : vector<4x16x16xf32> to vector<4x16xf32>
    %175 = vector.shape_cast %174 : vector<4x16xf32> to vector<4x16x1xf32>
    %176 = tpu.reciprocal %175 {approx = true} : vector<4x16x1xf32> -> vector<4x16x1xf32>
    %177 = vector.broadcast %176 : vector<4x16x1xf32> to vector<4x16x16xf32>
    %178 = arith.mulf %173, %177 : vector<4x16x16xf32>
    %179 = arith.truncf %178 : vector<4x16x16xf32> to vector<4x16x16xbf16>
    %180 = arith.truncf %143 : vector<4x16x8xf32> to vector<4x16x8xbf16>
    "tpu.trace_start"() <{level = 10 : i32, message = "bnm,bmd->bnd"}> : () -> ()
    %cst_49 = arith.constant dense<0.000000e+00> : vector<4x16x8xf32>
    %181 = tpu.matmul %179, %180, %cst_49 {dimension_numbers = #tpu.dot_dimension_numbers<[2], [1], [1], [2], [0, 0, 0, 1, 1, 2], [0], [0]>} : vector<4x16x16xbf16>, vector<4x16x8xbf16>, vector<4x16x8xf32> -> vector<4x16x8xf32>
    "tpu.trace_stop"() : () -> ()
    %182 = tpu.concatenate %49, %93, %137, %181 in 2 : vector<4x16x8xf32>, vector<4x16x8xf32>, vector<4x16x8xf32>, vector<4x16x8xf32> -> vector<4x16x32xf32>
    %183 = vector.shape_cast %182 : vector<4x16x32xf32> to vector<64x32xf32>
    %184 = arith.truncf %183 : vector<64x32xf32> to vector<64x32xbf16>
    %c0_50 = arith.constant 0 : index
    %c0_51 = arith.constant 0 : index
    %185 = vector.load %arg6[%c0_50, %c0_51] : memref<32x32xbf16, #tpu.memory_space<vmem>>, vector<32x32xbf16>
    %cst_52 = arith.constant dense<0.000000e+00> : vector<64x32xf32>
    %186 = tpu.matmul %184, %185, %cst_52 {dimension_numbers = #tpu.dot_dimension_numbers<[1], [0], [0], [1], [0, 0, 1, 1], [], []>} : vector<64x32xbf16>, vector<32x32xbf16>, vector<64x32xf32> -> vector<64x32xf32>
    %c0_53 = arith.constant 0 : index
    %c0_54 = arith.constant 0 : index
    %187 = vector.load %arg7[%c0_53, %c0_54] : memref<1x32xf32, #tpu.memory_space<vmem>>, vector<1x32xf32>
    %188 = vector.broadcast %187 : vector<1x32xf32> to vector<64x32xf32>
    %189 = arith.addf %186, %188 : vector<64x32xf32>
    %c0_55 = arith.constant 0 : index
    %c0_56 = arith.constant 0 : index
    %190 = vector.load %arg8[%c0_55, %c0_56] : memref<64x32xf32, #tpu.memory_space<vmem>>, vector<64x32xf32>
    tpu.vector_store %arg8[%c0_55, %c0_56], %189 {strides = array<i32>} : memref<64x32xf32, #tpu.memory_space<vmem>>, vector<64x32xf32>,
    return
  }
  func.func @transform_0(%arg0: i32) -> (i32, i32) {
    %c0_i32 = arith.constant 0 : i32
    %c0_i32_0 = arith.constant 0 : i32
    return %arg0, %c0_i32 : i32, i32
  }
  func.func @transform_1(%arg0: i32) -> (i32, i32) {
    %c0_i32 = arith.constant 0 : i32
    %c0_i32_0 = arith.constant 0 : i32
    %c0_i32_1 = arith.constant 0 : i32
    return %c0_i32, %c0_i32_0 : i32, i32
  }
  func.func @transform_2(%arg0: i32) -> (i32, i32) {
    %c0_i32 = arith.constant 0 : i32
    %c0_i32_0 = arith.constant 0 : i32
    %c0_i32_1 = arith.constant 0 : i32
    return %c0_i32, %c0_i32_0 : i32, i32
  }
  func.func @transform_3(%arg0: i32) -> i32 {
    %c0_i32 = arith.constant 0 : i32
    %c0_i32_0 = arith.constant 0 : i32
    return %c0_i32 : i32
  }
  func.func @transform_4(%arg0: i32) -> (i32, i32, i32) {
    %c0_i32 = arith.constant 0 : i32
    %c0_i32_0 = arith.constant 0 : i32
    %c0_i32_1 = arith.constant 0 : i32
    %c0_i32_2 = arith.constant 0 : i32
    return %c0_i32, %c0_i32_0, %c0_i32_1 : i32, i32, i32
  }
  func.func @transform_5(%arg0: i32) -> (i32, i32) {
    %c0_i32 = arith.constant 0 : i32
    %c0_i32_0 = arith.constant 0 : i32
    %c0_i32_1 = arith.constant 0 : i32
    return %c0_i32, %c0_i32_0 : i32, i32
  }
  func.func @transform_6(%arg0: i32) -> (i32, i32) {
    %c0_i32 = arith.constant 0 : i32
    %c0_i32_0 = arith.constant 0 : i32
    %c0_i32_1 = arith.constant 0 : i32
    return %c0_i32, %c0_i32_0 : i32, i32
  }
  func.func @transform_7(%arg0: i32) -> (i32, i32) {
    %c0_i32 = arith.constant 0 : i32
    %c0_i32_0 = arith.constant 0 : i32
    return %arg0, %c0_i32 : i32, i32
  }
}

</mosaic_0001>

<bundles_post_ra>
// kernel: tpu_custom_call.1
= control target key start
LH: loop header
LB: loop body
LE: loop exit
PB: predicated region body
PF: predicated region fallthrough
CT: control target
= control target key end

     0   :  { %12 = vsyncpa [#allocation4], 0  ;;  %s6200_s0 = inlined_call_operand.vmem [shape: bf16[128,32], index: 0, kind: input, shape index: {}]   ;;  %s6201_s1 = inlined_call_operand.vmem [shape: bf16[32,96], index: 1, kind: input, shape index: {}]   ;;  %s6202_s2 = inlined_call_operand.vmem [shape: f32[1,96], index: 2, kind: input, shape index: {}]   ;;  %s6203_s3 = inlined_call_operand.vmem [shape: f32[4], index: 3, kind: input, shape index: {}]   ;;  %s6204_s4 = inlined_call_operand.vmem [shape: f32[4,16,16], index: 4, kind: input, shape index: {}]   ;;  %s6205_s5 = inlined_call_operand.hbm [shape: bf16[32,32], index: 5, kind: input, shape index: {}]   ;;  %s6206_s6 = inlined_call_operand.vmem [shape: f32[1,32], index: 6, kind: input, shape index: {}]   ;;  %s6207_s7 = inlined_call_operand.vmem [shape: f32[128,32], index: 7, kind: output, shape index: {}]  }
   0x1   :  { %13 = vsyncpa [#allocation3], 0  ;;  %s4961_s24 = smov 0  }
   0x2 LB: > { %s4007_s25 = sadd.s32 4294967295, %s4899_s24   ;;  %p4009_p0 = scmp.ge.s32.totalorder %s4899_s24, 1  ;;  %s4899_s24 = sphi %s4961_s24, %s19_s24  }
   0x3   : > { %p202_p1 = scmp.lt.s32.totalorder %s4899_s24, 3  ;;  %p4971_p2 = scmp.eq.s32.totalorder %s4007_s25, 0 }
   0x4   : > { %s221_s29 = sshll.u32 %s6203_s3, 4  ;;  %s4901_s8 = smov [#allocation5]   ;;  %s222_s29 = int_to_ptr.vmem [resolvable:$true] %s221_s29 }
   0x5   : > { %s6213_s26 = scalar_select %p4971_p2, 1, 0 }
   0x6   : > { %p4978_p3 = pnand %p4009_p0, %p202_p1  ;;  %s234_s9 = sshll.u32 %s4901_s8, 4  ;;  %s235_s9 = int_to_ptr.vmem [resolvable:$true] %s234_s9 }
   0x7   : > { %s4844_s11 = scalar_lea.vmem %s222_s29, 16  ;;  %p4852_p10 = scmp.lt.s32.totalorder %s222_s29, %s222_s29 }
   0x8   : > { %s6214_s30 = scalar_select %p4978_p3, 1, 0 }
   0x9   : > { %p4481_p4 = pneg %p4978_p3  ;;  %p4845_p6 = scmp.ne.s32.totalorder %s222_s29, %s4844_s11 }
   0xa   : > { %p4853_p11 = scmp.lt.s32.totalorder %s4844_s11, %s4844_s11 }
   0xb   : > { %p4986_p5 = pnand %p4971_p2, %p4481_p4 }
   0xc   : > { %p4854_p12 = por %p4853_p11, %p4852_p10 }
   0xd   : > { %p4846_p7 = pneg %p4986_p5 }
   0xf   : > { %p4847_p8 = pnand %p4846_p7, %p4845_p6 }
  0x11   : > { %p4848_p9 = pneg %p4847_p8 }
  0x13   : > { %p4855_p13 = pnand %p4854_p12, %p4848_p9 }
  0x15   : > { %4858 = shalt.err (!%p4855_p13)
}
  0x16   : > { %s4902_s12 = smov [#allocation2]   ;;  %s4870_s13 = scalar_lea.vmem %s235_s9, 256 }
  0x17   : > { %4484 = dma.vmem_to_smem (!%p4986_p5), %s222_s29, 16, %s4902_s12, [#allocation4]  }
  0x18   : > { %p4871_p0 = scmp.ne.s32.totalorder %s235_s9, %s4870_s13  ;;  %p4878_p2 = scmp.lt.s32.totalorder %s235_s9, %s235_s9 }
  0x19   : > { %p4879_p3 = scmp.lt.s32.totalorder %s4870_s13, %s4870_s13 }
  0x1a   : > { %p4873_p1 = pnand %p4871_p0, %p4846_p7 }
  0x1b   : > { %p4880_p6 = por %p4879_p3, %p4878_p2 }
  0x1c   : > { %p4874_p4 = pneg %p4873_p1 }
  0x1e   : > { %p4881_p8 = pnand %p4880_p6, %p4874_p4 }
  0x20   : > { %4884 = shalt.err (!%p4881_p8)
}
  0x21   : > { %s4903_s14 = smov 64   ;;  %s4904_s15 = smov 4  }
  0x22   : > { %4487 = dma.hbm_to_vmem [thread:$0]  (!%p4986_p5), %s6205_s5, 256, %s235_s9, [#allocation3], %s4903_s14, %s4903_s14, %s4904_s15  }
  0x23   : > { %p6216_p9 = scmp.ne.s32.totalorder %s6214_s30, 0 }
  0x25   : > { %262 = sbr.rel (%p6216_p9) target bundleno = 3571 (0xdf3), region = 48 }
  0x2a   : > { %p6217_p10 = scmp.ne.s32.totalorder %s6213_s26, 0 }
  0x2c   : > { %4890 = dma.done.wait (%p6217_p10), [#allocation4], 16  }
  0x2d   : > { %4892 = vsyncadd (%p6217_p10), [#allocation4], 4294967280 }
  0x2e   : > { %4894 = dma.done.wait (%p6217_p10), [#allocation3], 256  }
  0x2f   : > { %4896 = vsyncadd (%p6217_p10), [#allocation3], 4294967040 }
  0x30   : > { %272 = sfence }
  0x31   : > { %v4580_v0 = vld [vmem:[%s6201_s1 + $0x8] sm:$0xff]   ;;  %s4016_s20 = sshll.u32 %s4007_s25, 3  ;;  %v4581_v1 = vld [vmem:[%s6201_s1] sm:$0xff]   ;;  %vm363_vm0 = vcmask 261120   ;;  %s4905_s30 = smov 96   ;;  %vm449_vm1 = vcmask 64512  }
  0x32   : > { %p300_p2 = scmp.lt.s32.totalorder %s4016_s20, 15  ;;  %4237 = vmatprep.subr.bf16.mxu0 %v4580_v0  ;;  %4469 = vmatprep.subr.bf16.mxu1 %v4580_v0  ;;  %v4020_v9 = vld [vmem:[%s6202_s2] ss:$0 sm:$0xff]  ;;  %s562_s8 = sld [smem:[#allocation2]]  ;;  %vm954_vm2 = vcmask 130048   ;;  %vm4910_vm3 = vmmov 0  }
  0x33   : > { %4238 = vmatpush3.bf16.msra.mxu0 %v4580_v0  ;;  %4471 = vmatpush3.bf16.msra.mxu1 %v4580_v0  ;;  %s4906_s9 = smov 88   ;;  %s4907_s10 = smov 120   ;;  %vm3806_vm4 = vcmask 195584  }
  0x34   : > { %s6232_s20 = smov (!%p300_p2, %s4016_s20), 15  ;;  %4239 = vmatprep.subr.bf16.mxu0 %v4581_v1  ;;  %4470 = vmatprep.subr.bf16.mxu1 %v4581_v1  ;;  %s4909_s11 = smov 64  }
  0x35   : > { %s4017_s23 = sshll.u32 %s6232_s20, 2  ;;  %s4051_s16 = sld [smem:[#allocation2 + $0x1]] }
  0x36   : > { %s303_s28 = scalar_lea.vmem %s6200_s0, %s4017_s23  ;;  %s4911_s17 = smov 80  }
  0x37   : > { %4240 = vmatpush3.bf16.msra.mxu0 %v4581_v1  ;;  %4472 = vmatpush3.bf16.msra.mxu1 %v4581_v1  ;;  %v4582_v2 = vld [vmem:[%s303_s28] sm:$0xff]   ;;  %v4583_v3 = vld [vmem:[%s303_s28 + $0x8] sm:$0xff]   ;;  %v4584_v4 = vld [vmem:[%s303_s28 + $0x10] sm:$0xff]   ;;  %s4912_s18 = smov 112   ;;  %s4913_s19 = smov 56  }
  0x38   : > { %4241 = vmatprep.mubr.msk.bf16.mxu0 %vm363_vm0, %v4582_v2  ;;  %v4585_v5 = vld [vmem:[%s303_s28 + $0x18] sm:$0xff]   ;;  %4245 = vmatprep.mubr.msk.bf16.mxu1 %vm363_vm0, %v4584_v4  ;;  %s4074_s27 = sld [smem:[#allocation2 + $0x2]]  ;;  %s4914_s28 = smov 72  }
  0x39   : > { %s4915_s25 = smov 104   ;;  %s4916_s29 = smov 48  }
  0x3a   : > { %4242 = vmatmul.mubr.msk.bf16.vlgmr.msra.gmra.mxu0 %vm363_vm0, %v4583_v3  ;;  %4246 = vmatmul.mubr.msk.bf16.vlgmr.msra.gmra.mxu1 %vm363_vm0, %v4585_v5  ;;  %s4019_s21 = sshll.u32 %s6232_s20, 3 }
  0xfa   : > { %v4243_v6 = vpop.f32.mrf.mxu0  ;;  %v4247_v8 = vpop.f32.mrf.mxu1 }
  0xfb   : > { %v5032_v15 = vadd.f32 %v4243_v6, %v4020_v9  ;;  %v5064_v25 = vadd.f32 %v4247_v8, %v4020_v9 }
  0xfc   : > { %v410_v7 = vpop.f32.mrf.mxu0  ;;  %v426_v11 = vpop.f32.mrf.mxu1 }
  0xfd   : > { %v5040_v18 = vadd.f32 %v4020_v9, %v410_v7  ;;  %v5054_v22 = vmul.f32 %v5032_v15, %v5032_v15  ;;  %v5072_v27 = vadd.f32 %v4020_v9, %v426_v11  ;;  %v5084_v29 = vmul.f32 %v5064_v25, %v5064_v25 }
  0xfe   : > { %v4244_v10 = vpop.f32.mrf.mxu0  ;;  %v4248_v14 = vpop.f32.mrf.mxu1 }
  0xff   : > { %v5030_v12 = vadd.f32 %v4244_v10, %v4020_v9  ;;  %v5048_v21 = vadd.f32 %v4248_v14, %v4020_v9  ;;  %v5062_v24 = vmul.f32 %v5040_v18, %v5040_v18  ;;  %v5090_v30 = vmul.f32 %v5072_v27, %v5072_v27 }
 0x100   : > { %v413_v13 = vpop.f32.mrf.mxu0  ;;  %v429_v20 = vpop.f32.mrf.mxu1  ;;  %v456_v49 = vsel %vm449_vm1, %v5054_v22, 0.0  ;;  %v468_v53 = vsel %vm449_vm1, %v5084_v29, 0.0 }
 0x101   : > { %v5034_v16 = vadd.f32 %v4020_v9, %v413_v13  ;;  %v5038_v17 = vmul.f32 %v5030_v12, %v5030_v12  ;;  %v5056_v23 = vadd.f32 %v4020_v9, %v429_v20  ;;  %v5070_v26 = vmul.f32 %v5048_v21, %v5048_v21 }
 0x102   : > { %v450_v47 = vsel %vm449_vm1, %v5062_v24, 0.0  ;;  %v462_v51 = vsel %vm449_vm1, %v5090_v30, 0.0 }
 0x103   : > { %504 = vrot.lane.b32.xlu1 %v5038_v17, %s4905_s30  ;;  %v5046_v19 = vmul.f32 %v5034_v16, %v5034_v16  ;;  %v5078_v28 = vmul.f32 %v5056_v23, %v5056_v23  ;;  %v459_v50 = vsel %vm449_vm1, %v5038_v17, 0.0  ;;  %v471_v54 = vsel %vm449_vm1, %v5070_v26, 0.0 }
 0x105   : > { %500 = vrot.lane.b32.xlu0 %v5046_v19, %s4905_s30  ;;  %v453_v48 = vsel %vm449_vm1, %v5046_v19, 0.0  ;;  %v465_v52 = vsel %vm449_vm1, %v5078_v28, 0.0 }
 0x107   : > { %502 = vrot.lane.b32.xlu1 %v5054_v22, %s4905_s30 }
 0x109   : > { %498 = vrot.lane.b32.xlu0 %v5062_v24, %s4905_s30 }
 0x10b   : > { %512 = vrot.lane.b32.xlu1 %v5070_v26, %s4905_s30 }
 0x10d   : > { %508 = vrot.lane.b32.xlu0 %v5078_v28, %s4905_s30 }
 0x10f   : > { %510 = vrot.lane.b32.xlu1 %v5084_v29, %s4905_s30 }
 0x111   : > { %506 = vrot.lane.b32.xlu0 %v5090_v30, %s4905_s30 }
 0x175   : > { %v505_v31 = vpop.permute.xlu1 %504 }
 0x176   : > { %v531_v36 = vsel %vm449_vm1, %v505_v31, 0.0 }
 0x177   : > { %v501_v32 = vpop.permute.xlu0 %500 }
 0x178   : > { %v525_v33 = vsel %vm449_vm1, %v501_v32, 0.0 }
 0x179   : > { %v503_v34 = vpop.permute.xlu1 %502  ;;  %526 = vadd.xlane.f32.xlu0 %v525_v33 }
 0x17a   : > { %v528_v40 = vsel %vm449_vm1, %v503_v34, 0.0 }
 0x17b   : > { %v499_v35 = vpop.permute.xlu0 %498 }
 0x17c   : > { %v522_v37 = vsel %vm449_vm1, %v499_v35, 0.0 }
 0x17d   : > { %532 = vadd.xlane.f32.xlu0 %v531_v36  ;;  %523 = vadd.xlane.f32.xlu1 %v522_v37  ;;  %v513_v38 = vpop.permute.xlu1 %512 }
 0x17e   : > { %v543_v43 = vsel %vm449_vm1, %v513_v38, 0.0 }
 0x17f   : > { %v509_v39 = vpop.permute.xlu0 %508 }
 0x180   : > { %v537_v41 = vsel %vm449_vm1, %v509_v39, 0.0 }
 0x181   : > { %529 = vadd.xlane.f32.xlu0 %v528_v40  ;;  %538 = vadd.xlane.f32.xlu1 %v537_v41  ;;  %v511_v45 = vpop.permute.xlu1 %510 }
 0x182   : > { %v540_v46 = vsel %vm449_vm1, %v511_v45, 0.0 }
 0x183   : > { %v507_v42 = vpop.permute.xlu0 %506 }
 0x184   : > { %v534_v44 = vsel %vm449_vm1, %v507_v42, 0.0  ;;  %v5131_v42 = vstv %s562_s8 }
 0x185   : > { %544 = vadd.xlane.f32.xlu0 %v543_v43  ;;  %535 = vadd.xlane.f32.xlu1 %v534_v44 }
 0x189   : > { %541 = vadd.xlane.f32.xlu0 %v540_v46  ;;  %451 = vadd.xlane.f32.xlu1 %v450_v47 }
 0x18d   : > { %454 = vadd.xlane.f32.xlu0 %v453_v48  ;;  %457 = vadd.xlane.f32.xlu1 %v456_v49 }
 0x191   : > { %460 = vadd.xlane.f32.xlu0 %v459_v50  ;;  %463 = vadd.xlane.f32.xlu1 %v462_v51 }
 0x195   : > { %466 = vadd.xlane.f32.xlu0 %v465_v52  ;;  %469 = vadd.xlane.f32.xlu1 %v468_v53 }
 0x199   : > { %472 = vadd.xlane.f32.xlu0 %v471_v54 }
 0x202   : > { %v527_v55 = vpop.xlane.xlu0 %526 }
 0x203   : > { %v547_v56 = vmax.f32 %v527_v55, 1e-24 }
 0x205   : > { %4588 = vrsqrt.f32 %v547_v56 }
 0x206   : > { %v524_v57 = vpop.xlane.xlu1 %523  ;;  %v533_v58 = vpop.xlane.xlu0 %532 }
 0x207   : > { %v546_v59 = vmax.f32 %v524_v57, 1e-24  ;;  %v549_v60 = vmax.f32 %v533_v58, 1e-24 }
 0x209   : > { %4590 = vrsqrt.f32 %v546_v59 }
 0x20a   : > { %4592 = vrsqrt.f32 %v549_v60  ;;  %v539_v61 = vpop.xlane.xlu1 %538  ;;  %v530_v62 = vpop.xlane.xlu0 %529 }
 0x20b   : > { %v551_v63 = vmax.f32 %v539_v61, 1e-24  ;;  %v548_v0 = vmax.f32 %v530_v62, 1e-24 }
 0x20d   : > { %4594 = vrsqrt.f32 %v551_v63 }
 0x20e   : > { %4596 = vrsqrt.f32 %v548_v0  ;;  %v536_v1 = vpop.xlane.xlu1 %535  ;;  %v545_v2 = vpop.xlane.xlu0 %544 }
 0x20f   : > { %v550_v3 = vmax.f32 %v536_v1, 1e-24  ;;  %v553_v4 = vmax.f32 %v545_v2, 1e-24 }
 0x211   : > { %4598 = vrsqrt.f32 %v550_v3 }
 0x212   : > { %v4589_v5 = vpop.eup %4588  ;;  %4600 = vrsqrt.f32 %v553_v4  ;;  %v542_v6 = vpop.xlane.xlu0 %541 }
 0x213   : > { %v452_v7 = vpop.xlane.xlu1 %451  ;;  %v552_v8 = vmax.f32 %v542_v6, 1e-24  ;;  %v581_v10 = vmul.f32 %v4589_v5, %v5034_v16 }
 0x214   : > { %v474_v9 = vmax.f32 %v452_v7, 1e-24 }
 0x215   : > { %4602 = vrsqrt.f32 %v552_v8  ;;  %594 = vrot.lane.b32.xlu1 %v581_v10, %s4905_s30 }
 0x216   : > { %v4591_v11 = vpop.eup %4590  ;;  %4604 = vrsqrt.f32 %v474_v9  ;;  %v455_v51 = vpop.xlane.xlu0 %454 }
 0x217   : > { %v458_v13 = vpop.xlane.xlu1 %457  ;;  %v4593_v14 = vpop.eup %4592  ;;  %v580_v20 = vmul.f32 %v4591_v11, %v5040_v18  ;;  %v475_v52 = vmax.f32 %v455_v51, 1e-24 }
 0x218   : > { %v583_v31 = vmul.f32 %v4593_v14, %v5030_v12  ;;  %v476_v54 = vmax.f32 %v458_v13, 1e-24 }
 0x219   : > { %592 = vrot.lane.b32.xlu0 %v580_v20, %s4905_s30 }
 0x21a   : > { %v4595_v32 = vpop.eup %4594  ;;  %685 = vrot.lane.b32.xlu1 %v583_v31, %s4905_s30  ;;  %v461_v53 = vpop.xlane.xlu0 %460 }
 0x21b   : > { %v464_v33 = vpop.xlane.xlu1 %463  ;;  %v4597_v34 = vpop.eup %4596  ;;  %v585_v36 = vmul.f32 %v4595_v32, %v5056_v23  ;;  %v477_v57 = vmax.f32 %v461_v53, 1e-24 }
 0x21c   : > { %v478_v35 = vmax.f32 %v464_v33, 1e-24  ;;  %v582_v37 = vmul.f32 %v4597_v34, %v5032_v15 }
 0x21d   : > { %776 = vrot.lane.b32.xlu0 %v585_v36, %s4905_s30 }
 0x21e   : > { %v4599_v38 = vpop.eup %4598  ;;  %4606 = vrsqrt.f32 %v478_v35  ;;  %683 = vrot.lane.b32.xlu1 %v582_v37, %s4905_s30  ;;  %v467_v55 = vpop.xlane.xlu0 %466 }
 0x21f   : > { %v4601_v39 = vpop.eup %4600  ;;  %v584_v40 = vmul.f32 %v4599_v38, %v5072_v27  ;;  %4608 = vrsqrt.f32 %v475_v52  ;;  %v470_v56 = vpop.xlane.xlu1 %469  ;;  %v479_v58 = vmax.f32 %v467_v55, 1e-24 }
 0x220   : > { %v587_v41 = vmul.f32 %v4601_v39, %v5048_v21  ;;  %4610 = vrsqrt.f32 %v476_v54  ;;  %v480_v59 = vmax.f32 %v470_v56, 1e-24 }
 0x221   : > { %774 = vrot.lane.b32.xlu0 %v584_v40, %s4905_s30  ;;  %4612 = vrsqrt.f32 %v477_v57 }
 0x222   : > { %v4603_v43 = vpop.eup %4602  ;;  %867 = vrot.lane.b32.xlu1 %v587_v41, %s4905_s30  ;;  %4614 = vrsqrt.f32 %v479_v58  ;;  %v473_v60 = vpop.xlane.xlu0 %472 }
 0x223   : > { %v4605_v44 = vpop.eup %4604  ;;  %v586_v45 = vmul.f32 %v4603_v43, %v5064_v25  ;;  %4616 = vrsqrt.f32 %v480_v59  ;;  %v481_v62 = vmax.f32 %v473_v60, 1e-24 }
 0x224   : > { %v564_v46 = vmul.f32 %v4605_v44, %v5131_v42 }
 0x225   : > { %1309 = vrot.lane.b32.xlu0 %v5046_v19, %s4906_s9  ;;  %4618 = vrsqrt.f32 %v481_v62 }
 0x226   : > { %865 = vrot.lane.b32.xlu1 %v586_v45, %s4905_s30  ;;  %v572_v47 = vmul.f32 %v564_v46, %v5040_v18  ;;  %s4097_s30 = sld [smem:[#allocation2 + $0x3]] }
 0x228   : > { %4253 = vmatprep.mubr.msk.f32.mxu1 %vm449_vm1, %v572_v47 }
 0x229   : > { %1307 = vrot.lane.b32.xlu0 %v5062_v24, %s4906_s9 }
 0x22a   : > { %1313 = vrot.lane.b32.xlu1 %v5038_v17, %s4906_s9 }
 0x22b   : > { %v4607_v48 = vpop.eup %4606 }
 0x22c   : > { %v568_v49 = vmul.f32 %v4607_v48, %v5131_v42  ;;  %v4609_v61 = vpop.eup %4608 }
 0x22d   : > { %1311 = vrot.lane.b32.xlu0 %v5054_v22, %s4906_s9  ;;  %v4611_v0 = vpop.eup %4610  ;;  %v565_v1 = vmul.f32 %v4609_v61, %v5131_v42 }
 0x22e   : > { %1243 = vrot.lane.b32.xlu1 %v5062_v24, %s4907_s10  ;;  %v576_v50 = vmul.f32 %v568_v49, %v5072_v27  ;;  %v566_v3 = vmul.f32 %v4611_v0, %v5131_v42  ;;  %v4613_v6 = vpop.eup %4612 }
 0x22f   : > { %v573_v5 = vmul.f32 %v565_v1, %v5034_v16  ;;  %v4615_v9 = vpop.eup %4614  ;;  %v567_v13 = vmul.f32 %v4613_v6, %v5131_v42 }
 0x230   : > { %4267 = vmatprep.mubr.msk.f32.mxu0 %vm449_vm1, %v576_v50  ;;  %v574_v8 = vmul.f32 %v566_v3, %v5032_v15  ;;  %v4617_v11 = vpop.eup %4616  ;;  %v569_v20 = vmul.f32 %v4615_v9, %v5131_v42  ;;  %v5228_v9 = vpack.c.bf16 %v5034_v16, %v5040_v18 }
 0x231   : > { %1247 = vrot.lane.b32.xlu0 %v5054_v22, %s4907_s10  ;;  %v570_v32 = vmul.f32 %v4617_v11, %v5131_v42  ;;  %v575_v33 = vmul.f32 %v567_v13, %v5030_v12  ;;  %v5238_v11 = vpack.c.bf16 %v5048_v21, %v5064_v25  ;;  %v5243_v13 = vpack.c.bf16 %v5030_v12, %v5032_v15 }
 0x232   : > { %1245 = vrot.lane.b32.xlu1 %v5046_v19, %s4907_s10  ;;  %v577_v35 = vmul.f32 %v569_v20, %v5056_v23  ;;  %v4619_v36 = vpop.eup %4618 }
 0x233   : > { %v578_v39 = vmul.f32 %v570_v32, %v5064_v25  ;;  %v571_v41 = vmul.f32 %v4619_v36, %v5131_v42 }
 0x235   : > { %1317 = vrot.lane.b32.xlu0 %v5078_v28, %s4906_s9  ;;  %v579_v47 = vmul.f32 %v571_v41, %v5048_v21 }
 0x236   : > { %1249 = vrot.lane.b32.xlu1 %v5038_v17, %s4907_s10 }
 0x239   : > { %1315 = vrot.lane.b32.xlu0 %v5090_v30, %s4906_s9 }
 0x23a   : > { %1321 = vrot.lane.b32.xlu1 %v5070_v26, %s4906_s9 }
 0x23d   : > { %1319 = vrot.lane.b32.xlu0 %v5084_v29, %s4906_s9 }
 0x23e   : > { %1251 = vrot.lane.b32.xlu1 %v5090_v30, %s4907_s10 }
 0x241   : > { %1255 = vrot.lane.b32.xlu0 %v5084_v29, %s4907_s10 }
 0x242   : > { %1253 = vrot.lane.b32.xlu1 %v5078_v28, %s4907_s10 }
 0x246   : > { %1257 = vrot.lane.b32.xlu1 %v5070_v26, %s4907_s10 }
 0x287   : > { %v595_v63 = vpop.permute.xlu1 %594 }
 0x288   : > { %4249 = vmatprep.subr.msk.mxu1 %vm449_vm1, %v595_v63 }
 0x289   : > { %4250 = vmatpush3.xpose.msk.msra.mxu1 %vm449_vm1, %v595_v63 }
 0x28b   : > { %v593_v2 = vpop.permute.xlu0 %592 }
 0x28c   : > { %v686_v4 = vpop.permute.xlu1 %685  ;;  %4251 = vmatprep.subr.msk.mxu1 %vm449_vm1, %v593_v2 }
 0x28d   : > { %4252 = vmatpush3.xpose.msk.msra.mxu1 %vm449_vm1, %v593_v2 }
 0x28e   : > { %4256 = vmatprep.subr.msk.mxu1 %vm449_vm1, %v686_v4 }
 0x28f   : > { %v777_v7 = vpop.permute.xlu0 %776 }
 0x290   : > { %v684_v10 = vpop.permute.xlu1 %683  ;;  %4254 = vmatmul.mubr.msk.f32.vlgmr.msra.gmra.mxu1 %vm449_vm1, %v573_v5  ;;  %4263 = vmatprep.subr.msk.mxu0 %vm449_vm1, %v777_v7 }
 0x291   : > { %4257 = vmatpush3.xpose.msk.msra.mxu1 %vm449_vm1, %v686_v4  ;;  %4260 = vmatprep.mubr.msk.f32.mxu1 %vm449_vm1, %v574_v8  ;;  %v6211_v8 = vmov 0.0  }
 0x292   : > { %4264 = vmatpush3.xpose.msk.msra.mxu0 %vm449_vm1, %v777_v7  ;;  %4258 = vmatprep.subr.msk.mxu1 %vm449_vm1, %v684_v10 }
 0x293   : > { %v775_v14 = vpop.permute.xlu0 %774 }
 0x294   : > { %v868_v31 = vpop.permute.xlu1 %867  ;;  %4265 = vmatprep.subr.msk.mxu0 %vm449_vm1, %v775_v14 }
 0x295   : > { %4259 = vmatpush3.xpose.msk.msra.mxu1 %vm449_vm1, %v684_v10  ;;  %v5233_v10 = vpack.c.bf16 %v5056_v23, %v5072_v27 }
 0x296   : > { %4266 = vmatpush3.xpose.msk.msra.mxu0 %vm449_vm1, %v775_v14  ;;  %4270 = vmatprep.subr.msk.mxu1 %vm449_vm1, %v868_v31 }
 0x297   : > { %v1310_v34 = vpop.permute.xlu0 %1309  ;;  %4277 = vmatprep.subr.bf16.mxu0 %v6211_v8 }
 0x298   : > { %v866_v37 = vpop.permute.xlu1 %865  ;;  %4261 = vmatmul.mubr.msk.f32.vlgmr.msra.gmra.mxu1 %vm449_vm1, %v575_v33  ;;  %v1334_v38 = vsel %vm449_vm1, %v1310_v34, 0.0 }
 0x299   : > { %4268 = vmatmul.mubr.msk.f32.vlgmr.msra.gmra.mxu0 %vm449_vm1, %v577_v35  ;;  %1335 = vadd.xlane.f32.xlu1 %v1334_v38 }
 0x29a   : > { %4271 = vmatpush3.xpose.msk.msra.mxu1 %vm449_vm1, %v868_v31  ;;  %4274 = vmatprep.mubr.msk.f32.mxu1 %vm449_vm1, %v578_v39 }
 0x29b   : > { %4272 = vmatprep.subr.msk.mxu1 %vm449_vm1, %v866_v37  ;;  %v1308_v40 = vpop.permute.xlu0 %1307  ;;  %4279 = vmatprep.mubr.msk.bf16.mxu0 %vm4910_vm3, %v6211_v8 }
 0x29c   : > { %v1314_v43 = vpop.permute.xlu1 %1313  ;;  %v1331_v44 = vsel %vm449_vm1, %v1308_v40, 0.0 }
 0x29d   : > { %1332 = vadd.xlane.f32.xlu1 %v1331_v44  ;;  %v1340_v45 = vsel %vm449_vm1, %v1314_v43, 0.0 }
 0x29e   : > { %4273 = vmatpush3.xpose.msk.msra.mxu1 %vm449_vm1, %v866_v37  ;;  %1341 = vadd.xlane.f32.xlu0 %v1340_v45 }
 0x29f   : > { %v1312_v46 = vpop.permute.xlu0 %1311  ;;  %4283 = vmatprep.subr.bf16.mxu1 %v6211_v8 }
 0x2a0   : > { %v1244_v48 = vpop.permute.xlu1 %1243  ;;  %v1337_v49 = vsel %vm449_vm1, %v1312_v46, 0.0 }
 0x2a1   : > { %4275 = vmatmul.mubr.msk.f32.vlgmr.msra.gmra.mxu1 %vm449_vm1, %v579_v47  ;;  %1338 = vadd.xlane.f32.xlu1 %v1337_v49  ;;  %v1267_v42 = vsel %vm449_vm1, %v1244_v48, 0.0 }
 0x2a2   : > { %1268 = vadd.xlane.f32.xlu0 %v1267_v42  ;;  %4285 = vmatprep.mubr.msk.bf16.mxu1 %vm4910_vm3, %v6211_v8 }
 0x2a3   : > { %v1248_v50 = vpop.permute.xlu0 %1247 }
 0x2a4   : > { %v1246_v51 = vpop.permute.xlu1 %1245  ;;  %v1273_v52 = vsel %vm449_vm1, %v1248_v50, 0.0 }
 0x2a5   : > { %1274 = vadd.xlane.f32.xlu1 %v1273_v52  ;;  %v1270_v53 = vsel %vm449_vm1, %v1246_v51, 0.0 }
 0x2a6   : > { %1271 = vadd.xlane.f32.xlu0 %v1270_v53 }
 0x2a7   : > { %v1318_v54 = vpop.permute.xlu0 %1317 }
 0x2a8   : > { %v1250_v55 = vpop.permute.xlu1 %1249  ;;  %v1346_v56 = vsel %vm449_vm1, %v1318_v54, 0.0  ;;  %v589_v54 = vld [vmem:[%s6204_s4 + $0x8] sm:$0xff] }
 0x2a9   : > { %1347 = vadd.xlane.f32.xlu1 %v1346_v56  ;;  %v1276_v57 = vsel %vm449_vm1, %v1250_v55, 0.0 }
 0x2aa   : > { %1277 = vadd.xlane.f32.xlu0 %v1276_v57  ;;  %v588_v57 = vld [vmem:[%s6204_s4] sm:$0xff] }
 0x2ab   : > { %v1316_v58 = vpop.permute.xlu0 %1315 }
 0x2ac   : > { %v1322_v59 = vpop.permute.xlu1 %1321  ;;  %v1343_v60 = vsel %vm449_vm1, %v1316_v58, 0.0 }
 0x2ad   : > { %1344 = vadd.xlane.f32.xlu1 %v1343_v60  ;;  %v1352_v61 = vsel %vm449_vm1, %v1322_v59, 0.0 }
 0x2ae   : > { %1353 = vadd.xlane.f32.xlu0 %v1352_v61 }
 0x2af   : > { %v1320_v62 = vpop.permute.xlu0 %1319 }
 0x2b0   : > { %v1252_v63 = vpop.permute.xlu1 %1251  ;;  %v1349_v0 = vsel %vm449_vm1, %v1320_v62, 0.0 }
 0x2b1   : > { %1350 = vadd.xlane.f32.xlu1 %v1349_v0  ;;  %v1279_v1 = vsel %vm449_vm1, %v1252_v63, 0.0 }
 0x2b2   : > { %1280 = vadd.xlane.f32.xlu0 %v1279_v1 }
 0x2b3   : > { %v1256_v2 = vpop.permute.xlu0 %1255 }
 0x2b4   : > { %v1254_v3 = vpop.permute.xlu1 %1253  ;;  %v1285_v4 = vsel %vm449_vm1, %v1256_v2, 0.0 }
 0x2b5   : > { %1286 = vadd.xlane.f32.xlu1 %v1285_v4  ;;  %v1282_v5 = vsel %vm449_vm1, %v1254_v3, 0.0 }
 0x2b6   : > { %1283 = vadd.xlane.f32.xlu0 %v1282_v5 }
 0x2b8   : > { %v1258_v6 = vpop.permute.xlu1 %1257 }
 0x2b9   : > { %v1288_v7 = vsel %vm449_vm1, %v1258_v6, 0.0 }
 0x2ba   : > { %1289 = vadd.xlane.f32.xlu0 %v1288_v7 }
 0x2c6   : > { %1052 = vrot.lane.b32.xlu1 %v5228_v9, %s4909_s11 }
 0x2ca   : > { %1148 = vrot.lane.b32.xlu1 %v5233_v10, %s4909_s11 }
 0x2ce   : > { %1196 = vrot.lane.b32.xlu1 %v5238_v11, %s4909_s11 }
 0x2d0   : > { %1100 = vrot.lane.b32.xlu0 %v5243_v13, %s4909_s11 }
 0x322   : > { %v1336_v14 = vpop.xlane.xlu1 %1335 }
 0x323   : > { %v1356_v20 = vmax.f32 %v1336_v14, 1e-24 }
 0x325   : > { %4620 = vrsqrt.f32 %v1356_v20 }
 0x326   : > { %v5246_v31 = vpop.xlane.xlu1 %1332 }
 0x327   : > { %v1342_v32 = vpop.xlane.xlu0 %1341 }
 0x328   : > { %v1358_v33 = vmax.f32 %v1342_v32, 1e-24 }
 0x32a   : > { %4622 = vrsqrt.f32 %v1358_v33  ;;  %v1339_v34 = vpop.xlane.xlu1 %1338 }
 0x32b   : > { %v5248_v35 = vpop.xlane.xlu0 %1268  ;;  %v1357_v63 = vmax.f32 %v1339_v34, 1e-24 }
 0x32d   : > { %4624 = vrsqrt.f32 %v1357_v63 }
 0x32e   : > { %v5250_v36 = vpop.xlane.xlu1 %1274 }
 0x32f   : > { %v5252_v37 = vpop.xlane.xlu0 %1271 }
 0x332   : > { %v4621_v38 = vpop.eup %4620  ;;  %v5254_v39 = vpop.xlane.xlu1 %1347 }
 0x333   : > { %v5256_v40 = vpop.xlane.xlu0 %1277  ;;  %v1390_v41 = vmul.f32 %v4621_v38, %v5034_v16  ;;  %v1355_v38 = vmax.f32 %v5246_v31, 1e-24 }
 0x335   : > { %1410 = vrot.lane.b32.xlu0 %v1390_v41, %s4906_s9  ;;  %4626 = vrsqrt.f32 %v1355_v38 }
 0x336   : > { %v5260_v43 = vpop.xlane.xlu1 %1344 }
 0x337   : > { %v4623_v44 = vpop.eup %4622  ;;  %v5262_v45 = vpop.xlane.xlu0 %1353 }
 0x338   : > { %v1392_v46 = vmul.f32 %v4623_v44, %v5030_v12 }
 0x33a   : > { %1505 = vrot.lane.b32.xlu1 %v1392_v46, %s4906_s9  ;;  %v5266_v47 = vpop.xlane.xlu1 %1350  ;;  %v4625_v41 = vpop.eup %4624 }
 0x33b   : > { %v5268_v48 = vpop.xlane.xlu0 %1280  ;;  %v1391_v44 = vmul.f32 %v4625_v41, %v5032_v15 }
 0x33e   : > { %v5270_v49 = vpop.xlane.xlu1 %1286 }
 0x33f   : > { %v5272_v42 = vpop.xlane.xlu0 %1283 }
 0x342   : > { %v1053_v50 = vpop.permute.xlu1 %1052  ;;  %v4627_v46 = vpop.eup %4626 }
 0x343   : > { %v5274_v51 = vpop.xlane.xlu0 %1289  ;;  %4278 = vmatpush3.bf16.msra.mxu0 %v1053_v50  ;;  %v1389_v50 = vmul.f32 %v4627_v46, %v5040_v18 }
 0x344   : > { %4289 = vmatprep.subr.bf16.mxu0 %v6211_v8 }
 0x346   : > { %v5306_v31 = vpop.permute.xlu1 %1148 }
 0x347   : > { %v1101_v52 = vpop.permute.xlu0 %1100 }
 0x348   : > { %4284 = vmatpush3.bf16.msra.mxu1 %v1101_v52 }
 0x349   : > { %4295 = vmatprep.subr.bf16.mxu1 %v6211_v8 }
 0x350   : > { %v4255_v53 = vpop.f32.mrf.mxu1 }
 0x351   : > { %v678_v55 = vadd.f32 %v4255_v53, %v589_v54 }
 0x352   : > { %v672_v56 = vpop.f32.mrf.mxu1 }
 0x353   : > { %v673_v61 = vadd.f32 %v672_v56, %v588_v57  ;;  %v958_v2 = vsel %vm954_vm2, %v678_v55, -inf  ;;  %v5308_v56 = vpop.permute.xlu1 %1196 }
 0x355   : > { %v955_v4 = vsel %vm954_vm2, %v673_v61, -inf }
 0x358   : > { %v4262_v0 = vpop.f32.mrf.mxu1 }
 0x359   : > { %v4269_v58 = vpop.f32.mrf.mxu0  ;;  %v769_v3 = vadd.f32 %v4262_v0, %v589_v54 }
 0x35a   : > { %v860_v59 = vadd.f32 %v4269_v58, %v589_v54  ;;  %v763_v5 = vpop.f32.mrf.mxu1 }
 0x35b   : > { %v854_v60 = vpop.f32.mrf.mxu0  ;;  %v5288_v7 = vadd.f32 %v763_v5, %v588_v57  ;;  %v964_v14 = vsel %vm954_vm2, %v769_v3, -inf }
 0x35c   : > { %v970_v62 = vsel %vm954_vm2, %v860_v59, -inf  ;;  %v855_v1 = vadd.f32 %v854_v60, %v588_v57 }
 0x35d   : > { %971 = vmax.xlane.f32.xlu0 %v970_v62  ;;  %v961_v33 = vsel %vm954_vm2, %v5288_v7, -inf }
 0x35e   : > { %959 = vmax.xlane.f32.xlu1 %v958_v2  ;;  %v967_v6 = vsel %vm954_vm2, %v855_v1, -inf }
 0x361   : > { %956 = vmax.xlane.f32.xlu0 %v955_v4  ;;  %v4276_v20 = vpop.f32.mrf.mxu1 }
 0x362   : > { %968 = vmax.xlane.f32.xlu1 %v967_v6  ;;  %v5291_v32 = vadd.f32 %v4276_v20, %v589_v54 }
 0x363   : > { %v945_v52 = vpop.f32.mrf.mxu1 }
 0x364   : > { %v976_v34 = vsel %vm954_vm2, %v5291_v32, -inf  ;;  %v5302_v53 = vadd.f32 %v945_v52, %v588_v57 }
 0x365   : > { %965 = vmax.xlane.f32.xlu0 %v964_v14 }
 0x366   : > { %v973_v54 = vsel %vm954_vm2, %v5302_v53, -inf }
 0x369   : > { %962 = vmax.xlane.f32.xlu0 %v961_v33 }
 0x36d   : > { %977 = vmax.xlane.f32.xlu0 %v976_v34 }
 0x373   : > { %1503 = vrot.lane.b32.xlu1 %v1391_v44, %s4906_s9 }
 0x383   : > { %1408 = vrot.lane.b32.xlu0 %v1389_v50, %s4906_s9 }
 0x397   : > { %974 = vmax.xlane.f32.xlu1 %v973_v54 }
 0x3a7   : > { %v5310_v58 = vpop.permute.xlu0 %1410 }
 0x3ac   : > { %v5312_v60 = vpop.permute.xlu1 %1505 }
 0x3e6   : > { %v972_v62 = vpop.xlane.xlu0 %971 }
 0x3e7   : > { %v984_v63 = vsub.f32 %v860_v59, %v972_v62  ;;  %v960_v0 = vpop.xlane.xlu1 %959 }
 0x3e8   : > { %v980_v2 = vsub.f32 %v678_v55, %v960_v0  ;;  %v1292_v55 = vmax.f32 %v5252_v37, 1e-24  ;;  %v1291_v37 = vmax.f32 %v5248_v35, 1e-24 }
 0x3e9   : > { %v997_v4 = vmul.f32 1.442695, %v984_v63 }
 0x3ea   : > { %v989_v5 = vmul.f32 1.442695, %v980_v2  ;;  %v957_v57 = vpop.xlane.xlu0 %956  ;;  %v5336_v2 = vstv %s4051_s16  ;;  %s4917_s16 = smov 40  }
 0x3eb   : > { %v979_v6 = vsub.f32 %v673_v61, %v957_v57  ;;  %v969_v14 = vpop.xlane.xlu1 %968 }
 0x3ec   : > { %4628 = vpow2.f32 %v989_v5  ;;  %v983_v20 = vsub.f32 %v855_v1, %v969_v14 }
 0x3ed   : > { %v987_v33 = vmul.f32 1.442695, %v979_v6  ;;  %4630 = vpow2.f32 %v997_v4 }
 0x3ee   : > { %v995_v34 = vmul.f32 1.442695, %v983_v20  ;;  %v966_v38 = vpop.xlane.xlu0 %965 }
 0x3ef   : > { %4632 = vpow2.f32 %v987_v33  ;;  %v982_v41 = vsub.f32 %v769_v3, %v966_v38 }
 0x3f0   : > { %4634 = vpow2.f32 %v995_v34 }
 0x3f1   : > { %v993_v44 = vmul.f32 1.442695, %v982_v41 }
 0x3f2   : > { %v963_v6 = vpop.xlane.xlu0 %962 }
 0x3f3   : > { %4636 = vpow2.f32 %v993_v44  ;;  %v981_v33 = vsub.f32 %v5288_v7, %v963_v6  ;;  %v1360_v44 = vmax.f32 %v5254_v39, 1e-24  ;;  %v1359_v39 = vmax.f32 %v5260_v43, 1e-24 }
 0x3f4   : > { %4638 = vrsqrt.f32 %v1292_v55 }
 0x3f5   : > { %4640 = vrsqrt.f32 %v1291_v37  ;;  %v991_v38 = vmul.f32 1.442695, %v981_v33  ;;  %v1295_v37 = vmax.f32 %v5268_v48, 1e-24 }
 0x3f6   : > { %v978_v20 = vpop.xlane.xlu0 %977 }
 0x3f7   : > { %v986_v34 = vsub.f32 %v5291_v32, %v978_v20  ;;  %4642 = vpow2.f32 %v991_v38  ;;  %v1294_v32 = vmax.f32 %v5256_v40, 1e-24 }
 0x3f9   : > { %v5314_v46 = vpop.eup %4628  ;;  %v1001_v41 = vmul.f32 1.442695, %v986_v34 }
 0x3fa   : > { %v1006_v59 = vsel %vm954_vm2, %v5314_v46, 0.0  ;;  %v5319_v61 = vpop.eup %4630 }
 0x3fb   : > { %1007 = vadd.xlane.f32.xlu0 %v1006_v59  ;;  %v1018_v52 = vsel %vm954_vm2, %v5319_v61, 0.0  ;;  %4644 = vpow2.f32 %v1001_v41 }
 0x3fc   : > { %v5321_v1 = vpop.eup %4632  ;;  %4646 = vrsqrt.f32 %v1360_v44 }
 0x3fd   : > { %v1003_v50 = vsel %vm954_vm2, %v5321_v1, 0.0  ;;  %v5325_v3 = vpop.eup %4634 }
 0x3fe   : > { %1004 = vadd.xlane.f32.xlu1 %v1003_v50  ;;  %v1015_v62 = vsel %vm954_vm2, %v5325_v3, 0.0  ;;  %v1293_v50 = vmax.f32 %v5250_v36, 1e-24  ;;  %v1297_v36 = vmax.f32 %v5270_v49, 1e-24 }
 0x3ff   : > { %1019 = vadd.xlane.f32.xlu0 %v1018_v52 }
 0x400   : > { %v5330_v54 = vpop.eup %4636  ;;  %4648 = vrsqrt.f32 %v1293_v50 }
 0x401   : > { %v1012_v63 = vsel %vm954_vm2, %v5330_v54, 0.0  ;;  %v4639_v0 = vpop.eup %4638  ;;  %4650 = vrsqrt.f32 %v1294_v32  ;;  %v1296_v32 = vmax.f32 %v5272_v42, 1e-24 }
 0x402   : > { %1016 = vadd.xlane.f32.xlu1 %v1015_v62  ;;  %v1374_v4 = vmul.f32 %v4639_v0, %v5336_v2  ;;  %v4641_v5 = vpop.eup %4640  ;;  %4652 = vrsqrt.f32 %v1359_v39 }
 0x403   : > { %1013 = vadd.xlane.f32.xlu0 %v1012_v63  ;;  %v1373_v57 = vmul.f32 %v4641_v5, %v5336_v2  ;;  %4654 = vrsqrt.f32 %v1295_v37  ;;  %v5367_v5 = vpop.permute.xlu1 %1503 }
 0x404   : > { %v1382_v35 = vmul.f32 %v1374_v4, %v5034_v16  ;;  %v5351_v55 = vpop.eup %4642  ;;  %4656 = vrsqrt.f32 %v1297_v36 }
 0x405   : > { %v1381_v14 = vmul.f32 %v1373_v57, %v5040_v18  ;;  %v1009_v52 = vsel %vm954_vm2, %v5351_v55, 0.0 }
 0x408   : > { %v5353_v59 = vpop.eup %4644 }
 0x409   : > { %v1024_v7 = vsel %vm954_vm2, %v5353_v59, 0.0  ;;  %v4647_v62 = vpop.eup %4646 }
 0x40a   : > { %v1394_v0 = vmul.f32 %v4647_v62, %v5056_v23 }
 0x40d   : > { %v4649_v63 = vpop.eup %4648 }
 0x40e   : > { %v1375_v4 = vmul.f32 %v4649_v63, %v5336_v2  ;;  %v4651_v40 = vpop.eup %4650 }
 0x40f   : > { %v1376_v48 = vmul.f32 %v4651_v40, %v5336_v2 }
 0x410   : > { %v1383_v43 = vmul.f32 %v1375_v4, %v5032_v15 }
 0x411   : > { %v1384_v49 = vmul.f32 %v1376_v48, %v5030_v12 }
 0x413   : > { %1404 = vrot.lane.b32.xlu1 %v1382_v35, %s4907_s10  ;;  %v4653_v35 = vpop.eup %4652 }
 0x414   : > { %v4655_v6 = vpop.eup %4654  ;;  %v1393_v20 = vmul.f32 %v4653_v35, %v5072_v27 }
 0x415   : > { %v1377_v33 = vmul.f32 %v4655_v6, %v5336_v2  ;;  %v4657_v34 = vpop.eup %4656 }
 0x416   : > { %v1379_v44 = vmul.f32 %v4657_v34, %v5336_v2 }
 0x417   : > { %v1385_v41 = vmul.f32 %v1377_v33, %v5072_v27 }
 0x418   : > { %v1387_v50 = vmul.f32 %v1379_v44, %v5064_v25 }
 0x419   : > { %1402 = vrot.lane.b32.xlu0 %v1381_v14, %s4907_s10 }
 0x420   : > { %v975_v57 = vpop.xlane.xlu1 %974 }
 0x421   : > { %v985_v14 = vsub.f32 %v5302_v53, %v975_v57  ;;  %v1362_v53 = vmax.f32 %v5262_v45, 1e-24  ;;  %v1298_v45 = vmax.f32 %v5274_v51, 1e-24 }
 0x423   : > { %v999_v38 = vmul.f32 1.442695, %v985_v14 }
 0x425   : > { %4658 = vpow2.f32 %v999_v38 }
 0x426   : > { %4660 = vrsqrt.f32 %v1362_v53 }
 0x437   : > { %1010 = vadd.xlane.f32.xlu1 %v1009_v52  ;;  %v5388_v52 = vpop.eup %4658 }
 0x438   : > { %1025 = vadd.xlane.f32.xlu0 %v1024_v7  ;;  %v1361_v7 = vmax.f32 %v5266_v47, 1e-24  ;;  %v1021_v39 = vsel %vm954_vm2, %v5388_v52, 0.0  ;;  %v4661_v47 = vpop.eup %4660 }
 0x439   : > { %v1396_v37 = vmul.f32 %v4661_v47, %v5048_v21 }
 0x43a   : > { %4662 = vrsqrt.f32 %v1361_v7 }
 0x43b   : > { %4664 = vrsqrt.f32 %v1296_v32 }
 0x43c   : > { %4666 = vrsqrt.f32 %v1298_v45 }
 0x447   : > { %v4663_v42 = vpop.eup %4662 }
 0x448   : > { %1600 = vrot.lane.b32.xlu1 %v1394_v0, %s4906_s9  ;;  %v4665_v62 = vpop.eup %4664  ;;  %v1395_v51 = vmul.f32 %v4663_v42, %v5064_v25  ;;  %v1409_v0 = vpop.permute.xlu0 %1408 }
 0x449   : > { %v1378_v36 = vmul.f32 %v4665_v62, %v5336_v2  ;;  %v4667_v63 = vpop.eup %4666 }
 0x44a   : > { %v1380_v40 = vmul.f32 %v4667_v63, %v5336_v2 }
 0x44b   : > { %v1386_v4 = vmul.f32 %v1378_v36, %v5056_v23 }
 0x44c   : > { %v1388_v35 = vmul.f32 %v1380_v40, %v5048_v21 }
 0x44e   : > { %1497 = vrot.lane.b32.xlu0 %v1383_v43, %s4907_s10 }
 0x452   : > { %1499 = vrot.lane.b32.xlu0 %v1384_v49, %s4907_s10 }
 0x456   : > { %1598 = vrot.lane.b32.xlu0 %v1393_v20, %s4906_s9 }
 0x45a   : > { %1592 = vrot.lane.b32.xlu0 %v1385_v41, %s4907_s10 }
 0x45e   : > { %1687 = vrot.lane.b32.xlu0 %v1387_v50, %s4907_s10 }
 0x462   : > { %2126 = vrot.lane.b32.xlu0 %v5046_v19, %s4911_s17 }
 0x466   : > { %2124 = vrot.lane.b32.xlu0 %v5062_v24, %s4911_s17 }
 0x46a   : > { %2128 = vrot.lane.b32.xlu0 %v5054_v22, %s4911_s17 }
 0x46c   : > { %1022 = vadd.xlane.f32.xlu1 %v1021_v39 }
 0x46e   : > { %2064 = vrot.lane.b32.xlu0 %v5054_v22, %s4912_s18 }
 0x472   : > { %2134 = vrot.lane.b32.xlu0 %v5078_v28, %s4911_s17 }
 0x476   : > { %2132 = vrot.lane.b32.xlu0 %v5090_v30, %s4911_s17 }
 0x47a   : > { %2136 = vrot.lane.b32.xlu0 %v5084_v29, %s4911_s17 }
 0x47d   : > { %1695 = vrot.lane.b32.xlu1 %v1396_v37, %s4906_s9 }
 0x47e   : > { %2072 = vrot.lane.b32.xlu0 %v5084_v29, %s4912_s18 }
 0x481   : > { %1693 = vrot.lane.b32.xlu1 %v1395_v51, %s4906_s9 }
 0x484   : > { %v1008_v43 = vpop.xlane.xlu0 %1007 }
 0x485   : > { %1594 = vrot.lane.b32.xlu1 %v1386_v4, %s4907_s10  ;;  %4668 = vrcp.f32 %v1008_v43 }
 0x487   : > { %v1005_v48 = vpop.xlane.xlu1 %1004 }
 0x488   : > { %4670 = vrcp.f32 %v1005_v48  ;;  %v1020_v57 = vpop.xlane.xlu0 %1019 }
 0x489   : > { %1689 = vrot.lane.b32.xlu1 %v1388_v35, %s4907_s10 }
 0x48b   : > { %v1017_v49 = vpop.xlane.xlu1 %1016 }
 0x48c   : > { %4672 = vrcp.f32 %v1017_v49  ;;  %v1014_v41 = vpop.xlane.xlu0 %1013 }
 0x48d   : > { %2130 = vrot.lane.b32.xlu1 %v5038_v17, %s4911_s17  ;;  %4674 = vrcp.f32 %v1020_v57 }
 0x48e   : > { %4676 = vrcp.f32 %v1014_v41 }
 0x490   : > { %v1403_v50 = vpop.permute.xlu0 %1402 }
 0x491   : > { %2060 = vrot.lane.b32.xlu1 %v5062_v24, %s4912_s18 }
 0x492   : > { %v4669_v2 = vpop.eup %4668 }
 0x493   : > { %v1036_v20 = vmul.f32 %v4669_v2, %v5314_v46 }
 0x495   : > { %v4671_v6 = vpop.eup %4670  ;;  %2062 = vrot.lane.b32.xlu1 %v5046_v19, %s4912_s18 }
 0x496   : > { %v1035_v14 = vmul.f32 %v4671_v6, %v5321_v1 }
 0x498   : > { %v1043_v33 = vpack.c.bf16 %v1036_v20, %v1035_v14 }
 0x499   : > { %v4673_v34 = vpop.eup %4672  ;;  %2066 = vrot.lane.b32.xlu1 %v5038_v17, %s4912_s18 }
 0x49a   : > { %4280 = vmatmul.mubr.msk.bf16.vlgmr.msra.gmra.mxu0 %vm954_vm2, %v1043_v33  ;;  %v4675_v38 = vpop.eup %4674  ;;  %v1039_v1 = vmul.f32 %v4673_v34, %v5325_v3 }
 0x49b   : > { %4290 = vmatpush3.bf16.msra.mxu0 %v5306_v31  ;;  %4291 = vmatprep.mubr.msk.bf16.mxu0 %vm4910_vm3, %v6211_v8  ;;  %v1040_v46 = vmul.f32 %v4675_v38, %v5319_v61  ;;  %v1405_v31 = vpop.permute.xlu1 %1404  ;;  %v4677_v32 = vpop.eup %4676 }
 0x49c   : > { %4301 = vmatprep.subr.msk.mxu0 %vm449_vm1, %v5310_v58  ;;  %v1038_v42 = vmul.f32 %v4677_v32, %v5330_v54 }
 0x49d   : > { %2138 = vrot.lane.b32.xlu1 %v5070_v26, %s4911_s17  ;;  %v1045_v44 = vpack.c.bf16 %v1040_v46, %v1039_v1 }
 0x4a1   : > { %2068 = vrot.lane.b32.xlu1 %v5090_v30, %s4912_s18 }
 0x4a2   : > { %4292 = vmatmul.mubr.msk.bf16.vlgmr.msra.gmra.mxu0 %vm954_vm2, %v1045_v44 }
 0x4a3   : > { %4302 = vmatpush3.xpose.msk.msra.mxu0 %vm449_vm1, %v5310_v58  ;;  %4305 = vmatprep.mubr.msk.f32.mxu0 %vm449_vm1, %v1403_v50 }
 0x4a4   : > { %4303 = vmatprep.subr.msk.mxu0 %vm449_vm1, %v1409_v0 }
 0x4a5   : > { %2070 = vrot.lane.b32.xlu1 %v5078_v28, %s4912_s18 }
 0x4a7   : > { %4304 = vmatpush3.xpose.msk.msra.mxu0 %vm449_vm1, %v1409_v0 }
 0x4a9   : > { %2074 = vrot.lane.b32.xlu1 %v5070_v26, %s4912_s18 }
 0x4aa   : > { %4306 = vmatmul.mubr.msk.f32.vlgmr.msra.gmra.mxu0 %vm449_vm1, %v1405_v31 }
 0x4c0   : > { %v1011_v61 = vpop.xlane.xlu1 %1010 }
 0x4c1   : > { %4678 = vrcp.f32 %v1011_v61  ;;  %v1026_v3 = vpop.xlane.xlu0 %1025 }
 0x4c2   : > { %4680 = vrcp.f32 %v1026_v3 }
 0x4c4   : > { %v1601_v58 = vpop.permute.xlu1 %1600 }
 0x4c5   : > { %v1498_v53 = vpop.permute.xlu0 %1497  ;;  %4315 = vmatprep.subr.msk.mxu0 %vm449_vm1, %v1601_v58 }
 0x4c6   : > { %4316 = vmatpush3.xpose.msk.msra.mxu0 %vm449_vm1, %v1601_v58 }
 0x4c9   : > { %v5452_v7 = vpop.permute.xlu0 %1499 }
 0x4cd   : > { %v1599_v39 = vpop.permute.xlu0 %1598 }
 0x4ce   : > { %v4679_v45 = vpop.eup %4678  ;;  %4317 = vmatprep.subr.msk.mxu0 %vm449_vm1, %v1599_v39 }
 0x4cf   : > { %4318 = vmatpush3.xpose.msk.msra.mxu0 %vm449_vm1, %v1599_v39  ;;  %v1037_v47 = vmul.f32 %v4679_v45, %v5351_v55  ;;  %v4681_v38 = vpop.eup %4680 }
 0x4d0   : > { %4329 = vmatprep.subr.bf16.mxu0 %v6211_v8  ;;  %v1042_v44 = vmul.f32 %v4681_v38, %v5353_v59 }
 0x4d1   : > { %v1593_v37 = vpop.permute.xlu0 %1592  ;;  %v1044_v62 = vpack.c.bf16 %v1038_v42, %v1037_v47 }
 0x4d2   : > { %4319 = vmatprep.mubr.msk.f32.mxu0 %vm449_vm1, %v1593_v37 }
 0x4d3   : > { %4286 = vmatmul.mubr.msk.bf16.vlgmr.msra.gmra.mxu1 %vm954_vm2, %v1044_v62 }
 0x4d4   : > { %4296 = vmatpush3.bf16.msra.mxu1 %v5308_v56  ;;  %4297 = vmatprep.mubr.msk.bf16.mxu1 %vm4910_vm3, %v6211_v8 }
 0x4d5   : > { %4308 = vmatprep.subr.msk.mxu1 %vm449_vm1, %v5312_v60  ;;  %v1688_v51 = vpop.permute.xlu0 %1687 }
 0x4d9   : > { %v2127_v55 = vpop.permute.xlu0 %2126 }
 0x4da   : > { %v2151_v54 = vsel %vm449_vm1, %v2127_v55, 0.0 }
 0x4db   : > { %2152 = vadd.xlane.f32.xlu1 %v2151_v54 }
 0x4dd   : > { %v2125_v36 = vpop.permute.xlu0 %2124 }
 0x4de   : > { %v2148_v63 = vsel %vm449_vm1, %v2125_v36, 0.0 }
 0x4df   : > { %2149 = vadd.xlane.f32.xlu1 %v2148_v63 }
 0x4e1   : > { %v2129_v0 = vpop.permute.xlu0 %2128 }
 0x4e2   : > { %v2154_v4 = vsel %vm449_vm1, %v2129_v0, 0.0 }
 0x4e3   : > { %2155 = vadd.xlane.f32.xlu1 %v2154_v4 }
 0x4e5   : > { %v2065_v56 = vpop.permute.xlu0 %2064 }
 0x4e6   : > { %v2090_v40 = vsel %vm449_vm1, %v2065_v56, 0.0 }
 0x4e7   : > { %2091 = vadd.xlane.f32.xlu1 %v2090_v40 }
 0x4e9   : > { %v2135_v43 = vpop.permute.xlu0 %2134 }
 0x4ea   : > { %v2163_v48 = vsel %vm449_vm1, %v2135_v43, 0.0 }
 0x4eb   : > { %2164 = vadd.xlane.f32.xlu1 %v2163_v48 }
 0x4ed   : > { %v2133_v35 = vpop.permute.xlu0 %2132 }
 0x4ee   : > { %v2160_v57 = vsel %vm449_vm1, %v2133_v35, 0.0 }
 0x4ef   : > { %2161 = vadd.xlane.f32.xlu1 %v2160_v57 }
 0x4f1   : > { %v2137_v49 = vpop.permute.xlu0 %2136 }
 0x4f2   : > { %v2166_v2 = vsel %vm449_vm1, %v2137_v49, 0.0 }
 0x4f3   : > { %2167 = vadd.xlane.f32.xlu1 %v2166_v2 }
 0x4f5   : > { %v2073_v6 = vpop.permute.xlu0 %2072  ;;  %v1023_v14 = vpop.xlane.xlu1 %1022 }
 0x4f6   : > { %4682 = vrcp.f32 %v1023_v14  ;;  %v2102_v20 = vsel %vm449_vm1, %v2073_v6, 0.0 }
 0x4f7   : > { %2103 = vadd.xlane.f32.xlu1 %v2102_v20 }
 0x4f9   : > { %v1696_v33 = vpop.permute.xlu1 %1695 }
 0x4fd   : > { %v1694_v34 = vpop.permute.xlu1 %1693 }
 0x501   : > { %v1595_v41 = vpop.permute.xlu1 %1594 }
 0x502   : > { %4320 = vmatmul.mubr.msk.f32.vlgmr.msra.gmra.mxu0 %vm449_vm1, %v1595_v41 }
 0x503   : > { %v4683_v1 = vpop.eup %4682  ;;  %4331 = vmatprep.mubr.msk.bf16.mxu0 %vm4910_vm3, %v6211_v8 }
 0x504   : > { %v1041_v46 = vmul.f32 %v4683_v1, %v5388_v52  ;;  %v5540_v1 = vld [vmem:[%s6204_s4 + $0x10] sm:$0xff] }
 0x505   : > { %v1690_v50 = vpop.permute.xlu1 %1689 }
 0x506   : > { %v1046_v31 = vpack.c.bf16 %v1042_v44, %v1041_v46 }
 0x508   : > { %1872 = vrot.lane.b32.xlu1 %v5228_v9, %s4913_s19  ;;  %4298 = vmatmul.mubr.msk.bf16.vlgmr.msra.gmra.mxu1 %vm954_vm2, %v1046_v31 }
 0x509   : > { %4309 = vmatpush3.xpose.msk.msra.mxu1 %vm449_vm1, %v5312_v60  ;;  %4312 = vmatprep.mubr.msk.f32.mxu1 %vm449_vm1, %v1498_v53  ;;  %v2131_v61 = vpop.permute.xlu1 %2130 }
 0x50a   : > { %4310 = vmatprep.subr.msk.mxu1 %vm449_vm1, %v5367_v5  ;;  %v2157_v52 = vsel %vm449_vm1, %v2131_v61, 0.0 }
 0x50b   : > { %2158 = vadd.xlane.f32.xlu0 %v2157_v52 }
 0x50c   : > { %1966 = vrot.lane.b32.xlu1 %v5233_v10, %s4913_s19 }
 0x50d   : > { %4311 = vmatpush3.xpose.msk.msra.mxu1 %vm449_vm1, %v5367_v5  ;;  %v2061_v59 = vpop.permute.xlu1 %2060 }
 0x50e   : > { %4322 = vmatprep.subr.msk.mxu1 %vm449_vm1, %v1696_v33  ;;  %v2084_v60 = vsel %vm449_vm1, %v2061_v59, 0.0 }
 0x50f   : > { %2085 = vadd.xlane.f32.xlu0 %v2084_v60 }
 0x510   : > { %2013 = vrot.lane.b32.xlu1 %v5238_v11, %s4913_s19  ;;  %4313 = vmatmul.mubr.msk.f32.vlgmr.msra.gmra.mxu1 %vm449_vm1, %v5452_v7 }
 0x511   : > { %4323 = vmatpush3.xpose.msk.msra.mxu1 %vm449_vm1, %v1696_v33  ;;  %4326 = vmatprep.mubr.msk.f32.mxu1 %vm449_vm1, %v1688_v51  ;;  %v2063_v3 = vpop.permute.xlu1 %2062 }
 0x512   : > { %4324 = vmatprep.subr.msk.mxu1 %vm449_vm1, %v1694_v34  ;;  %v2087_v5 = vsel %vm449_vm1, %v2063_v3, 0.0 }
 0x513   : > { %2088 = vadd.xlane.f32.xlu0 %v2087_v5 }
 0x515   : > { %4325 = vmatpush3.xpose.msk.msra.mxu1 %vm449_vm1, %v1694_v34  ;;  %v2067_v58 = vpop.permute.xlu1 %2066 }
 0x516   : > { %v2093_v53 = vsel %vm449_vm1, %v2067_v58, 0.0  ;;  %4335 = vmatprep.subr.bf16.mxu1 %v6211_v8 }
 0x517   : > { %2094 = vadd.xlane.f32.xlu0 %v2093_v53 }
 0x518   : > { %4327 = vmatmul.mubr.msk.f32.vlgmr.msra.gmra.mxu1 %vm449_vm1, %v1690_v50 }
 0x519   : > { %v2139_v7 = vpop.permute.xlu1 %2138  ;;  %4337 = vmatprep.mubr.msk.bf16.mxu1 %vm4910_vm3, %v6211_v8 }
 0x51a   : > { %v2169_v32 = vsel %vm449_vm1, %v2139_v7, 0.0 }
 0x51b   : > { %2170 = vadd.xlane.f32.xlu0 %v2169_v32 }
 0x51d   : > { %v2069_v39 = vpop.permute.xlu1 %2068 }
 0x51e   : > { %v2096_v45 = vsel %vm449_vm1, %v2069_v39, 0.0 }
 0x51f   : > { %2097 = vadd.xlane.f32.xlu0 %v2096_v45 }
 0x521   : > { %v2071_v47 = vpop.permute.xlu1 %2070 }
 0x522   : > { %v2099_v42 = vsel %vm449_vm1, %v2071_v47, 0.0 }
 0x523   : > { %2100 = vadd.xlane.f32.xlu0 %v2099_v42 }
 0x525   : > { %v2075_v37 = vpop.permute.xlu1 %2074 }
 0x526   : > { %v2105_v62 = vsel %vm449_vm1, %v2075_v37, 0.0  ;;  %v4053_v37 = vld [vmem:[%s6204_s4 + $0x18] sm:$0xff] }
 0x527   : > { %2106 = vadd.xlane.f32.xlu0 %v2105_v62 }
 0x53d   : > { %1919 = vrot.lane.b32.xlu0 %v5243_v13, %s4913_s19  ;;  %s4920_s19 = smov 24  }
 0x55a   : > { %v5514_v51 = vpop.f32.mrf.mxu0 }
 0x55c   : > { %v4281_v55 = vpop.f32.mrf.mxu0 }
 0x55e   : > { %v5516_v54 = vpop.f32.mrf.mxu0 }
 0x560   : > { %v4282_v36 = vpop.f32.mrf.mxu0 }
 0x562   : > { %v5518_v63 = vpop.f32.mrf.mxu0 }
 0x564   : > { %v4293_v0 = vpop.f32.mrf.mxu0  ;;  %v2153_v4 = vpop.xlane.xlu1 %2152 }
 0x565   : > { %v2173_v56 = vmax.f32 %v2153_v4, 1e-24 }
 0x566   : > { %v5520_v40 = vpop.f32.mrf.mxu0 }
 0x567   : > { %4684 = vrsqrt.f32 %v2173_v56 }
 0x568   : > { %v4294_v43 = vpop.f32.mrf.mxu0  ;;  %v5522_v48 = vpop.xlane.xlu1 %2149 }
 0x56a   : > { %v4307_v38 = vpop.f32.mrf.mxu0 }
 0x56b   : > { %v1492_v0 = vadd.f32 %v4307_v38, %v4053_v37 }
 0x56c   : > { %v2156_v35 = vpop.xlane.xlu1 %2155  ;;  %v1486_v41 = vpop.f32.mrf.mxu0 }
 0x56d   : > { %v5543_v46 = vadd.f32 %v5540_v1, %v1486_v41  ;;  %v2174_v43 = vmax.f32 %v2156_v35, 1e-24 }
 0x56f   : > { %v1780_v52 = vsel %vm954_vm2, %v5543_v46, -inf }
 0x570   : > { %v5524_v57 = vpop.xlane.xlu1 %2091 }
 0x574   : > { %v4685_v49 = vpop.eup %4684  ;;  %v5526_v2 = vpop.xlane.xlu1 %2164 }
 0x575   : > { %v2207_v6 = vmul.f32 %v4685_v49, %v5034_v16 }
 0x577   : > { %2227 = vrot.lane.b32.xlu0 %v2207_v6, %s4911_s17 }
 0x578   : > { %v5530_v14 = vpop.xlane.xlu1 %2161 }
 0x57c   : > { %v5532_v20 = vpop.xlane.xlu1 %2167 }
 0x580   : > { %v5534_v33 = vpop.xlane.xlu1 %2103 }
 0x584   : > { %v1873_v34 = vpop.permute.xlu1 %1872 }
 0x585   : > { %4330 = vmatpush3.bf16.msra.mxu0 %v1873_v34  ;;  %v1783_v34 = vsel %vm954_vm2, %v1492_v0, -inf }
 0x586   : > { %4341 = vmatprep.subr.bf16.mxu0 %v6211_v8 }
 0x593   : > { %v5545_v44 = vpop.f32.mrf.mxu1 }
 0x594   : > { %6218 = vst [vmem:[#allocation8_spill] sm:$0xff] %v5545_v44  ;;  %v2159_v50 = vpop.xlane.xlu0 %2158 }
 0x595   : > { %v2175_v31 = vmax.f32 %v2159_v50, 1e-24  ;;  %v4287_v61 = vpop.f32.mrf.mxu1 }
 0x596   : > { %1781 = vmax.xlane.f32.xlu0 %v1780_v52 }
 0x597   : > { %4686 = vrsqrt.f32 %v2175_v31  ;;  %v5549_v59 = vpop.f32.mrf.mxu1 }
 0x598   : > { %6219 = vst [vmem:[#allocation9_spill] sm:$0xff] %v5549_v59  ;;  %v5551_v60 = vpop.xlane.xlu0 %2085  ;;  %4688 = vrsqrt.f32 %v2174_v43 }
 0x599   : > { %v4288_v3 = vpop.f32.mrf.mxu1 }
 0x59c   : > { %v2089_v5 = vpop.xlane.xlu0 %2088 }
 0x5a0   : > { %v5553_v58 = vpop.xlane.xlu0 %2094 }
 0x5a4   : > { %v4687_v53 = vpop.eup %4686  ;;  %v5555_v7 = vpop.xlane.xlu0 %2170 }
 0x5a5   : > { %v2209_v32 = vmul.f32 %v4687_v53, %v5030_v12 }
 0x5a7   : > { %2322 = vrot.lane.b32.xlu1 %v2209_v32, %s4911_s17 }
 0x5a8   : > { %v5559_v39 = vpop.xlane.xlu0 %2097 }
 0x5ac   : > { %v5561_v45 = vpop.xlane.xlu0 %2100 }
 0x5b0   : > { %v5563_v47 = vpop.xlane.xlu0 %2106 }
 0x5b4   : > { %v1920_v42 = vpop.permute.xlu0 %1919 }
 0x5b5   : > { %4336 = vmatpush3.bf16.msra.mxu1 %v1920_v42 }
 0x5b6   : > { %4347 = vmatprep.subr.bf16.mxu1 %v6211_v8 }
 0x5c2   : > { %v4321_v62 = vpop.f32.mrf.mxu0 }
 0x5c3   : > { %v5569_v55 = vadd.f32 %v4321_v62, %v4053_v37  ;;  %v4689_v62 = vpop.eup %4688 }
 0x5c4   : > { %v1676_v4 = vpop.f32.mrf.mxu0  ;;  %v2208_v43 = vmul.f32 %v4689_v62, %v5032_v15 }
 0x5c5   : > { %v1795_v36 = vsel %vm954_vm2, %v5569_v55, -inf  ;;  %v1677_v49 = vadd.f32 %v5540_v1, %v1676_v4  ;;  %v2172_v4 = vmax.f32 %v5522_v48, 1e-24 }
 0x5c6   : > { %1796 = vmax.xlane.f32.xlu0 %v1795_v36 }
 0x5c7   : > { %v1792_v31 = vsel %vm954_vm2, %v1677_v49, -inf  ;;  %4690 = vrsqrt.f32 %v2172_v4 }
 0x5c8   : > { %v5573_v56 = vpop.f32.mrf.mxu1 }
 0x5c9   : > { %6220 = vst [vmem:[#allocation10_spill] sm:$0xff] %v5573_v56 }
 0x5ca   : > { %v4299_v6 = vpop.f32.mrf.mxu1 }
 0x5cb   : > { %1784 = vmax.xlane.f32.xlu1 %v1783_v34 }
 0x5cc   : > { %v5577_v41 = vpop.f32.mrf.mxu1 }
 0x5cd   : > { %6221 = vst [vmem:[#allocation11_spill] sm:$0xff] %v5577_v41 }
 0x5ce   : > { %v4300_v50 = vpop.f32.mrf.mxu1 }
 0x5cf   : > { %1793 = vmax.xlane.f32.xlu1 %v1792_v31 }
 0x5d0   : > { %v4314_v61 = vpop.f32.mrf.mxu1 }
 0x5d1   : > { %v1587_v38 = vadd.f32 %v4314_v61, %v4053_v37 }
 0x5d2   : > { %v1581_v52 = vpop.f32.mrf.mxu1 }
 0x5d3   : > { %v1582_v3 = vadd.f32 %v5540_v1, %v1581_v52  ;;  %v1789_v35 = vsel %vm954_vm2, %v1587_v38, -inf }
 0x5d4   : > { %1790 = vmax.xlane.f32.xlu0 %v1789_v35  ;;  %v4691_v6 = vpop.eup %4690 }
 0x5d5   : > { %v1786_v53 = vsel %vm954_vm2, %v1582_v3, -inf  ;;  %v2206_v34 = vmul.f32 %v4691_v6, %v5040_v18 }
 0x5d8   : > { %v4328_v32 = vpop.f32.mrf.mxu1  ;;  %1787 = vmax.xlane.f32.xlu0 %v1786_v53  ;;  %v2109_v53 = vmax.f32 %v2089_v5, 1e-24 }
 0x5d9   : > { %v5583_v42 = vadd.f32 %v4328_v32, %v4053_v37 }
 0x5da   : > { %v1771_v50 = vpop.f32.mrf.mxu1 }
 0x5db   : > { %v1801_v36 = vsel %vm954_vm2, %v5583_v42, -inf  ;;  %v5593_v37 = vadd.f32 %v5540_v1, %v1771_v50 }
 0x5dc   : > { %1802 = vmax.xlane.f32.xlu0 %v1801_v36  ;;  %v5604_v36 = vstv %s4074_s27 }
 0x5dd   : > { %v1798_v31 = vsel %vm954_vm2, %v5593_v37, -inf }
 0x5e0   : > { %2320 = vrot.lane.b32.xlu1 %v2208_v43, %s4911_s17 }
 0x5e9   : > { %v5597_v48 = vpop.permute.xlu0 %2227 }
 0x5f2   : > { %2225 = vrot.lane.b32.xlu0 %v2206_v34, %s4911_s17 }
 0x604   : > { %1799 = vmax.xlane.f32.xlu1 %v1798_v31 }
 0x61f   : > { %v1782_v61 = vpop.xlane.xlu0 %1781 }
 0x620   : > { %v1804_v52 = vsub.f32 %v5543_v46, %v1782_v61  ;;  %v5609_v46 = vpop.permute.xlu1 %1966 }
 0x622   : > { %v1812_v35 = vmul.f32 1.442695, %v1804_v52 }
 0x624   : > { %4692 = vpow2.f32 %v1812_v35  ;;  %v5611_v5 = vpop.permute.xlu1 %2013 }
 0x625   : > { %4694 = vrsqrt.f32 %v2109_v53 }
 0x628   : > { %v5613_v6 = vpop.permute.xlu1 %2322 }
 0x631   : > { %v5600_v32 = vpop.eup %4692 }
 0x632   : > { %v1828_v62 = vsel %vm954_vm2, %v5600_v32, 0.0  ;;  %v4695_v1 = vpop.eup %4694 }
 0x633   : > { %1829 = vadd.xlane.f32.xlu1 %v1828_v62  ;;  %v2191_v4 = vmul.f32 %v4695_v1, %v5604_v36 }
 0x635   : > { %v2199_v43 = vmul.f32 %v2191_v4, %v5034_v16 }
 0x644   : > { %2221 = vrot.lane.b32.xlu1 %v2199_v43, %s4912_s18 }
 0x64f   : > { %v1797_v34 = vpop.xlane.xlu0 %1796 }
 0x650   : > { %v1809_v50 = vsub.f32 %v5569_v55, %v1797_v34 }
 0x652   : > { %v1822_v52 = vmul.f32 1.442695, %v1809_v50 }
 0x654   : > { %v1785_v31 = vpop.xlane.xlu1 %1784 }
 0x655   : > { %v1805_v61 = vsub.f32 %v1492_v0, %v1785_v31 }
 0x657   : > { %v1814_v35 = vmul.f32 1.442695, %v1805_v61 }
 0x658   : > { %v1794_v53 = vpop.xlane.xlu1 %1793 }
 0x659   : > { %4696 = vpow2.f32 %v1814_v35  ;;  %v1808_v62 = vsub.f32 %v1677_v49, %v1794_v53 }
 0x65a   : > { %4698 = vpow2.f32 %v1822_v52 }
 0x65b   : > { %v1820_v1 = vmul.f32 1.442695, %v1808_v62 }
 0x65c   : > { %v5643_v35 = vpop.permute.xlu1 %2320 }
 0x65d   : > { %4700 = vpow2.f32 %v1820_v1  ;;  %v1791_v4 = vpop.xlane.xlu0 %1790 }
 0x65e   : > { %v1807_v43 = vsub.f32 %v1587_v38, %v1791_v4 }
 0x660   : > { %v1818_v8 = vmul.f32 1.442695, %v1807_v43 }
 0x661   : > { %v1788_v56 = vpop.xlane.xlu0 %1787 }
 0x662   : > { %4702 = vpow2.f32 %v1818_v8  ;;  %v1806_v41 = vsub.f32 %v1582_v3, %v1788_v56  ;;  %v2108_v8 = vmax.f32 %v5551_v60, 1e-24 }
 0x664   : > { %v1816_v44 = vmul.f32 1.442695, %v1806_v41 }
 0x665   : > { %v1803_v53 = vpop.xlane.xlu0 %1802 }
 0x666   : > { %v5616_v59 = vpop.eup %4696  ;;  %4704 = vpow2.f32 %v1816_v44  ;;  %v2177_v44 = vmax.f32 %v5526_v2, 1e-24  ;;  %v1811_v62 = vsub.f32 %v5583_v42, %v1803_v53  ;;  %v2111_v42 = vmax.f32 %v5553_v58, 1e-24 }
 0x667   : > { %v1831_v55 = vsel %vm954_vm2, %v5616_v59, 0.0  ;;  %v5620_v0 = vpop.eup %4698  ;;  %4706 = vrsqrt.f32 %v2108_v8  ;;  %v2179_v8 = vmax.f32 %v5555_v7, 1e-24  ;;  %v2115_v7 = vmax.f32 %v5563_v47, 1e-24 }
 0x668   : > { %1832 = vadd.xlane.f32.xlu0 %v1831_v55  ;;  %v1843_v34 = vsel %vm954_vm2, %v5620_v0, 0.0  ;;  %4708 = vrsqrt.f32 %v2177_v44  ;;  %v1826_v4 = vmul.f32 1.442695, %v1811_v62 }
 0x66a   : > { %v5622_v49 = vpop.eup %4700  ;;  %4710 = vpow2.f32 %v1826_v4 }
 0x66b   : > { %v1840_v38 = vsel %vm954_vm2, %v5622_v49, 0.0 }
 0x66c   : > { %1844 = vadd.xlane.f32.xlu0 %v1843_v34  ;;  %1841 = vadd.xlane.f32.xlu1 %v1840_v38  ;;  %v2110_v38 = vmax.f32 %v5524_v57, 1e-24  ;;  %v2176_v57 = vmax.f32 %v5530_v14, 1e-24 }
 0x66f   : > { %v5629_v56 = vpop.eup %4702 }
 0x670   : > { %v1837_v41 = vsel %vm954_vm2, %v5629_v56, 0.0 }
 0x671   : > { %1838 = vadd.xlane.f32.xlu0 %v1837_v41 }
 0x673   : > { %v5634_v3 = vpop.eup %4704 }
 0x674   : > { %v1834_v50 = vsel %vm954_vm2, %v5634_v3, 0.0  ;;  %v4707_v31 = vpop.eup %4706 }
 0x675   : > { %1835 = vadd.xlane.f32.xlu1 %v1834_v50  ;;  %v4709_v61 = vpop.eup %4708  ;;  %v2190_v60 = vmul.f32 %v4707_v31, %v5604_v36  ;;  %v2113_v50 = vmax.f32 %v5561_v45, 1e-24 }
 0x676   : > { %v2211_v52 = vmul.f32 %v4709_v61, %v5056_v23  ;;  %v2112_v61 = vmax.f32 %v5559_v39, 1e-24 }
 0x677   : > { %v2198_v2 = vmul.f32 %v2190_v60, %v5040_v18  ;;  %v5647_v34 = vpop.eup %4710 }
 0x678   : > { %v1849_v44 = vsel %vm954_vm2, %v5647_v34, 0.0 }
 0x686   : > { %2417 = vrot.lane.b32.xlu1 %v2211_v52, %s4911_s17 }
 0x687   : > { %2219 = vrot.lane.b32.xlu0 %v2198_v2, %s4912_s18 }
 0x68d   : > { %v1800_v1 = vpop.xlane.xlu1 %1799 }
 0x68e   : > { %v1810_v43 = vsub.f32 %v5593_v37, %v1800_v1  ;;  %v2178_v37 = vmax.f32 %v5532_v20, 1e-24  ;;  %v2114_v20 = vmax.f32 %v5534_v33, 1e-24 }
 0x690   : > { %v1824_v55 = vmul.f32 1.442695, %v1810_v43 }
 0x692   : > { %4712 = vpow2.f32 %v1824_v55 }
 0x693   : > { %4714 = vrsqrt.f32 %v2110_v38 }
 0x694   : > { %4716 = vrsqrt.f32 %v2179_v8 }
 0x695   : > { %4718 = vrsqrt.f32 %v2111_v42 }
 0x696   : > { %4720 = vrsqrt.f32 %v2178_v37 }
 0x697   : > { %4722 = vrsqrt.f32 %v2113_v50 }
 0x698   : > { %4724 = vrsqrt.f32 %v2176_v57 }
 0x699   : > { %4726 = vrsqrt.f32 %v2115_v7 }
 0x69a   : > { %4728 = vrsqrt.f32 %v2112_v61 }
 0x69b   : > { %4730 = vrsqrt.f32 %v2114_v20 }
 0x69f   : > { %v5653_v41 = vpop.eup %4712 }
 0x6a0   : > { %v1846_v31 = vsel %vm954_vm2, %v5653_v41, 0.0  ;;  %v4715_v58 = vpop.eup %4714 }
 0x6a1   : > { %v4717_v45 = vpop.eup %4716  ;;  %v2192_v60 = vmul.f32 %v4715_v58, %v5604_v36 }
 0x6a2   : > { %v4719_v52 = vpop.eup %4718  ;;  %v2213_v14 = vmul.f32 %v4717_v45, %v5048_v21 }
 0x6a3   : > { %v4721_v2 = vpop.eup %4720  ;;  %v2200_v62 = vmul.f32 %v2192_v60, %v5032_v15  ;;  %v2193_v47 = vmul.f32 %v4719_v52, %v5604_v36 }
 0x6a4   : > { %v4723_v53 = vpop.eup %4722  ;;  %v2212_v39 = vmul.f32 %v4721_v2, %v5064_v25  ;;  %v6222_v2 = vmov 0.0  }
 0x6a5   : > { %v4725_v33 = vpop.eup %4724  ;;  %v2195_v1 = vmul.f32 %v4723_v53, %v5604_v36  ;;  %v2201_v43 = vmul.f32 %v2193_v47, %v5030_v12 }
 0x6a6   : > { %1850 = vadd.xlane.f32.xlu0 %v1849_v44  ;;  %v4727_v4 = vpop.eup %4726  ;;  %v2210_v44 = vmul.f32 %v4725_v33, %v5072_v27 }
 0x6a7   : > { %v4729_v55 = vpop.eup %4728  ;;  %v2203_v38 = vmul.f32 %v2195_v1, %v5056_v23  ;;  %v2197_v8 = vmul.f32 %v4727_v4, %v5604_v36 }
 0x6a8   : > { %v2194_v42 = vmul.f32 %v4729_v55, %v5604_v36  ;;  %v4731_v37 = vpop.eup %4730 }
 0x6a9   : > { %v2205_v50 = vmul.f32 %v2197_v8, %v5048_v21  ;;  %v2196_v57 = vmul.f32 %v4731_v37, %v5604_v36 }
 0x6aa   : > { %1847 = vadd.xlane.f32.xlu1 %v1846_v31  ;;  %v2202_v31 = vmul.f32 %v2194_v42, %v5072_v27 }
 0x6ab   : > { %v2204_v7 = vmul.f32 %v2196_v57, %v5064_v25 }
 0x6bb   : > { %2512 = vrot.lane.b32.xlu1 %v2213_v14, %s4911_s17 }
 0x6bc   : > { %2314 = vrot.lane.b32.xlu0 %v2200_v62, %s4912_s18 }
 0x6bf   : > { %2510 = vrot.lane.b32.xlu1 %v2212_v39, %s4911_s17 }
 0x6c0   : > { %2316 = vrot.lane.b32.xlu0 %v2201_v43, %s4912_s18 }
 0x6c3   : > { %2411 = vrot.lane.b32.xlu1 %v2203_v38, %s4912_s18 }
 0x6c4   : > { %2415 = vrot.lane.b32.xlu0 %v2210_v44, %s4911_s17  ;;  %s4918_s17 = smov 8  }
 0x6c7   : > { %2506 = vrot.lane.b32.xlu1 %v2205_v50, %s4912_s18 }
 0x6c8   : > { %2409 = vrot.lane.b32.xlu0 %v2202_v31, %s4912_s18 }
 0x6cb   : > { %2947 = vrot.lane.b32.xlu1 %v5038_v17, %s4914_s28 }
 0x6cc   : > { %2504 = vrot.lane.b32.xlu0 %v2204_v7, %s4912_s18  ;;  %s4919_s18 = smov 16  }
 0x6cf   : > { %2877 = vrot.lane.b32.xlu1 %v5062_v24, %s4915_s25 }
 0x6d0   : > { %2943 = vrot.lane.b32.xlu0 %v5046_v19, %s4914_s28 }
 0x6d3   : > { %2879 = vrot.lane.b32.xlu1 %v5046_v19, %s4915_s25  ;;  %v2226_v19 = vpop.permute.xlu0 %2225 }
 0x6d4   : > { %2941 = vrot.lane.b32.xlu0 %v5062_v24, %s4914_s28 }
 0x6d7   : > { %2883 = vrot.lane.b32.xlu1 %v5038_v17, %s4915_s25  ;;  %v1830_v17 = vpop.xlane.xlu1 %1829 }
 0x6d8   : > { %2945 = vrot.lane.b32.xlu0 %v5054_v22, %s4914_s28  ;;  %4732 = vrcp.f32 %v1830_v17 }
 0x6db   : > { %2955 = vrot.lane.b32.xlu1 %v5070_v26, %s4914_s28 }
 0x6dc   : > { %2881 = vrot.lane.b32.xlu0 %v5054_v22, %s4915_s25  ;;  %v2222_v22 = vpop.permute.xlu1 %2221 }
 0x6df   : > { %2885 = vrot.lane.b32.xlu1 %v5090_v30, %s4915_s25 }
 0x6e0   : > { %2951 = vrot.lane.b32.xlu0 %v5078_v28, %s4914_s28 }
 0x6e3   : > { %2887 = vrot.lane.b32.xlu1 %v5078_v28, %s4915_s25 }
 0x6e4   : > { %2949 = vrot.lane.b32.xlu0 %v5090_v30, %s4914_s28 }
 0x6e5   : > { %v4733_v61 = vpop.eup %4732 }
 0x6e6   : > { %v1860_v58 = vmul.f32 %v4733_v61, %v5600_v32 }
 0x6e7   : > { %2891 = vrot.lane.b32.xlu1 %v5070_v26, %s4915_s25 }
 0x6e8   : > { %2953 = vrot.lane.b32.xlu0 %v5084_v29, %s4914_s28 }
 0x6ec   : > { %2889 = vrot.lane.b32.xlu0 %v5084_v29, %s4915_s25 }
 0x6f1   : > { %v1833_v24 = vpop.xlane.xlu0 %1832 }
 0x6f2   : > { %4734 = vrcp.f32 %v1833_v24 }
 0x6f5   : > { %v1845_v36 = vpop.xlane.xlu0 %1844  ;;  %v1842_v28 = vpop.xlane.xlu1 %1841 }
 0x6f6   : > { %4736 = vrcp.f32 %v1845_v36 }
 0x6f7   : > { %4738 = vrcp.f32 %v1842_v28 }
 0x6fa   : > { %v1839_v30 = vpop.xlane.xlu0 %1838 }
 0x6fb   : > { %4740 = vrcp.f32 %v1839_v30 }
 0x6fe   : > { %v1836_v26 = vpop.xlane.xlu1 %1835  ;;  %v2220_v47 = vpop.permute.xlu0 %2219 }
 0x6ff   : > { %v4735_v20 = vpop.eup %4734  ;;  %4742 = vrcp.f32 %v1836_v26 }
 0x700   : > { %v1861_v45 = vmul.f32 %v4735_v20, %v5616_v59 }
 0x702   : > { %v1868_v29 = vpack.c.bf16 %v1861_v45, %v1860_v58  ;;  %v2418_v39 = vpop.permute.xlu1 %2417 }
 0x703   : > { %v4737_v60 = vpop.eup %4736 }
 0x704   : > { %v4739_v52 = vpop.eup %4738  ;;  %4332 = vmatmul.mubr.msk.bf16.vlgmr.msra.gmra.mxu0 %vm954_vm2, %v1868_v29  ;;  %v1865_v53 = vmul.f32 %v4737_v60, %v5620_v0 }
 0x705   : > { %4342 = vmatpush3.bf16.msra.mxu0 %v5609_v46  ;;  %4343 = vmatprep.mubr.msk.bf16.mxu0 %vm4910_vm3, %v6222_v2  ;;  %v1864_v14 = vmul.f32 %v4739_v52, %v5622_v49 }
 0x706   : > { %4353 = vmatprep.subr.msk.mxu0 %vm449_vm1, %v5597_v48 }
 0x707   : > { %v1870_v62 = vpack.c.bf16 %v1865_v53, %v1864_v14 }
 0x708   : > { %v4741_v32 = vpop.eup %4740 }
 0x709   : > { %v1863_v33 = vmul.f32 %v4741_v32, %v5629_v56 }
 0x70c   : > { %v4743_v59 = vpop.eup %4742  ;;  %4344 = vmatmul.mubr.msk.bf16.vlgmr.msra.gmra.mxu0 %vm954_vm2, %v1870_v62 }
 0x70d   : > { %4354 = vmatpush3.xpose.msk.msra.mxu0 %vm449_vm1, %v5597_v48  ;;  %4357 = vmatprep.mubr.msk.f32.mxu0 %vm449_vm1, %v2220_v47  ;;  %v1862_v46 = vmul.f32 %v4743_v59, %v5634_v3 }
 0x70e   : > { %4355 = vmatprep.subr.msk.mxu0 %vm449_vm1, %v2226_v19 }
 0x70f   : > { %v1869_v49 = vpack.c.bf16 %v1863_v33, %v1862_v46 }
 0x711   : > { %4356 = vmatpush3.xpose.msk.msra.mxu0 %vm449_vm1, %v2226_v19  ;;  %4338 = vmatmul.mubr.msk.bf16.vlgmr.msra.gmra.mxu1 %vm954_vm2, %v1869_v49 }
 0x712   : > { %4348 = vmatpush3.bf16.msra.mxu1 %v5611_v5  ;;  %4367 = vmatprep.subr.msk.mxu0 %vm449_vm1, %v2418_v39 }
 0x713   : > { %4360 = vmatprep.subr.msk.mxu1 %vm449_vm1, %v5613_v6  ;;  %4349 = vmatprep.mubr.msk.bf16.mxu1 %vm4910_vm3, %v6222_v2 }
 0x714   : > { %4358 = vmatmul.mubr.msk.f32.vlgmr.msra.gmra.mxu0 %vm449_vm1, %v2222_v22 }
 0x715   : > { %4368 = vmatpush3.xpose.msk.msra.mxu0 %vm449_vm1, %v2418_v39 }
 0x72f   : > { %v1851_v48 = vpop.xlane.xlu0 %1850 }
 0x730   : > { %4744 = vrcp.f32 %v1851_v48 }
 0x733   : > { %v2315_v0 = vpop.permute.xlu0 %2314  ;;  %v1848_v56 = vpop.xlane.xlu1 %1847 }
 0x734   : > { %4746 = vrcp.f32 %v1848_v56 }
 0x737   : > { %v2317_v3 = vpop.permute.xlu0 %2316  ;;  %v2513_v1 = vpop.permute.xlu1 %2512 }
 0x73b   : > { %v2416_v5 = vpop.permute.xlu0 %2415  ;;  %v2511_v4 = vpop.permute.xlu1 %2510 }
 0x73c   : > { %4369 = vmatprep.subr.msk.mxu0 %vm449_vm1, %v2416_v5 }
 0x73d   : > { %4370 = vmatpush3.xpose.msk.msra.mxu0 %vm449_vm1, %v2416_v5  ;;  %v4745_v43 = vpop.eup %4744 }
 0x73e   : > { %4381 = vmatprep.subr.bf16.mxu0 %v6222_v2  ;;  %v1867_v42 = vmul.f32 %v4745_v43, %v5647_v34 }
 0x73f   : > { %v2410_v55 = vpop.permute.xlu0 %2409  ;;  %v2412_v38 = vpop.permute.xlu1 %2411 }
 0x740   : > { %4371 = vmatprep.mubr.msk.f32.mxu0 %vm449_vm1, %v2410_v55 }
 0x741   : > { %v4747_v8 = vpop.eup %4746  ;;  %4372 = vmatmul.mubr.msk.f32.vlgmr.msra.gmra.mxu0 %vm449_vm1, %v2412_v38 }
 0x742   : > { %v1866_v44 = vmul.f32 %v4747_v8, %v5653_v41  ;;  %4383 = vmatprep.mubr.msk.bf16.mxu0 %vm4910_vm3, %v6222_v2 }
 0x743   : > { %v2505_v37 = vpop.permute.xlu0 %2504  ;;  %v2507_v50 = vpop.permute.xlu1 %2506 }
 0x744   : > { %v1871_v31 = vpack.c.bf16 %v1867_v42, %v1866_v44 }
 0x746   : > { %4350 = vmatmul.mubr.msk.bf16.vlgmr.msra.gmra.mxu1 %vm954_vm2, %v1871_v31 }
 0x747   : > { %4361 = vmatpush3.xpose.msk.msra.mxu1 %vm449_vm1, %v5613_v6  ;;  %v2944_v57 = vpop.permute.xlu0 %2943  ;;  %4364 = vmatprep.mubr.msk.f32.mxu1 %vm449_vm1, %v2315_v0  ;;  %v2948_v7 = vpop.permute.xlu1 %2947 }
 0x748   : > { %4362 = vmatprep.subr.msk.mxu1 %vm449_vm1, %v5643_v35  ;;  %v2968_v34 = vsel %vm449_vm1, %v2944_v57, 0.0  ;;  %v2974_v41 = vsel %vm449_vm1, %v2948_v7, 0.0 }
 0x749   : > { %2969 = vadd.xlane.f32.xlu1 %v2968_v34  ;;  %2975 = vadd.xlane.f32.xlu0 %v2974_v41 }
 0x74b   : > { %4363 = vmatpush3.xpose.msk.msra.mxu1 %vm449_vm1, %v5643_v35  ;;  %v2942_v17 = vpop.permute.xlu0 %2941  ;;  %v2878_v19 = vpop.permute.xlu1 %2877 }
 0x74c   : > { %v2965_v6 = vsel %vm449_vm1, %v2942_v17, 0.0  ;;  %4374 = vmatprep.subr.msk.mxu1 %vm449_vm1, %v2513_v1  ;;  %v2901_v22 = vsel %vm449_vm1, %v2878_v19, 0.0 }
 0x74d   : > { %2966 = vadd.xlane.f32.xlu1 %v2965_v6  ;;  %2902 = vadd.xlane.f32.xlu0 %v2901_v22 }
 0x74e   : > { %4365 = vmatmul.mubr.msk.f32.vlgmr.msra.gmra.mxu1 %vm449_vm1, %v2317_v3 }
 0x74f   : > { %4375 = vmatpush3.xpose.msk.msra.mxu1 %vm449_vm1, %v2513_v1  ;;  %v2946_v24 = vpop.permute.xlu0 %2945  ;;  %4378 = vmatprep.mubr.msk.f32.mxu1 %vm449_vm1, %v2505_v37  ;;  %v2880_v36 = vpop.permute.xlu1 %2879 }
 0x750   : > { %v2971_v35 = vsel %vm449_vm1, %v2946_v24, 0.0  ;;  %4376 = vmatprep.subr.msk.mxu1 %vm449_vm1, %v2511_v4  ;;  %v2904_v28 = vsel %vm449_vm1, %v2880_v36, 0.0 }
 0x751   : > { %2972 = vadd.xlane.f32.xlu1 %v2971_v35  ;;  %2905 = vadd.xlane.f32.xlu0 %v2904_v28 }
 0x753   : > { %4377 = vmatpush3.xpose.msk.msra.mxu1 %vm449_vm1, %v2511_v4  ;;  %v2882_v30 = vpop.permute.xlu0 %2881  ;;  %v2884_v61 = vpop.permute.xlu1 %2883 }
 0x754   : > { %v2907_v26 = vsel %vm449_vm1, %v2882_v30, 0.0  ;;  %v2910_v20 = vsel %vm449_vm1, %v2884_v61, 0.0  ;;  %4387 = vmatprep.subr.bf16.mxu1 %v6222_v2 }
 0x755   : > { %2908 = vadd.xlane.f32.xlu1 %v2907_v26  ;;  %2911 = vadd.xlane.f32.xlu0 %v2910_v20 }
 0x756   : > { %4379 = vmatmul.mubr.msk.f32.vlgmr.msra.gmra.mxu1 %vm449_vm1, %v2507_v50 }
 0x757   : > { %v2952_v58 = vpop.permute.xlu0 %2951  ;;  %v2956_v45 = vpop.permute.xlu1 %2955  ;;  %4389 = vmatprep.mubr.msk.bf16.mxu1 %vm4910_vm3, %v6222_v2 }
 0x758   : > { %v2980_v29 = vsel %vm449_vm1, %v2952_v58, 0.0  ;;  %v2986_v60 = vsel %vm449_vm1, %v2956_v45, 0.0 }
 0x759   : > { %2981 = vadd.xlane.f32.xlu1 %v2980_v29  ;;  %2987 = vadd.xlane.f32.xlu0 %v2986_v60 }
 0x75b   : > { %v2950_v52 = vpop.permute.xlu0 %2949  ;;  %v2886_v14 = vpop.permute.xlu1 %2885 }
 0x75c   : > { %v2977_v53 = vsel %vm449_vm1, %v2950_v52, 0.0  ;;  %v2913_v32 = vsel %vm449_vm1, %v2886_v14, 0.0 }
 0x75d   : > { %2978 = vadd.xlane.f32.xlu1 %v2977_v53  ;;  %2914 = vadd.xlane.f32.xlu0 %v2913_v32 }
 0x75f   : > { %v2954_v62 = vpop.permute.xlu0 %2953  ;;  %v2888_v59 = vpop.permute.xlu1 %2887 }
 0x760   : > { %v2983_v47 = vsel %vm449_vm1, %v2954_v62, 0.0  ;;  %v2916_v46 = vsel %vm449_vm1, %v2888_v59, 0.0 }
 0x761   : > { %2984 = vadd.xlane.f32.xlu1 %v2983_v47  ;;  %2917 = vadd.xlane.f32.xlu0 %v2916_v46  ;;  %v5832_v47 = vstv %s4097_s30 }
 0x763   : > { %v2890_v33 = vpop.permute.xlu0 %2889  ;;  %v2892_v49 = vpop.permute.xlu1 %2891 }
 0x764   : > { %v2919_v39 = vsel %vm449_vm1, %v2890_v33, 0.0  ;;  %v2922_v48 = vsel %vm449_vm1, %v2892_v49, 0.0 }
 0x765   : > { %2920 = vadd.xlane.f32.xlu1 %v2919_v39  ;;  %2923 = vadd.xlane.f32.xlu0 %v2922_v48 }
 0x776   : > { %2689 = vrot.lane.b32.xlu1 %v5228_v9, %s4916_s29 }
 0x77a   : > { %2783 = vrot.lane.b32.xlu1 %v5233_v10, %s4916_s29 }
 0x77b   : > { %2736 = vrot.lane.b32.xlu0 %v5243_v13, %s4916_s29 }
 0x77e   : > { %2830 = vrot.lane.b32.xlu1 %v5238_v11, %s4916_s29 }
 0x7c4   : > { %v5794_v0 = vpop.f32.mrf.mxu0 }
 0x7c6   : > { %v4333_v56 = vpop.f32.mrf.mxu0 }
 0x7c8   : > { %v5796_v3 = vpop.f32.mrf.mxu0 }
 0x7ca   : > { %v4334_v5 = vpop.f32.mrf.mxu0 }
 0x7cc   : > { %v5800_v4 = vpop.f32.mrf.mxu0 }
 0x7ce   : > { %v4345_v43 = vpop.f32.mrf.mxu0 }
 0x7d0   : > { %v5802_v55 = vpop.f32.mrf.mxu0 }
 0x7d1   : > { %v5806_v8 = vpop.f32.mrf.mxu1 }
 0x7d2   : > { %v4346_v44 = vpop.f32.mrf.mxu0  ;;  %v2976_v42 = vpop.xlane.xlu0 %2975 }
 0x7d3   : > { %v2992_v37 = vmax.f32 %v2976_v42, 1e-24  ;;  %v2970_v50 = vpop.xlane.xlu1 %2969  ;;  %v4339_v31 = vpop.f32.mrf.mxu1 }
 0x7d4   : > { %v2990_v57 = vmax.f32 %v2970_v50, 1e-24 }
 0x7d5   : > { %4748 = vrsqrt.f32 %v2992_v37  ;;  %v5808_v7 = vpop.f32.mrf.mxu1  ;;  %v4359_v37 = vpop.f32.mrf.mxu0 }
 0x7d6   : > { %4750 = vrsqrt.f32 %v2990_v57  ;;  %v5812_v41 = vpop.xlane.xlu0 %2902 }
 0x7d7   : > { %v5814_v17 = vpop.xlane.xlu1 %2966  ;;  %v4340_v19 = vpop.f32.mrf.mxu1 }
 0x7d8   : > { %v2303_v57 = vpop.f32.mrf.mxu0  ;;  %v4075_v19 = vld [vmem:[%s6204_s4 + $0x20] sm:$0xff] }
 0x7da   : > { %v5816_v6 = vpop.xlane.xlu0 %2905 }
 0x7db   : > { %v5818_v22 = vpop.xlane.xlu1 %2972 }
 0x7de   : > { %v2912_v24 = vpop.xlane.xlu0 %2911 }
 0x7df   : > { %v2928_v36 = vmax.f32 %v2912_v24, 1e-24  ;;  %v2909_v35 = vpop.xlane.xlu1 %2908 }
 0x7e0   : > { %v2927_v28 = vmax.f32 %v2909_v35, 1e-24 }
 0x7e1   : > { %4752 = vrsqrt.f32 %v2928_v36 }
 0x7e2   : > { %v4749_v30 = vpop.eup %4748  ;;  %4754 = vrsqrt.f32 %v2927_v28  ;;  %v5820_v61 = vpop.xlane.xlu0 %2987  ;;  %v2304_v28 = vadd.f32 %v4075_v19, %v2303_v57 }
 0x7e3   : > { %v4751_v26 = vpop.eup %4750  ;;  %v5822_v20 = vpop.xlane.xlu1 %2981  ;;  %v3026_v58 = vmul.f32 %v4749_v30, %v5030_v12 }
 0x7e4   : > { %v3024_v45 = vmul.f32 %v4751_v26, %v5034_v16  ;;  %v4076_v26 = vld [vmem:[%s6204_s4 + $0x28] sm:$0xff] }
 0x7e5   : > { %3139 = vrot.lane.b32.xlu1 %v3026_v58, %s4914_s28 }
 0x7e6   : > { %3044 = vrot.lane.b32.xlu0 %v3024_v45, %s4914_s28  ;;  %v2915_v29 = vpop.xlane.xlu0 %2914  ;;  %v2309_v45 = vadd.f32 %v4359_v37, %v4076_v26 }
 0x7e7   : > { %v2929_v60 = vmax.f32 %v2915_v29, 1e-24  ;;  %v5828_v52 = vpop.xlane.xlu1 %2978 }
 0x7e9   : > { %4756 = vrsqrt.f32 %v2929_v60  ;;  %v2597_v60 = vsel %vm954_vm2, %v2304_v28, -inf }
 0x7ea   : > { %v2918_v14 = vpop.xlane.xlu0 %2917 }
 0x7eb   : > { %v2930_v53 = vmax.f32 %v2918_v14, 1e-24  ;;  %v5830_v32 = vpop.xlane.xlu1 %2984 }
 0x7ed   : > { %4758 = vrsqrt.f32 %v2930_v53 }
 0x7ee   : > { %v4753_v62 = vpop.eup %4752  ;;  %v2924_v59 = vpop.xlane.xlu0 %2923 }
 0x7ef   : > { %v4755_v46 = vpop.eup %4754  ;;  %v2932_v33 = vmax.f32 %v2924_v59, 1e-24  ;;  %v2921_v49 = vpop.xlane.xlu1 %2920  ;;  %v5835_v39 = vmul.f32 %v4753_v62, %v5832_v47  ;;  %v2991_v62 = vmax.f32 %v5818_v22, 1e-24 }
 0x7f0   : > { %v2931_v48 = vmax.f32 %v2921_v49, 1e-24  ;;  %v5838_v56 = vmul.f32 %v4755_v46, %v5832_v47  ;;  %v2600_v49 = vsel %vm954_vm2, %v2309_v45, -inf }
 0x7f1   : > { %4760 = vrsqrt.f32 %v2932_v33 }
 0x7f2   : > { %4762 = vrsqrt.f32 %v2931_v48  ;;  %v2737_v5 = vpop.permute.xlu0 %2736 }
 0x7f3   : > { %v2690_v43 = vpop.permute.xlu1 %2689  ;;  %4388 = vmatpush3.bf16.msra.mxu1 %v2737_v5  ;;  %4764 = vrsqrt.f32 %v2991_v62 }
 0x7f4   : > { %4382 = vmatpush3.bf16.msra.mxu0 %v2690_v43  ;;  %4399 = vmatprep.subr.bf16.mxu1 %v6222_v2 }
 0x7f5   : > { %4393 = vmatprep.subr.bf16.mxu0 %v6222_v2 }
 0x7f6   : > { %v4757_v44 = vpop.eup %4756 }
 0x7f7   : > { %v5843_v42 = vmul.f32 %v4757_v44, %v5832_v47 }
 0x7fa   : > { %v4759_v50 = vpop.eup %4758 }
 0x7fb   : > { %v5846_v31 = vmul.f32 %v4759_v50, %v5832_v47 }
 0x7fe   : > { %v4761_v24 = vpop.eup %4760 }
 0x7ff   : > { %v4763_v36 = vpop.eup %4762  ;;  %v5852_v35 = vmul.f32 %v4761_v24, %v5832_v47 }
 0x800   : > { %v5855_v30 = vmul.f32 %v4763_v36, %v5832_v47 }
 0x801   : > { %v4373_v58 = vpop.f32.mrf.mxu0 }
 0x802   : > { %v2499_v29 = vadd.f32 %v4373_v58, %v4076_v26 }
 0x803   : > { %v2493_v14 = vpop.f32.mrf.mxu0 }
 0x804   : > { %v5864_v59 = vadd.f32 %v4075_v19, %v2493_v14  ;;  %v2612_v33 = vsel %vm954_vm2, %v2499_v29, -inf  ;;  %v4765_v14 = vpop.eup %4764 }
 0x805   : > { %2598 = vmax.xlane.f32.xlu0 %v2597_v60 }
 0x806   : > { %v5861_v53 = vpop.f32.mrf.mxu1  ;;  %v2609_v44 = vsel %vm954_vm2, %v5864_v59, -inf }
 0x808   : > { %v4351_v46 = vpop.f32.mrf.mxu1 }
 0x809   : > { %2613 = vmax.xlane.f32.xlu0 %v2612_v33  ;;  %2601 = vmax.xlane.f32.xlu1 %v2600_v49  ;;  %v2989_v46 = vmax.f32 %v5814_v17, 1e-24  ;;  %v3025_v33 = vmul.f32 %v4765_v14, %v5032_v15 }
 0x80a   : > { %v5868_v48 = vpop.f32.mrf.mxu1 }
 0x80b   : > { %4766 = vrsqrt.f32 %v2989_v46 }
 0x80c   : > { %v4352_v43 = vpop.f32.mrf.mxu1 }
 0x80d   : > { %2610 = vmax.xlane.f32.xlu1 %v2609_v44 }
 0x80e   : > { %v4366_v22 = vpop.f32.mrf.mxu1 }
 0x80f   : > { %v2404_v37 = vadd.f32 %v4366_v22, %v4076_v26 }
 0x810   : > { %v2398_v50 = vpop.f32.mrf.mxu1 }
 0x811   : > { %v5874_v57 = vadd.f32 %v4075_v19, %v2398_v50  ;;  %v2606_v24 = vsel %vm954_vm2, %v2404_v37, -inf  ;;  %v5892_v50 = vpop.permute.xlu1 %2783 }
 0x812   : > { %2607 = vmax.xlane.f32.xlu0 %v2606_v24 }
 0x813   : > { %v2603_v36 = vsel %vm954_vm2, %v5874_v57, -inf }
 0x815   : > { %v5894_v17 = vpop.permute.xlu1 %2830 }
 0x816   : > { %v4380_v58 = vpop.f32.mrf.mxu1  ;;  %2604 = vmax.xlane.f32.xlu0 %v2603_v36 }
 0x817   : > { %v5879_v60 = vadd.f32 %v4380_v58, %v4076_v26 }
 0x818   : > { %v4767_v49 = vpop.eup %4766  ;;  %v2588_v44 = vpop.f32.mrf.mxu1 }
 0x819   : > { %v2618_v62 = vsel %vm954_vm2, %v5879_v60, -inf  ;;  %v3023_v43 = vmul.f32 %v4767_v49, %v5040_v18  ;;  %v5888_v26 = vadd.f32 %v4075_v19, %v2588_v44 }
 0x81a   : > { %2619 = vmax.xlane.f32.xlu0 %v2618_v62 }
 0x81b   : > { %v2615_v22 = vsel %vm954_vm2, %v5888_v26, -inf }
 0x81e   : > { %3137 = vrot.lane.b32.xlu1 %v3025_v33, %s4914_s28 }
 0x830   : > { %3042 = vrot.lane.b32.xlu0 %v3023_v43, %s4914_s28 }
 0x842   : > { %2616 = vmax.xlane.f32.xlu1 %v2615_v22  ;;  %v2926_v22 = vmax.f32 %v5816_v6, 1e-24 }
 0x857   : > { %v5898_v36 = vpop.permute.xlu1 %3139 }
 0x858   : > { %v5896_v24 = vpop.permute.xlu0 %3044 }
 0x88e   : > { %v2599_v58 = vpop.xlane.xlu0 %2598 }
 0x88f   : > { %v2621_v14 = vsub.f32 %v2304_v28, %v2599_v58 }
 0x891   : > { %v2629_v62 = vmul.f32 1.442695, %v2621_v14 }
 0x892   : > { %v2614_v46 = vpop.xlane.xlu0 %2613  ;;  %v2602_v33 = vpop.xlane.xlu1 %2601 }
 0x893   : > { %4768 = vpow2.f32 %v2629_v62  ;;  %v2626_v19 = vsub.f32 %v2499_v29, %v2614_v46  ;;  %v2622_v49 = vsub.f32 %v2309_v45, %v2602_v33 }
 0x895   : > { %v2631_v43 = vmul.f32 1.442695, %v2622_v49  ;;  %v2639_v44 = vmul.f32 1.442695, %v2626_v19 }
 0x896   : > { %v2611_v46 = vpop.xlane.xlu1 %2610 }
 0x897   : > { %4770 = vpow2.f32 %v2631_v43  ;;  %v2625_v19 = vsub.f32 %v5864_v59, %v2611_v46  ;;  %v2994_v59 = vmax.f32 %v5822_v20, 1e-24 }
 0x898   : > { %4772 = vpow2.f32 %v2639_v44 }
 0x899   : > { %4774 = vrsqrt.f32 %v2926_v22  ;;  %v2637_v43 = vmul.f32 1.442695, %v2625_v19  ;;  %v3017_v19 = vmul.f32 %v5838_v56, %v5032_v15  ;;  %v3021_v15 = vmul.f32 %v5855_v30, %v5064_v25 }
 0x89a   : > { %v2995_v56 = vmax.f32 %v5830_v32, 1e-24  ;;  %v3022_v32 = vmul.f32 %v5852_v35, %v5048_v21 }
 0x89b   : > { %v2608_v5 = vpop.xlane.xlu0 %2607 }
 0x89c   : > { %v2624_v34 = vsub.f32 %v2404_v37, %v2608_v5 }
 0x89e   : > { %v2635_v38 = vmul.f32 1.442695, %v2624_v34  ;;  %v2925_v34 = vmax.f32 %v5812_v41, 1e-24 }
 0x89f   : > { %v2605_v49 = vpop.xlane.xlu0 %2604 }
 0x8a0   : > { %v5901_v1 = vpop.eup %4768  ;;  %4776 = vpow2.f32 %v2635_v38  ;;  %v2623_v44 = vsub.f32 %v5874_v57, %v2605_v49 }
 0x8a1   : > { %v2645_v28 = vsel %vm954_vm2, %v5901_v1, 0.0  ;;  %4778 = vrsqrt.f32 %v2925_v34 }
 0x8a2   : > { %2646 = vadd.xlane.f32.xlu1 %v2645_v28  ;;  %4780 = vpow2.f32 %v2637_v43  ;;  %v2633_v28 = vmul.f32 1.442695, %v2623_v44 }
 0x8a4   : > { %v5905_v58 = vpop.eup %4770  ;;  %4782 = vpow2.f32 %v2633_v28 }
 0x8a5   : > { %v2648_v45 = vsel %vm954_vm2, %v5905_v58, 0.0  ;;  %v5909_v29 = vpop.eup %4772 }
 0x8a6   : > { %2649 = vadd.xlane.f32.xlu0 %v2648_v45  ;;  %v4775_v6 = vpop.eup %4774  ;;  %v2660_v5 = vsel %vm954_vm2, %v5909_v29, 0.0  ;;  %v2620_v45 = vpop.xlane.xlu0 %2619 }
 0x8a7   : > { %v3008_v37 = vmul.f32 %v4775_v6, %v5832_v47 }
 0x8a9   : > { %v3016_v62 = vmul.f32 %v3008_v37, %v5034_v16  ;;  %v2628_v16 = vsub.f32 %v5879_v60, %v2620_v45 }
 0x8aa   : > { %2661 = vadd.xlane.f32.xlu0 %v2660_v5  ;;  %v3043_v28 = vpop.permute.xlu0 %3042 }
 0x8ab   : > { %v2643_v6 = vmul.f32 1.442695, %v2628_v16 }
 0x8ad   : > { %v5914_v38 = vpop.eup %4776  ;;  %4784 = vpow2.f32 %v2643_v6 }
 0x8ae   : > { %v2654_v14 = vsel %vm954_vm2, %v5914_v38, 0.0  ;;  %v4779_v33 = vpop.eup %4778  ;;  %4786 = vrsqrt.f32 %v2994_v59 }
 0x8af   : > { %2655 = vadd.xlane.f32.xlu0 %v2654_v14  ;;  %v3007_v41 = vmul.f32 %v4779_v33, %v5832_v47  ;;  %v5927_v5 = vpop.eup %4780  ;;  %v2993_v14 = vmax.f32 %v5828_v52, 1e-24 }
 0x8b0   : > { %v2657_v47 = vsel %vm954_vm2, %v5927_v5, 0.0 }
 0x8b1   : > { %v3015_v22 = vmul.f32 %v3007_v41, %v5040_v18  ;;  %v5932_v57 = vpop.eup %4782  ;;  %4788 = vrsqrt.f32 %v2993_v14  ;;  %v3018_v41 = vmul.f32 %v5835_v39, %v5030_v12  ;;  %v2996_v12 = vmax.f32 %v5820_v61, 1e-24 }
 0x8b2   : > { %v2651_v18 = vsel %vm954_vm2, %v5932_v57, 0.0  ;;  %v3020_v61 = vmul.f32 %v5846_v31, %v5056_v23 }
 0x8b3   : > { %3038 = vrot.lane.b32.xlu1 %v3016_v62, %s4915_s25  ;;  %v5943_v62 = vpop.permute.xlu1 %3137 }
 0x8ba   : > { %v5936_v34 = vpop.eup %4784 }
 0x8bb   : > { %v2666_v60 = vsel %vm954_vm2, %v5936_v34, 0.0  ;;  %v4787_v37 = vpop.eup %4786 }
 0x8bc   : > { %v3028_v20 = vmul.f32 %v4787_v37, %v5056_v23 }
 0x8be   : > { %v4789_v43 = vpop.eup %4788 }
 0x8bf   : > { %v3027_v52 = vmul.f32 %v4789_v43, %v5072_v27 }
 0x8c5   : > { %3036 = vrot.lane.b32.xlu0 %v3015_v22, %s4915_s25 }
 0x8cb   : > { %v2617_v46 = vpop.xlane.xlu1 %2616 }
 0x8cc   : > { %v2627_v33 = vsub.f32 %v5888_v26, %v2617_v46  ;;  %v3019_v26 = vmul.f32 %v5843_v42, %v5072_v27 }
 0x8ce   : > { %v2641_v49 = vmul.f32 1.442695, %v2627_v33 }
 0x8d0   : > { %4790 = vpow2.f32 %v2641_v49 }
 0x8d1   : > { %4792 = vrsqrt.f32 %v2996_v12 }
 0x8d2   : > { %4794 = vrsqrt.f32 %v2995_v56 }
 0x8d7   : > { %2658 = vadd.xlane.f32.xlu1 %v2657_v47 }
 0x8db   : > { %2652 = vadd.xlane.f32.xlu1 %v2651_v18 }
 0x8dd   : > { %v5961_v39 = vpop.eup %4790 }
 0x8de   : > { %v2663_v44 = vsel %vm954_vm2, %v5961_v39, 0.0  ;;  %v4793_v27 = vpop.eup %4792 }
 0x8df   : > { %v3030_v42 = vmul.f32 %v4793_v27, %v5048_v21  ;;  %v4795_v22 = vpop.eup %4794 }
 0x8e0   : > { %v3029_v30 = vmul.f32 %v4795_v22, %v5064_v25 }
 0x8e4   : > { %2667 = vadd.xlane.f32.xlu0 %v2666_v60 }
 0x8ec   : > { %3234 = vrot.lane.b32.xlu1 %v3028_v20, %s4914_s28 }
 0x8fa   : > { %3131 = vrot.lane.b32.xlu0 %v3017_v19, %s4915_s25 }
 0x8fe   : > { %3133 = vrot.lane.b32.xlu0 %v3018_v41, %s4915_s25 }
 0x902   : > { %3232 = vrot.lane.b32.xlu0 %v3027_v52, %s4914_s28 }
 0x906   : > { %3226 = vrot.lane.b32.xlu0 %v3019_v26, %s4915_s25 }
 0x90a   : > { %3321 = vrot.lane.b32.xlu0 %v3021_v15, %s4915_s25 }
 0x910   : > { %2664 = vadd.xlane.f32.xlu1 %v2663_v44 }
 0x921   : > { %3329 = vrot.lane.b32.xlu1 %v3030_v42, %s4914_s28 }
 0x925   : > { %3327 = vrot.lane.b32.xlu1 %v3029_v30, %s4914_s28  ;;  %s309_s28 = scalar_lea.vmem %s6207_s7, %s4019_s21 }
 0x929   : > { %3228 = vrot.lane.b32.xlu1 %v3020_v61, %s4915_s25 }
 0x92b   : > { %v2647_v45 = vpop.xlane.xlu1 %2646 }
 0x92c   : > { %4796 = vrcp.f32 %v2647_v45 }
 0x92d   : > { %3323 = vrot.lane.b32.xlu1 %v3022_v32, %s4915_s25 }
 0x92f   : > { %v2650_v16 = vpop.xlane.xlu0 %2649  ;;  %v3039_v23 = vpop.permute.xlu1 %3038 }
 0x930   : > { %4798 = vrcp.f32 %v2650_v16 }
 0x933   : > { %v2662_v21 = vpop.xlane.xlu0 %2661 }
 0x934   : > { %4800 = vrcp.f32 %v2662_v21 }
 0x938   : > { %v2656_v31 = vpop.xlane.xlu0 %2655 }
 0x939   : > { %v4797_v6 = vpop.eup %4796 }
 0x93a   : > { %v2677_v25 = vmul.f32 %v4797_v6, %v5901_v1 }
 0x93d   : > { %v4799_v59 = vpop.eup %4798 }
 0x93e   : > { %v2678_v47 = vmul.f32 %v4799_v59, %v5905_v58  ;;  %v3037_v58 = vpop.permute.xlu0 %3036 }
 0x940   : > { %v2685_v18 = vpack.c.bf16 %v2678_v47, %v2677_v25  ;;  %v4099_v47 = vld [vmem:[%s6204_s4 + $0x38] sm:$0xff] }
 0x941   : > { %v4801_v60 = vpop.eup %4800 }
 0x942   : > { %4384 = vmatmul.mubr.msk.bf16.vlgmr.msra.gmra.mxu0 %vm954_vm2, %v2685_v18  ;;  %v2682_v14 = vmul.f32 %v4801_v60, %v5909_v29 }
 0x943   : > { %4394 = vmatpush3.bf16.msra.mxu0 %v5892_v50  ;;  %4395 = vmatprep.mubr.msk.bf16.mxu0 %vm4910_vm3, %v6222_v2 }
 0x944   : > { %4405 = vmatprep.subr.msk.mxu0 %vm449_vm1, %v5896_v24 }
 0x960   : > { %v2659_v35 = vpop.xlane.xlu1 %2658 }
 0x961   : > { %4802 = vrcp.f32 %v2659_v35 }
 0x962   : > { %4804 = vrcp.f32 %v2656_v31 }
 0x964   : > { %v2653_v1 = vpop.xlane.xlu1 %2652 }
 0x965   : > { %4806 = vrcp.f32 %v2653_v1 }
 0x968   : > { %v3235_v29 = vpop.permute.xlu1 %3234 }
 0x96d   : > { %v2668_v37 = vpop.xlane.xlu0 %2667 }
 0x96e   : > { %v4803_v20 = vpop.eup %4802  ;;  %4808 = vrcp.f32 %v2668_v37 }
 0x96f   : > { %v2681_v50 = vmul.f32 %v4803_v20, %v5927_v5  ;;  %v4805_v46 = vpop.eup %4804 }
 0x970   : > { %v2680_v43 = vmul.f32 %v4805_v46, %v5914_v38 }
 0x971   : > { %v3132_v33 = vpop.permute.xlu0 %3131  ;;  %v2687_v19 = vpack.c.bf16 %v2682_v14, %v2681_v50 }
 0x972   : > { %v4807_v49 = vpop.eup %4806 }
 0x973   : > { %4396 = vmatmul.mubr.msk.bf16.vlgmr.msra.gmra.mxu0 %vm954_vm2, %v2687_v19  ;;  %v2679_v41 = vmul.f32 %v4807_v49, %v5932_v57 }
 0x974   : > { %4406 = vmatpush3.xpose.msk.msra.mxu0 %vm449_vm1, %v5896_v24  ;;  %4409 = vmatprep.mubr.msk.f32.mxu0 %vm449_vm1, %v3037_v58 }
 0x975   : > { %4407 = vmatprep.subr.msk.mxu0 %vm449_vm1, %v3043_v28  ;;  %v3134_v5 = vpop.permute.xlu0 %3133  ;;  %v2686_v52 = vpack.c.bf16 %v2680_v43, %v2679_v41 }
 0x977   : > { %4390 = vmatmul.mubr.msk.bf16.vlgmr.msra.gmra.mxu1 %vm954_vm2, %v2686_v52 }
 0x978   : > { %4400 = vmatpush3.bf16.msra.mxu1 %v5894_v17  ;;  %4408 = vmatpush3.xpose.msk.msra.mxu0 %vm449_vm1, %v3043_v28 }
 0x979   : > { %4412 = vmatprep.subr.msk.mxu1 %vm449_vm1, %v5898_v36  ;;  %4419 = vmatprep.subr.msk.mxu0 %vm449_vm1, %v3235_v29  ;;  %v3233_v38 = vpop.permute.xlu0 %3232 }
 0x97a   : > { %4401 = vmatprep.mubr.msk.bf16.mxu1 %vm4910_vm3, %v6222_v2 }
 0x97b   : > { %4410 = vmatmul.mubr.msk.f32.vlgmr.msra.gmra.mxu0 %vm449_vm1, %v3039_v23  ;;  %v4809_v15 = vpop.eup %4808  ;;  %v4098_v23 = vld [vmem:[%s6204_s4 + $0x30] sm:$0xff] }
 0x97c   : > { %4420 = vmatpush3.xpose.msk.msra.mxu0 %vm449_vm1, %v3235_v29  ;;  %v2684_v27 = vmul.f32 %v4809_v15, %v5936_v34 }
 0x97d   : > { %4421 = vmatprep.subr.msk.mxu0 %vm449_vm1, %v3233_v38  ;;  %v3227_v24 = vpop.permute.xlu0 %3226 }
 0x97e   : > { %4423 = vmatprep.mubr.msk.f32.mxu0 %vm449_vm1, %v3227_v24 }
 0x980   : > { %4422 = vmatpush3.xpose.msk.msra.mxu0 %vm449_vm1, %v3233_v38 }
 0x981   : > { %4433 = vmatprep.subr.bf16.mxu0 %v6222_v2  ;;  %v3322_v22 = vpop.permute.xlu0 %3321 }
 0x999   : > { %v2665_v17 = vpop.xlane.xlu1 %2664 }
 0x99a   : > { %4810 = vrcp.f32 %v2665_v17 }
 0x99d   : > { %v3330_v57 = vpop.permute.xlu1 %3329 }
 0x9a1   : > { %v3328_v26 = vpop.permute.xlu1 %3327 }
 0x9a5   : > { %v3229_v12 = vpop.permute.xlu1 %3228 }
 0x9a6   : > { %4424 = vmatmul.mubr.msk.f32.vlgmr.msra.gmra.mxu0 %vm449_vm1, %v3229_v12 }
 0x9a7   : > { %v4811_v56 = vpop.eup %4810  ;;  %4435 = vmatprep.mubr.msk.bf16.mxu0 %vm4910_vm3, %v6222_v2 }
 0x9a8   : > { %v2683_v44 = vmul.f32 %v4811_v56, %v5961_v39 }
 0x9aa   : > { %v2688_v42 = vpack.c.bf16 %v2684_v27, %v2683_v44 }
 0x9ac   : > { %4402 = vmatmul.mubr.msk.bf16.vlgmr.msra.gmra.mxu1 %vm954_vm2, %v2688_v42 }
 0x9ad   : > { %4413 = vmatpush3.xpose.msk.msra.mxu1 %vm449_vm1, %v5898_v36  ;;  %4416 = vmatprep.mubr.msk.f32.mxu1 %vm449_vm1, %v3132_v33  ;;  %v3324_v36 = vpop.permute.xlu1 %3323 }
 0x9ae   : > { %4414 = vmatprep.subr.msk.mxu1 %vm449_vm1, %v5943_v62 }
 0x9b1   : > { %4415 = vmatpush3.xpose.msk.msra.mxu1 %vm449_vm1, %v5943_v62 }
 0x9b2   : > { %4426 = vmatprep.subr.msk.mxu1 %vm449_vm1, %v3330_v57 }
 0x9b4   : > { %4417 = vmatmul.mubr.msk.f32.vlgmr.msra.gmra.mxu1 %vm449_vm1, %v3134_v5 }
 0x9b5   : > { %4427 = vmatpush3.xpose.msk.msra.mxu1 %vm449_vm1, %v3330_v57  ;;  %4430 = vmatprep.mubr.msk.f32.mxu1 %vm449_vm1, %v3322_v22 }
 0x9b6   : > { %4428 = vmatprep.subr.msk.mxu1 %vm449_vm1, %v3328_v26 }
 0x9b9   : > { %4429 = vmatpush3.xpose.msk.msra.mxu1 %vm449_vm1, %v3328_v26 }
 0x9ba   : > { %4439 = vmatprep.subr.bf16.mxu1 %v6222_v2 }
 0x9bc   : > { %4431 = vmatmul.mubr.msk.f32.vlgmr.msra.gmra.mxu1 %vm449_vm1, %v3324_v36 }
 0x9bd   : > { %4441 = vmatprep.mubr.msk.bf16.mxu1 %vm4910_vm3, %v6222_v2 }
 0xa02   : > { %v6030_v34 = vpop.f32.mrf.mxu0 }
 0xa04   : > { %v4385_v62 = vpop.f32.mrf.mxu0 }
 0xa06   : > { %v6032_v39 = vpop.f32.mrf.mxu0 }
 0xa07   : > { %v4530_v30 = vpack.i.bf16 %v6032_v39, %v6030_v34 }
 0xa08   : > { %v4386_v61 = vpop.f32.mrf.mxu0 }
 0xa33   : > { %v6036_v32 = vpop.f32.mrf.mxu0 }
 0xa35   : > { %v4397_v28 = vpop.f32.mrf.mxu0 }
 0xa37   : > { %v6038_v45 = vpop.f32.mrf.mxu1  ;;  %v6040_v16 = vpop.f32.mrf.mxu0 }
 0xa38   : > { %v4555_v6 = vpack.i.bf16 %v6040_v16, %v6036_v32 }
 0xa39   : > { %v4391_v59 = vpop.f32.mrf.mxu1  ;;  %v4398_v25 = vpop.f32.mrf.mxu0 }
 0xa3b   : > { %v6047_v18 = vpop.f32.mrf.mxu1  ;;  %v4411_v21 = vpop.f32.mrf.mxu0 }
 0xa3c   : > { %v4535_v31 = vpack.i.bf16 %v6047_v18, %v6038_v45  ;;  %v3126_v35 = vadd.f32 %v4411_v21, %v4099_v47 }
 0xa3d   : > { %v4392_v1 = vpop.f32.mrf.mxu1  ;;  %v3120_v58 = vpop.f32.mrf.mxu0 }
 0xa3e   : > { %v3121_v60 = vadd.f32 %v4098_v23, %v3120_v58  ;;  %v3417_v37 = vsel %vm954_vm2, %v3126_v35, -inf }
 0xa3f   : > { %3418 = vmax.xlane.f32.xlu1 %v3417_v37 }
 0xa40   : > { %v3414_v20 = vsel %vm954_vm2, %v3121_v60, -inf }
 0xa41   : > { %3415 = vmax.xlane.f32.xlu0 %v3414_v20 }
 0xa66   : > { %v4425_v50 = vpop.f32.mrf.mxu0 }
 0xa67   : > { %v3316_v57 = vadd.f32 %v4425_v50, %v4099_v47 }
 0xa68   : > { %v3310_v14 = vpop.f32.mrf.mxu0 }
 0xa69   : > { %v3311_v46 = vadd.f32 %v4098_v23, %v3310_v14  ;;  %v3429_v27 = vsel %vm954_vm2, %v3316_v57, -inf }
 0xa6b   : > { %v3426_v33 = vsel %vm954_vm2, %v3311_v46, -inf }
 0xa6c   : > { %v6057_v19 = vpop.f32.mrf.mxu1  ;;  %3427 = vmax.xlane.f32.xlu1 %v3426_v33 }
 0xa6e   : > { %v4403_v49 = vpop.f32.mrf.mxu1 }
 0xa70   : > { %v6059_v41 = vpop.f32.mrf.mxu1 }
 0xa71   : > { %v4565_v43 = vpack.i.bf16 %v6059_v41, %v6057_v19 }
 0xa72   : > { %v4404_v5 = vpop.f32.mrf.mxu1 }
 0xa74   : > { %v4418_v52 = vpop.f32.mrf.mxu1 }
 0xa75   : > { %v3221_v29 = vadd.f32 %v4418_v52, %v4099_v47 }
 0xa76   : > { %v3215_v38 = vpop.f32.mrf.mxu1 }
 0xa77   : > { %v3216_v24 = vadd.f32 %v4098_v23, %v3215_v38  ;;  %v3423_v17 = vsel %vm954_vm2, %v3221_v29, -inf }
 0xa78   : > { %3424 = vmax.xlane.f32.xlu0 %v3423_v17 }
 0xa79   : > { %v3420_v26 = vsel %vm954_vm2, %v3216_v24, -inf }
 0xa7c   : > { %v4432_v15 = vpop.f32.mrf.mxu1  ;;  %3421 = vmax.xlane.f32.xlu0 %v3420_v26 }
 0xa7d   : > { %v3411_v56 = vadd.f32 %v4432_v15, %v4099_v47 }
 0xa7e   : > { %v3405_v12 = vpop.f32.mrf.mxu1 }
 0xa7f   : > { %v6065_v44 = vadd.f32 %v4098_v23, %v3405_v12  ;;  %v3435_v22 = vsel %vm954_vm2, %v3411_v56, -inf }
 0xa80   : > { %3430 = vmax.xlane.f32.xlu0 %v3429_v27 }
 0xa81   : > { %v3432_v42 = vsel %vm954_vm2, %v6065_v44, -inf }
 0xa82   : > { %3433 = vmax.xlane.f32.xlu1 %v3432_v42 }
 0xa84   : > { %3436 = vmax.xlane.f32.xlu0 %v3435_v22 }
 0xa93   : > { %3506 = vrot.lane.b32.xlu1 %v5228_v9, %s4917_s16 }
 0xac8   : > { %v3419_v36 = vpop.xlane.xlu1 %3418 }
 0xac9   : > { %v3439_v62 = vsub.f32 %v3126_v35, %v3419_v36 }
 0xaca   : > { %v3416_v61 = vpop.xlane.xlu0 %3415 }
 0xacb   : > { %v3448_v28 = vmul.f32 1.442695, %v3439_v62  ;;  %v3438_v59 = vsub.f32 %v3121_v60, %v3416_v61 }
 0xacd   : > { %4812 = vpow2.f32 %v3448_v28  ;;  %v3446_v25 = vmul.f32 1.442695, %v3438_v59  ;;  %v6223_v59 = vpack.i.bf16 %v5796_v3, %v5794_v0 }
 0xacf   : > { %4814 = vpow2.f32 %v3446_v25 }
 0xada   : > { %v6073_v47 = vpop.eup %4812 }
 0xadb   : > { %v3465_v21 = vsel %vm954_vm2, %v6073_v47, 0.0 }
 0xadc   : > { %v6077_v23 = vpop.eup %4814  ;;  %3466 = vadd.xlane.f32.xlu0 %v3465_v21 }
 0xadd   : > { %v3462_v1 = vsel %vm954_vm2, %v6077_v23, 0.0 }
 0xade   : > { %3463 = vadd.xlane.f32.xlu1 %v3462_v1 }
 0xaf5   : > { %v3428_v9 = vpop.xlane.xlu1 %3427 }
 0xaf6   : > { %v3442_v35 = vsub.f32 %v3311_v46, %v3428_v9 }
 0xaf8   : > { %v3454_v58 = vmul.f32 1.442695, %v3442_v35 }
 0xafa   : > { %4816 = vpow2.f32 %v3454_v58 }
 0xb01   : > { %v3425_v60 = vpop.xlane.xlu0 %3424 }
 0xb02   : > { %v3441_v14 = vsub.f32 %v3221_v29, %v3425_v60 }
 0xb04   : > { %v3452_v17 = vmul.f32 1.442695, %v3441_v14 }
 0xb05   : > { %v3422_v37 = vpop.xlane.xlu0 %3421 }
 0xb06   : > { %v3440_v20 = vsub.f32 %v3216_v24, %v3422_v37 }
 0xb07   : > { %v6081_v50 = vpop.eup %4816 }
 0xb08   : > { %v3450_v33 = vmul.f32 1.442695, %v3440_v20  ;;  %v3474_v49 = vsel %vm954_vm2, %v6081_v50, 0.0 }
 0xb09   : > { %v3431_v5 = vpop.xlane.xlu0 %3430  ;;  %3475 = vadd.xlane.f32.xlu1 %v3474_v49 }
 0xb0a   : > { %4818 = vpow2.f32 %v3450_v33  ;;  %v3443_v52 = vsub.f32 %v3316_v57, %v3431_v5 }
 0xb0b   : > { %v3434_v38 = vpop.xlane.xlu1 %3433 }
 0xb0c   : > { %v3456_v26 = vmul.f32 1.442695, %v3443_v52  ;;  %v3444_v61 = vsub.f32 %v6065_v44, %v3434_v38 }
 0xb0d   : > { %v3437_v46 = vpop.xlane.xlu0 %3436 }
 0xb0e   : > { %4820 = vpow2.f32 %v3456_v26  ;;  %v3445_v15 = vsub.f32 %v3411_v56, %v3437_v46  ;;  %v3458_v28 = vmul.f32 1.442695, %v3444_v61 }
 0xb0f   : > { %v3507_v12 = vpop.permute.xlu1 %3506  ;;  %4822 = vpow2.f32 %v3452_v17 }
 0xb10   : > { %v3460_v24 = vmul.f32 1.442695, %v3445_v15  ;;  %4434 = vmatpush3.bf16.msra.mxu0 %v3507_v12 }
 0xb11   : > { %4445 = vmatprep.subr.bf16.mxu0 %v6222_v2 }
 0xb12   : > { %4824 = vpow2.f32 %v3460_v24  ;;  %v4587_v24 = vld [vmem:[#allocation5] sm:$0xff]  }
 0xb13   : > { %4826 = vpow2.f32 %v3458_v28 }
 0xb17   : > { %v4819_v29 = vpop.eup %4818 }
 0xb18   : > { %v3468_v27 = vsel %vm954_vm2, %v4819_v29, 0.0 }
 0xb19   : > { %3469 = vadd.xlane.f32.xlu1 %v3468_v27 }
 0xb1b   : > { %v4821_v42 = vpop.eup %4820 }
 0xb1c   : > { %v3477_v57 = vsel %vm954_vm2, %v4821_v42, 0.0  ;;  %v4823_v22 = vpop.eup %4822 }
 0xb1d   : > { %3478 = vadd.xlane.f32.xlu0 %v3477_v57  ;;  %v3471_v36 = vsel %vm954_vm2, %v4823_v22, 0.0 }
 0xb1f   : > { %v6089_v62 = vpop.eup %4824 }
 0xb20   : > { %v3483_v56 = vsel %vm954_vm2, %v6089_v62, 0.0  ;;  %v4827_v44 = vpop.eup %4826 }
 0xb21   : > { %3472 = vadd.xlane.f32.xlu0 %v3471_v36  ;;  %v3480_v25 = vsel %vm954_vm2, %v4827_v44, 0.0 }
 0xb25   : > { %3484 = vadd.xlane.f32.xlu0 %v3483_v56 }
 0xb2a   : > { %3600 = vrot.lane.b32.xlu1 %v5233_v10, %s4917_s16  ;;  %v6224_v10 = vpack.i.bf16 %v5802_v55, %v5800_v4  ;;  %v6226_v4 = vpack.i.bf16 %v5868_v48, %v5861_v53 }
 0xb3b   : > { %3553 = vrot.lane.b32.xlu0 %v5243_v13, %s4917_s16  ;;  %v6225_v13 = vpack.i.bf16 %v5808_v7, %v5806_v8 }
 0xb3f   : > { %4521 = vrot.lane.b32.xlu0 %v6223_v59, %s4918_s17 }
 0xb43   : > { %4531 = vrot.lane.b32.xlu0 %v4530_v30, %s4919_s18 }
 0xb47   : > { %4541 = vrot.lane.b32.xlu0 %v6224_v10, %s4918_s17 }
 0xb4e   : > { %3481 = vadd.xlane.f32.xlu1 %v3480_v25 }
 0xb5f   : > { %3647 = vrot.lane.b32.xlu1 %v5238_v11, %s4917_s16 }
 0xb63   : > { %4526 = vrot.lane.b32.xlu1 %v6225_v13, %s4918_s17 }
 0xb65   : > { %v3467_v0 = vpop.xlane.xlu0 %3466 }
 0xb66   : > { %4828 = vrcp.f32 %v3467_v0 }
 0xb67   : > { %4536 = vrot.lane.b32.xlu1 %v4535_v31, %s4919_s18  ;;  %v3464_v3 = vpop.xlane.xlu1 %3463 }
 0xb68   : > { %4830 = vrcp.f32 %v3464_v3 }
 0xb6b   : > { %4546 = vrot.lane.b32.xlu1 %v6226_v4, %s4918_s17 }
 0xb73   : > { %v4829_v55 = vpop.eup %4828 }
 0xb74   : > { %v3495_v8 = vmul.f32 %v4829_v55, %v6073_v47 }
 0xb75   : > { %v4831_v34 = vpop.eup %4830 }
 0xb76   : > { %v3494_v11 = vmul.f32 %v4831_v34, %v6077_v23 }
 0xb78   : > { %v3502_v7 = vpack.c.bf16 %v3495_v8, %v3494_v11 }
 0xb7a   : > { %4436 = vmatmul.mubr.msk.bf16.vlgmr.msra.gmra.mxu0 %vm954_vm2, %v3502_v7 }
 0xb7b   : > { %4447 = vmatprep.mubr.msk.bf16.mxu0 %vm4910_vm3, %v6222_v2 }
 0xb92   : > { %v3476_v39 = vpop.xlane.xlu1 %3475 }
 0xb93   : > { %4832 = vrcp.f32 %v3476_v39 }
 0xba0   : > { %v4833_v31 = vpop.eup %4832 }
 0xba1   : > { %v3498_v23 = vmul.f32 %v4833_v31, %v6081_v50 }
 0xba2   : > { %v3470_v30 = vpop.xlane.xlu1 %3469 }
 0xba6   : > { %v3479_v45 = vpop.xlane.xlu0 %3478  ;;  %v3601_v18 = vpop.permute.xlu1 %3600 }
 0xba7   : > { %4834 = vrcp.f32 %v3479_v45  ;;  %4446 = vmatpush3.bf16.msra.mxu0 %v3601_v18 }
 0xba8   : > { %4836 = vrcp.f32 %v3470_v30 }
 0xbaa   : > { %v3473_v53 = vpop.xlane.xlu0 %3472 }
 0xbab   : > { %4838 = vrcp.f32 %v3473_v53 }
 0xbae   : > { %v3485_v48 = vpop.xlane.xlu0 %3484 }
 0xbaf   : > { %4840 = vrcp.f32 %v3485_v48 }
 0xbb2   : > { %v3554_v21 = vpop.permute.xlu0 %3553 }
 0xbb3   : > { %4440 = vmatpush3.bf16.msra.mxu1 %v3554_v21 }
 0xbb4   : > { %v4835_v47 = vpop.eup %4834  ;;  %4451 = vmatprep.subr.bf16.mxu1 %v6222_v2 }
 0xbb5   : > { %v3499_v1 = vmul.f32 %v4835_v47, %v4821_v42  ;;  %v4837_v9 = vpop.eup %4836 }
 0xbb6   : > { %v3496_v60 = vmul.f32 %v4837_v9, %v4819_v29  ;;  %v4522_v32 = vpop.permute.xlu0 %4521 }
 0xbb7   : > { %v3504_v35 = vpack.c.bf16 %v3499_v1, %v3498_v23  ;;  %v4524_v13 = vunpack.i.h.bf16 %v4522_v32  ;;  %v4523_v0 = vunpack.i.l.bf16 %v4522_v32  ;;  %v6230_v32 = vld [vmem:[#allocation10_spill] sm:$0xff] }
 0xbb8   : > { %v4839_v58 = vpop.eup %4838 }
 0xbb9   : > { %4448 = vmatmul.mubr.msk.bf16.vlgmr.msra.gmra.mxu0 %vm954_vm2, %v3504_v35  ;;  %v3497_v37 = vmul.f32 %v4839_v58, %v4823_v22  ;;  %v3791_v19 = vsel %vm449_vm1, %v5516_v54, %v4524_v13  ;;  %v3790_v41 = vsel %vm449_vm1, %v5514_v51, %v4523_v0 }
 0xbba   : > { %v4532_v16 = vpop.permute.xlu0 %4531 }
 0xbbb   : > { %v3503_v20 = vpack.c.bf16 %v3497_v37, %v3496_v60  ;;  %v4534_v4 = vunpack.i.h.bf16 %v4532_v16  ;;  %v4533_v55 = vunpack.i.l.bf16 %v4532_v16 }
 0xbbc   : > { %v4841_v50 = vpop.eup %4840 }
 0xbbd   : > { %4442 = vmatmul.mubr.msk.bf16.vlgmr.msra.gmra.mxu1 %vm954_vm2, %v3503_v20  ;;  %v3501_v52 = vmul.f32 %v4841_v50, %v6089_v62  ;;  %v3798_v8 = vsel %vm954_vm2, %v3790_v41, %v4533_v55  ;;  %v3799_v7 = vsel %vm954_vm2, %v3791_v19, %v4534_v4 }
 0xbbe   : > { %4453 = vmatprep.mubr.msk.bf16.mxu1 %vm4910_vm3, %v6222_v2  ;;  %v4586_v2 = vld [vmem:[#allocation5 + $0x8] sm:$0xff]  }
 0xbbf   : > { %4457 = vmatprep.subr.bf16.mxu0 %v4586_v2 }
 0xbc0   : > { %4458 = vmatpush3.bf16.msra.mxu0 %v4586_v2 }
 0xbc1   : > { %4459 = vmatprep.subr.bf16.mxu0 %v4587_v24 }
 0xbc4   : > { %4460 = vmatpush3.bf16.msra.mxu0 %v4587_v24 }
 0xbd7   : > { %v3482_v14 = vpop.xlane.xlu1 %3481 }
 0xbd8   : > { %4842 = vrcp.f32 %v3482_v14 }
 0xbdb   : > { %v3648_v33 = vpop.permute.xlu1 %3647 }
 0xbdc   : > { %4452 = vmatpush3.bf16.msra.mxu1 %v3648_v33  ;;  %v6227_v33 = vld [vmem:[#allocation9_spill] sm:$0xff] }
 0xbdf   : > { %v4527_v18 = vpop.permute.xlu1 %4526 }
 0xbe0   : > { %v4529_v21 = vunpack.i.h.bf16 %v4527_v18  ;;  %v4528_v51 = vunpack.i.l.bf16 %v4527_v18 }
 0xbe2   : > { %v3793_v50 = vsel %vm449_vm1, %v6227_v33, %v4529_v21 }
 0xbe3   : > { %v4537_v53 = vpop.permute.xlu1 %4536 }
 0xbe4   : > { %v4539_v35 = vunpack.i.h.bf16 %v4537_v53  ;;  %v4538_v58 = vunpack.i.l.bf16 %v4537_v53 }
 0xbe5   : > { %v4843_v49 = vpop.eup %4842 }
 0xbe6   : > { %v3500_v5 = vmul.f32 %v4843_v49, %v4827_v44  ;;  %v4542_v44 = vpop.permute.xlu0 %4541  ;;  %v6228_v49 = vld [vmem:[#allocation8_spill] sm:$0xff] }
 0xbe7   : > { %v4544_v54 = vunpack.i.h.bf16 %v4542_v44  ;;  %v4543_v31 = vunpack.i.l.bf16 %v4542_v44  ;;  %v4547_v47 = vpop.permute.xlu1 %4546 }
 0xbe8   : > { %v3505_v38 = vpack.c.bf16 %v3501_v52, %v3500_v5  ;;  %v3792_v5 = vsel %vm449_vm1, %v6228_v49, %v4528_v51 }
 0xbe9   : > { %v3795_v20 = vsel %vm449_vm1, %v5520_v40, %v4544_v54  ;;  %v3794_v14 = vsel %vm449_vm1, %v5518_v63, %v4543_v31  ;;  %v3801_v40 = vsel %vm954_vm2, %v3793_v50, %v4539_v35 }
 0xbea   : > { %4454 = vmatmul.mubr.msk.bf16.vlgmr.msra.gmra.mxu1 %vm954_vm2, %v3505_v38 }
 0xc3a   : > { %v3546_v17 = vpop.f32.mrf.mxu0 }
 0xc3c   : > { %v4437_v26 = vpop.f32.mrf.mxu0 }
 0xc3e   : > { %v3549_v46 = vpop.f32.mrf.mxu0 }
 0xc3f   : > { %v4550_v15 = vpack.i.bf16 %v3549_v46, %v3546_v17 }
 0xc40   : > { %v4438_v12 = vpop.f32.mrf.mxu0 }
 0xc41   : > { %4551 = vrot.lane.b32.xlu0 %v4550_v15, %s4920_s19  ;;  %v3800_v15 = vsel %vm954_vm2, %v3792_v5, %v4538_v58 }
 0xc45   : > { %4556 = vrot.lane.b32.xlu0 %v4555_v6, %s4919_s18 }
 0xc79   : > { %v3640_v29 = vpop.f32.mrf.mxu0 }
 0xc7b   : > { %v4449_v27 = vpop.f32.mrf.mxu0 }
 0xc7d   : > { %v3593_v42 = vpop.f32.mrf.mxu1  ;;  %v3643_v57 = vpop.f32.mrf.mxu0 }
 0xc7e   : > { %v4570_v22 = vpack.i.bf16 %v3643_v57, %v3640_v29  ;;  %v4549_v57 = vunpack.i.h.bf16 %v4547_v47 }
 0xc7f   : > { %v4443_v36 = vpop.f32.mrf.mxu1  ;;  %v4450_v62 = vpop.f32.mrf.mxu0 }
 0xc80   : > { %4571 = vrot.lane.b32.xlu0 %v4570_v22, %s4920_s19  ;;  %v4548_v22 = vunpack.i.l.bf16 %v4547_v47 }
 0xc81   : > { %v3596_v56 = vpop.f32.mrf.mxu1 }
 0xc82   : > { %v4560_v61 = vpack.i.bf16 %v3596_v56, %v3593_v42  ;;  %v3796_v16 = vsel %vm449_vm1, %v6230_v32, %v4548_v22 }
 0xc83   : > { %v4444_v28 = vpop.f32.mrf.mxu1 }
 0xc84   : > { %4561 = vrot.lane.b32.xlu1 %v4560_v61, %s4920_s19  ;;  %v6229_v61 = vld [vmem:[#allocation11_spill] sm:$0xff] }
 0xc85   : > { %v3797_v28 = vsel %vm449_vm1, %v6229_v61, %v4549_v57 }
 0xc88   : > { %4566 = vrot.lane.b32.xlu1 %v4565_v43, %s4919_s18 }
 0xcaa   : > { %v3687_v6 = vpop.f32.mrf.mxu1 }
 0xcac   : > { %v4455_v59 = vpop.f32.mrf.mxu1 }
 0xcae   : > { %v3690_v10 = vpop.f32.mrf.mxu1 }
 0xcaf   : > { %v4575_v25 = vpack.i.bf16 %v3690_v10, %v3687_v6 }
 0xcb0   : > { %v4456_v3 = vpop.f32.mrf.mxu1 }
 0xcb1   : > { %4576 = vrot.lane.b32.xlu1 %v4575_v25, %s4920_s19  ;;  %v4120_v3 = vld [vmem:[%s6206_s6] ss:$0 sm:$0xff] }
 0xcb3   : > { %v4552_v34 = vpop.permute.xlu0 %4551 }
 0xcb4   : > { %v4554_v43 = vunpack.i.h.bf16 %v4552_v34  ;;  %v4553_v11 = vunpack.i.l.bf16 %v4552_v34 }
 0xcb6   : > { %v3808_v39 = vsel %vm3806_vm4, %v3799_v7, %v4554_v43  ;;  %v3807_v30 = vsel %vm3806_vm4, %v3798_v8, %v4553_v11 }
 0xcb7   : > { %v3815_v45 = vpack.c.bf16 %v3808_v39, %v3807_v30  ;;  %v4557_v48 = vpop.permute.xlu0 %4556 }
 0xcb8   : > { %v4559_v1 = vunpack.i.h.bf16 %v4557_v48  ;;  %v4558_v9 = vunpack.i.l.bf16 %v4557_v48 }
 0xcb9   : > { %4461 = vmatprep.mubr.msk.bf16.mxu0 %vm363_vm0, %v3815_v45 }
 0xcba   : > { %v3803_v38 = vsel %vm954_vm2, %v3795_v20, %v4559_v1  ;;  %v3802_v17 = vsel %vm954_vm2, %v3794_v14, %v4558_v9 }
 0xcf2   : > { %v4572_v23 = vpop.permute.xlu0 %4571 }
 0xcf3   : > { %v4574_v60 = vunpack.i.h.bf16 %v4572_v23  ;;  %v4573_v37 = vunpack.i.l.bf16 %v4572_v23 }
 0xcf5   : > { %v3812_v12 = vsel %vm3806_vm4, %v3803_v38, %v4574_v60  ;;  %v3811_v63 = vsel %vm3806_vm4, %v3802_v17, %v4573_v37 }
 0xcf6   : > { %v4562_v52 = vpop.permute.xlu1 %4561  ;;  %v3817_v27 = vpack.c.bf16 %v3812_v12, %v3811_v63 }
 0xcf7   : > { %v4564_v26 = vunpack.i.h.bf16 %v4562_v52  ;;  %v4563_v46 = vunpack.i.l.bf16 %v4562_v52 }
 0xcf9   : > { %v3809_v2 = vsel %vm3806_vm4, %v3800_v15, %v4563_v46  ;;  %v3810_v24 = vsel %vm3806_vm4, %v3801_v40, %v4564_v26 }
 0xcfa   : > { %v3816_v29 = vpack.c.bf16 %v3810_v24, %v3809_v2  ;;  %v4567_v42 = vpop.permute.xlu1 %4566 }
 0xcfb   : > { %v4569_v36 = vunpack.i.h.bf16 %v4567_v42  ;;  %v4568_v62 = vunpack.i.l.bf16 %v4567_v42 }
 0xcfc   : > { %4462 = vmatmul.mubr.msk.bf16.vlgmr.msra.gmra.mxu0 %vm363_vm0, %v3816_v29 }
 0xcfd   : > { %4465 = vmatprep.mubr.msk.bf16.mxu0 %vm363_vm0, %v3817_v27  ;;  %v3804_v10 = vsel %vm954_vm2, %v3796_v16, %v4568_v62  ;;  %v3805_v44 = vsel %vm954_vm2, %v3797_v28, %v4569_v36 }
 0xd23   : > { %v4577_v56 = vpop.permute.xlu1 %4576 }
 0xd24   : > { %v4579_v6 = vunpack.i.h.bf16 %v4577_v56  ;;  %v4578_v59 = vunpack.i.l.bf16 %v4577_v56 }
 0xd26   : > { %v3813_v25 = vsel %vm3806_vm4, %v3804_v10, %v4578_v59  ;;  %v3814_v13 = vsel %vm3806_vm4, %v3805_v44, %v4579_v6 }
 0xd27   : > { %v3818_v0 = vpack.c.bf16 %v3814_v13, %v3813_v25 }
 0xd29   : > { %4466 = vmatmul.mubr.msk.bf16.gmra.mxu0 %vm363_vm0, %v3818_v0 }
 0xdbc   : > { %v4463_v4 = vpop.f32.mrf.mxu0 }
 0xdbd   : > { %v3897_v55 = vadd.f32 %v4463_v4, %v4120_v3 }
 0xdbe   : > { %v3888_v34 = vpop.f32.mrf.mxu0 }
 0xdbf   : > { %3921 = vst.msk [vmem:[%s309_s28 + $0x10] sm:$0xff] %vm363_vm0, %v3897_v55  ;;  %v3889_v19 = vadd.f32 %v4120_v3, %v3888_v34 }
 0xdc0   : > { %v4464_v41 = vpop.f32.mrf.mxu0 }
 0xdc1   : > { %3919 = vst.msk [vmem:[%s309_s28] sm:$0xff] %vm363_vm0, %v3889_v19  ;;  %v3900_v43 = vadd.f32 %v4464_v41, %v4120_v3 }
 0xdc2   : > { %v3891_v11 = vpop.f32.mrf.mxu0 }
 0xdc3   : > { %3922 = vst.msk [vmem:[%s309_s28 + $0x18] sm:$0xff] %vm363_vm0, %v3900_v43  ;;  %v3892_v8 = vadd.f32 %v4120_v3, %v3891_v11 }
 0xdc5   : > { %3920 = vst.msk [vmem:[%s309_s28 + $0x8] sm:$0xff] %vm363_vm0, %v3892_v8 }
 0xde9   : > { %v4467_v7 = vpop.f32.mrf.mxu0 }
 0xdea   : > { %v3913_v39 = vadd.f32 %v4467_v7, %v4120_v3 }
 0xdeb   : > { %v3904_v30 = vpop.f32.mrf.mxu0 }
 0xdec   : > { %3925 = vst.msk [vmem:[%s309_s28 + $0x30] sm:$0xff] %vm363_vm0, %v3913_v39  ;;  %v3905_v45 = vadd.f32 %v4120_v3, %v3904_v30 }
 0xded   : > { %v4468_v18 = vpop.f32.mrf.mxu0 }
 0xdee   : > { %3923 = vst.msk [vmem:[%s309_s28 + $0x20] sm:$0xff] %vm363_vm0, %v3905_v45  ;;  %v3916_v53 = vadd.f32 %v4468_v18, %v4120_v3 }
 0xdef   : > { %v3907_v48 = vpop.f32.mrf.mxu0 }
 0xdf0   : > { %3926 = vst.msk [vmem:[%s309_s28 + $0x38] sm:$0xff] %vm363_vm0, %v3916_v53  ;;  %v3908_v54 = vadd.f32 %v4120_v3, %v3907_v48 }
 0xdf2   : > { %3924 = vst.msk [vmem:[%s309_s28 + $0x28] sm:$0xff] %vm363_vm0, %v3908_v54 }
 0xdf3 PF: > { %s19_s24 = sadd.s32 1, %s4899_s24  }
 0xdf4   : > { %p16_p3 = scmp.ge.s32.totalorder %s19_s24, 4  }
 0xdf6   :  { %18 = sbr.rel (!%p16_p3) target bundleno = 2 (0x2), region = 91 }
 0xdfb   :  { %3949 = vsyncpa [#allocation3], 1 }
 0xdfc   :  { %3951 = vsyncpa [#allocation3 + $0x1], 1 }
 0xdfd   :  { %3952 = vsyncpa [#allocation4], 1 }
 0xdfe   :  { %3954 = vsyncpa [#allocation4 + $0x1], 1 }

</bundles_post_ra>
